<compile_context>
chip_gen: v5e
topology: v5e:2x2
jax: 0.10.0
libtpu: 0.0.40
codegen_flags: <defaults>
</compile_context>

<pallas_src>
import functools

import jax
import jax.numpy as jnp
from jax import lax
from jax.experimental import pallas as pl
from jax.experimental.pallas import tpu as pltpu

EPS = 1e-5


# ------------------------- fused Pallas kernel -------------------------

def _sec3_kernel(x_ref, w12_ref, wm1_ref, wse1_ref, wse2_ref, w3_ref,
                 wc3m_ref, wc3y_ref, bias_ref, o_ref, pad_ref, *, H, W):
    """One grid step = full seC3 forward for a (samples-in-step * H * W) row slab."""
    HW = H * W
    M = x_ref.shape[0]                 # rows in this step = Bs * HW
    Bs = M // HW                       # samples folded into M this step
    c_ = wm1_ref.shape[0]
    bf = jnp.bfloat16

    def silu(v):
        return v * jax.nn.sigmoid(v)

    def mm(a_bf16, w_bf16):            # bf16 x bf16 -> f32 accumulation on the MXU
        return jnp.dot(a_bf16, w_bf16, preferred_element_type=jnp.float32)

    # folded-BN biases, shipped as one concatenated operand
    bias = bias_ref[...]
    b12 = bias[:, :2 * c_]
    bm1 = bias[:, 2 * c_:3 * c_]
    b3 = bias[:, 3 * c_:4 * c_]
    bc3 = bias[:, 4 * c_:]

    x = x_ref[...]                                                  # (M, C1) bf16

    # seC3.cv1 | seC3.cv2 fused into one matmul; lane-slice into the two halves (no zero-padded
    # weights -> no dead K work on the downstream matmuls).
    y12 = silu(mm(x, w12_ref[...]) + b12)                           # (M, 2c_) f32
    y1 = y12[:, :c_]
    y2 = y12[:, c_:]

    # seBottleneck.cv1 (1x1)
    b1 = silu(mm(y1.astype(bf), wm1_ref[...]) + bm1)                # (M, c_) f32

    # SE gate: per-sample global average pool -> FC -> ReLU -> FC -> sigmoid -> channel scale.
    # Pooling uses sublane-aligned per-sample slices; the two tiny FCs are batched over samples.
    segs = [b1[s * HW:(s + 1) * HW, :] for s in range(Bs)]
    pooled = jnp.concatenate(
        [jnp.mean(sg, axis=0, keepdims=True) for sg in segs], axis=0)          # (Bs, c_)
    h = jnp.maximum(mm(pooled.astype(bf), wse1_ref[...]), 0.0)                 # (Bs, c_//4)
    gate = jax.nn.sigmoid(mm(h.astype(bf), wse2_ref[...]))                     # (Bs, c_)
    b1s = jnp.concatenate(
        [segs[s] * gate[s:s + 1, :] for s in range(Bs)], axis=0)               # (M, c_) f32

    # seBottleneck.cv2 (3x3, pad=1) as ONE matmul on a packed 9-tap buffer.
    # b1s is written (row-flattened, all samples back to back) into a scratch with 2W slack
    # rows on each side; tap (di,dj) is the window starting at 2W + di*W + dj.  Every read
    # that would fall outside its own sample's image (borders, column wrap, cross-sample
    # bleed) is select-masked, so the scratch borders never need zeroing.
    pad_ref[2 * W:2 * W + M, :] = b1s

    n = lax.broadcasted_iota(jnp.int32, (M, 1), 0)                  # flat row index
    if (H & (H - 1)) == 0 and (W & (W - 1)) == 0:                   # pow2 fast path: no div
        col = n & (W - 1)
        row = (n >> (W.bit_length() - 1)) & (H - 1)
    else:
        # TODO(synk): vector int div/mod for non-pow2 H,W may lower slowly on the VPU.
        col = n % W
        row = (n // W) % H

    taps = []
    for di in (-1, 0, 1):
        for dj in (-1, 0, 1):                                       # tap t = (di+1)*3+(dj+1)
            if di == 0 and dj == 0:
                taps.append(b1s)
                continue
            off = di * W + dj
            win = pad_ref[2 * W + off:2 * W + off + M, :]           # (M, c_) f32
            conds = []
            if di == -1:
                conds.append(row >= 1)
            if di == 1:
                conds.append(row <= H - 2)
            if dj == -1:
                conds.append(col >= 1)
            if dj == 1:
                conds.append(col <= W - 2)
            valid = functools.reduce(jnp.logical_and, conds)        # (M, 1) bool
            taps.append(jnp.where(valid, win, 0.0))                 # masking stays f32 (v5e)
    tapbuf = jnp.concatenate(taps, axis=1).astype(bf)               # (M, 9c_) bf16, one cast
    mb = silu(mm(tapbuf, w3_ref[...]) + b3) + b1s                   # shortcut (add=True)

    # seC3.cv3 on the implicit concat [mb | y2]: two accumulated matmuls, no concat built.
    out = silu(mm(mb.astype(bf), wc3m_ref[...])
               + mm(y2.astype(bf), wc3y_ref[...])
               + bc3)                                               # (M, C2) f32
    o_ref[...] = out.astype(o_ref.dtype)


def sec3_forward_pallas(x_nchw, KP, *, batch_split=1):
    B, C1, H, W = x_nchw.shape
    HW = H * W
    c_ = KP["wm1"].shape[0]
    C2 = KP["wc3_mb"].shape[1]

    G = batch_split                      # 1 on v5e/v6e; 2 on v7x to keep both TCs busy
    assert B % G == 0, (B, G)
    M = (B // G) * HW                    # matmul M per grid step

    # NCHW -> (B*HW, C) rows; bf16 matmul operands (accumulation stays f32 in-kernel).
    x = jnp.transpose(x_nchw, (0, 2, 3, 1)).reshape(B * HW, C1).astype(jnp.bfloat16)

    def full(a):                         # full-extent block, identical for every grid step
        return pl.BlockSpec(a.shape, lambda g: (0,) * a.ndim)

    out = pl.pallas_call(
        functools.partial(_sec3_kernel, H=H, W=W),
        out_shape=jax.ShapeDtypeStruct((B * HW, C2), jnp.float32),
        grid=(G,),
        in_specs=[
            pl.BlockSpec((M, C1), lambda g: (g, 0)),
            full(KP["w12"]), full(KP["wm1"]),
            full(KP["wse1"]), full(KP["wse2"]),
            full(KP["w3"]),
            full(KP["wc3_mb"]), full(KP["wc3_y"]),
            full(KP["bias"]),
        ],
        out_specs=pl.BlockSpec((M, C2), lambda g: (g, 0)),
        scratch_shapes=[pltpu.VMEM((M + 4 * W, c_), jnp.float32)],
        compiler_params=pltpu.CompilerParams(dimension_semantics=("parallel",)),
    )(x, KP["w12"], KP["wm1"], KP["wse1"], KP["wse2"], KP["w3"],
      KP["wc3_mb"], KP["wc3_y"], KP["bias"])

    return jnp.transpose(out.reshape(B, H, W, C2), (0, 3, 1, 2))    # back to NCHW


# ------------------------- params: init & BN folding / packing -------------------------

def init_raw_params(key, c1, c2, e=0.5):
    c_ = int(c2 * e)

    def conv_p(k, cin, cout, ksz):
        k1, k2, k3, k4, k5 = jax.random.split(k, 5)
        fan = cin * ksz * ksz
        return dict(
            w=jax.random.normal(k1, (cout, cin, ksz, ksz), jnp.float32) / jnp.sqrt(fan),
            gamma=jax.random.uniform(k2, (cout,), jnp.float32, minval=0.5, maxval=1.5),
            beta=jax.random.normal(k3, (cout,), jnp.float32) * 0.1,
            mean=jax.random.normal(k4, (cout,), jnp.float32) * 0.1,
            var=jax.random.uniform(k5, (cout,), jnp.float32, minval=0.5, maxval=1.5),
        )

    keys = jax.random.split(key, 7)
    return {
        "cv1": conv_p(keys[0], c1, c_, 1),
        "cv2": conv_p(keys[1], c1, c_, 1),
        "cv3": conv_p(keys[2], 2 * c_, c2, 1),
        "m0_cv1": conv_p(keys[3], c_, c_, 1),          # seBottleneck(c_, c_, e=1.0)
        "m0_cv2": conv_p(keys[4], c_, c_, 3),
        "m0_l1": jax.random.normal(keys[5], (c_ // 4, c_), jnp.float32) / jnp.sqrt(c_),
        "m0_l2": jax.random.normal(keys[6], (c_, c_ // 4), jnp.float32) / jnp.sqrt(c_ // 4),
    }


def fold_params(P):
    """Fold BN into the matmul weights/biases once and pack them for the fused kernel
    (matmul operands pre-cast to bf16, biases concatenated and kept f32)."""
    def fold_conv(p):
        scale = p["gamma"] / jnp.sqrt(p["var"] + EPS)
        shift = p["beta"] - p["mean"] * scale
        return p["w"] * scale[:, None, None, None], shift

    def as_mm(name):                       # 1x1 conv -> (Cin, Cout) matmul
        w, b = fold_conv(P[name])
        return w[:, :, 0, 0].T, b

    w1, b1 = as_mm("cv1")
    w2, b2 = as_mm("cv2")
    wm1, bm1 = as_mm("m0_cv1")
    wc3, bc3 = as_mm("cv3")                # (2c_, C2)
    w3o, b3 = fold_conv(P["m0_cv2"])       # (Cout, Cin, 3, 3)
    c_ = wm1.shape[0]
    cin3, cout3 = w3o.shape[1], w3o.shape[0]

    bf = jnp.bfloat16
    return {
        # cv1 | cv2 fused along the output dim: y12 = SiLU(x @ w12 + b12)
        "w12": jnp.concatenate([w1, w2], axis=1).astype(bf),             # (C1, 2c_)
        # bottleneck cv1 consumes the y1 lane-slice directly (no zero-row padding)
        "wm1": wm1.astype(bf),                                           # (c_, c_)
        # SE linears (bias-free), as (in, out) matmuls, bf16 operands
        "wse1": P["m0_l1"].T.astype(bf),                                 # (c_, c_//4)
        "wse2": P["m0_l2"].T.astype(bf),                                 # (c_//4, c_)
        # 3x3 conv, tap-major: rows [t*Cin,(t+1)*Cin) = (Cin,Cout) slab for tap t=kh*3+kw
        "w3": jnp.transpose(w3o, (2, 3, 1, 0)).reshape(9 * cin3, cout3).astype(bf),
        # cv3 on the implicit concat [mb | y2]: two accumulated matmuls (both halves sliced)
        "wc3_mb": wc3[:c_, :].astype(bf),                                # (c_, C2)
        "wc3_y": wc3[c_:, :].astype(bf),                                 # (c_, C2)
        # all folded-BN biases in one operand: [b12 | bm1 | b3 | bc3]
        "bias": jnp.concatenate([b1, b2, bm1, b3, bc3])[None, :].astype(jnp.float32),
    }


# ------------------------- pure-JAX reference (NCHW, mirrors torch) -------------------------

def _conv_bn_silu_ref(x, p, pad):
    y = lax.conv_general_dilated(
        x, p["w"], (1, 1), [(pad, pad), (pad, pad)],
        dimension_numbers=("NCHW", "OIHW", "NCHW"))
    scale = p["gamma"] / jnp.sqrt(p["var"] + EPS)
    shift = p["beta"] - p["mean"] * scale
    y = y * scale[None, :, None, None] + shift[None, :, None, None]
    return y * jax.nn.sigmoid(y)


def sec3_forward_ref(x, P):
    y1 = _conv_bn_silu_ref(x, P["cv1"], 0)
    y2 = _conv_bn_silu_ref(x, P["cv2"], 0)
    b1 = _conv_bn_silu_ref(y1, P["m0_cv1"], 0)
    pooled = jnp.mean(b1, axis=(2, 3))                       # AdaptiveAvgPool2d(1)
    h = jnp.maximum(pooled @ P["m0_l1"].T, 0.0)
    ysc = jax.nn.sigmoid(h @ P["m0_l2"].T)
    b1s = b1 * ysc[:, :, None, None]
    mb = b1s + _conv_bn_silu_ref(b1s, P["m0_cv2"], 1)        # add=True (shortcut, c1==c2)
    cat = jnp.concatenate([mb, y2], axis=1)
    return _conv_bn_silu_ref(cat, P["cv3"], 0)


# ------------------------- main -------------------------

if __name__ == "__main__":
    key = jax.random.PRNGKey(0)
    kx, kp = jax.random.split(key)
    c1 = c2 = 32
    B, H, W = 2, 8, 8

    x = jax.random.normal(kx, (B, c1, H, W), jnp.float32)
    P = init_raw_params(kp, c1, c2, e=0.5)
    KP = fold_params(P)

    fwd = jax.jit(sec3_forward_pallas)          # batch_split=1 default (v5e/v6e); use 2 on v7x
    out = jax.block_until_ready(fwd(x, KP))

    ref = sec3_forward_ref(x, P)
    assert out.shape == ref.shape == (B, c2, H, W), (out.shape, ref.shape)
    err = float(jnp.max(jnp.abs(out - ref)))
    rel = float(jnp.linalg.norm(out - ref) / jnp.linalg.norm(ref))
    # bf16 MXU operands everywhere (incl. SE gate) with f32 accumulation vs. a pure-f32
    # reference -> loosened tolerance; a real bug (wrong tap/mask/slice) would be O(1).
    assert err < 7e-2 and rel < 2.5e-2, (err, rel)

    print("KERNEL_OK")
</pallas_src>

<mosaic_0001>
module attributes {stable_mosaic.version = 11 : i64} {
  func.func @_sec3_kernel(%arg0: i32, %arg1: memref<128x32xbf16, #tpu.memory_space<vmem>>, %arg2: memref<32x32xbf16, #tpu.memory_space<vmem>>, %arg3: memref<16x16xbf16, #tpu.memory_space<vmem>>, %arg4: memref<16x4xbf16, #tpu.memory_space<vmem>>, %arg5: memref<4x16xbf16, #tpu.memory_space<vmem>>, %arg6: memref<144x16xbf16, #tpu.memory_space<vmem>>, %arg7: memref<16x32xbf16, #tpu.memory_space<vmem>>, %arg8: memref<16x32xbf16, #tpu.memory_space<vmem>>, %arg9: memref<1x96xf32, #tpu.memory_space<vmem>>, %arg10: memref<128x32xf32, #tpu.memory_space<vmem>>, %arg11: memref<160x16xf32, #tpu.memory_space<vmem>>) attributes {dimension_semantics = [#tpu.dimension_semantics<parallel>], iteration_bounds = array<i64: 1>, scalar_prefetch = 0 : i64, scratch_operands = 1 : i64, tpu.core_type = #tpu.core_type<tc>, window_params = [{transform_indices = @transform_0, window_bounds = array<i64: 128, 32>}, {pipeline_mode = #tpu.pipeline_mode<synchronous>, transform_indices = @transform_1, window_bounds = array<i64: 32, 32>}, {pipeline_mode = #tpu.pipeline_mode<synchronous>, transform_indices = @transform_2, window_bounds = array<i64: 16, 16>}, {pipeline_mode = #tpu.pipeline_mode<synchronous>, transform_indices = @transform_3, window_bounds = array<i64: 16, 4>}, {pipeline_mode = #tpu.pipeline_mode<synchronous>, transform_indices = @transform_4, window_bounds = array<i64: 4, 16>}, {pipeline_mode = #tpu.pipeline_mode<synchronous>, transform_indices = @transform_5, window_bounds = array<i64: 144, 16>}, {pipeline_mode = #tpu.pipeline_mode<synchronous>, transform_indices = @transform_6, window_bounds = array<i64: 16, 32>}, {pipeline_mode = #tpu.pipeline_mode<synchronous>, transform_indices = @transform_7, window_bounds = array<i64: 16, 32>}, {pipeline_mode = #tpu.pipeline_mode<synchronous>, transform_indices = @transform_8, window_bounds = array<i64: 1, 96>}, {transform_indices = @transform_9, window_bounds = array<i64: 128, 32>}]} {
    %c0 = arith.constant 0 : index
    %c0_0 = arith.constant 0 : index
    %0 = vector.load %arg9[%c0, %c0_0] : memref<1x96xf32, #tpu.memory_space<vmem>>, vector<1x96xf32>
    %1 = vector.extract_strided_slice %0 {offsets = [0, 0], sizes = [1, 32], strides = [1, 1]} : vector<1x96xf32> to vector<1x32xf32>
    %2 = vector.extract_strided_slice %0 {offsets = [0, 32], sizes = [1, 16], strides = [1, 1]} : vector<1x96xf32> to vector<1x16xf32>
    %3 = vector.extract_strided_slice %0 {offsets = [0, 48], sizes = [1, 16], strides = [1, 1]} : vector<1x96xf32> to vector<1x16xf32>
    %4 = vector.extract_strided_slice %0 {offsets = [0, 64], sizes = [1, 32], strides = [1, 1]} : vector<1x96xf32> to vector<1x32xf32>
    %c0_1 = arith.constant 0 : index
    %c0_2 = arith.constant 0 : index
    %5 = vector.load %arg1[%c0_1, %c0_2] : memref<128x32xbf16, #tpu.memory_space<vmem>>, vector<128x32xbf16>
    %c0_3 = arith.constant 0 : index
    %c0_4 = arith.constant 0 : index
    %6 = vector.load %arg2[%c0_3, %c0_4] : memref<32x32xbf16, #tpu.memory_space<vmem>>, vector<32x32xbf16>
    %cst = arith.constant dense<0.000000e+00> : vector<128x32xf32>
    %7 = tpu.matmul %5, %6, %cst {dimension_numbers = #tpu.dot_dimension_numbers<[1], [0], [0], [1], [0, 0, 1, 1], [], []>} : vector<128x32xbf16>, vector<32x32xbf16>, vector<128x32xf32> -> vector<128x32xf32>
    %8 = vector.broadcast %1 : vector<1x32xf32> to vector<128x32xf32>
    %9 = arith.addf %7, %8 : vector<128x32xf32>
    %10 = arith.negf %9 : vector<128x32xf32>
    %11 = math.exp %10 : vector<128x32xf32>
    %cst_5 = arith.constant 1.000000e+00 : f32
    %12 = vector.broadcast %cst_5 : f32 to vector<128x32xf32>
    %13 = arith.addf %12, %11 : vector<128x32xf32>
    %14 = arith.divf %12, %13 : vector<128x32xf32>
    %15 = arith.mulf %9, %14 : vector<128x32xf32>
    %16 = vector.extract_strided_slice %15 {offsets = [0, 0], sizes = [128, 16], strides = [1, 1]} : vector<128x32xf32> to vector<128x16xf32>
    %17 = vector.extract_strided_slice %15 {offsets = [0, 16], sizes = [128, 16], strides = [1, 1]} : vector<128x32xf32> to vector<128x16xf32>
    %18 = arith.truncf %16 : vector<128x16xf32> to vector<128x16xbf16>
    %c0_6 = arith.constant 0 : index
    %c0_7 = arith.constant 0 : index
    %19 = vector.load %arg3[%c0_6, %c0_7] : memref<16x16xbf16, #tpu.memory_space<vmem>>, vector<16x16xbf16>
    %cst_8 = arith.constant dense<0.000000e+00> : vector<128x16xf32>
    %20 = tpu.matmul %18, %19, %cst_8 {dimension_numbers = #tpu.dot_dimension_numbers<[1], [0], [0], [1], [0, 0, 1, 1], [], []>} : vector<128x16xbf16>, vector<16x16xbf16>, vector<128x16xf32> -> vector<128x16xf32>
    %21 = vector.broadcast %2 : vector<1x16xf32> to vector<128x16xf32>
    %22 = arith.addf %20, %21 : vector<128x16xf32>
    %23 = arith.negf %22 : vector<128x16xf32>
    %24 = math.exp %23 : vector<128x16xf32>
    %cst_9 = arith.constant 1.000000e+00 : f32
    %25 = vector.broadcast %cst_9 : f32 to vector<128x16xf32>
    %26 = arith.addf %25, %24 : vector<128x16xf32>
    %27 = arith.divf %25, %26 : vector<128x16xf32>
    %28 = arith.mulf %22, %27 : vector<128x16xf32>
    %29 = vector.extract_strided_slice %28 {offsets = [0, 0], sizes = [64, 16], strides = [1, 1]} : vector<128x16xf32> to vector<64x16xf32>
    %30 = vector.extract_strided_slice %28 {offsets = [64, 0], sizes = [64, 16], strides = [1, 1]} : vector<128x16xf32> to vector<64x16xf32>
    %cst_10 = arith.constant dense<0.000000e+00> : vector<16xf32>
    %31 = vector.multi_reduction <add>, %29, %cst_10 [0] : vector<64x16xf32> to vector<16xf32>
    %32 = vector.shape_cast %31 : vector<16xf32> to vector<1x16xf32>
    %cst_11 = arith.constant 6.400000e+01 : f32
    %33 = vector.broadcast %cst_11 : f32 to vector<1x16xf32>
    %34 = arith.divf %32, %33 : vector<1x16xf32>
    %cst_12 = arith.constant dense<0.000000e+00> : vector<16xf32>
    %35 = vector.multi_reduction <add>, %30, %cst_12 [0] : vector<64x16xf32> to vector<16xf32>
    %36 = vector.shape_cast %35 : vector<16xf32> to vector<1x16xf32>
    %cst_13 = arith.constant 6.400000e+01 : f32
    %37 = vector.broadcast %cst_13 : f32 to vector<1x16xf32>
    %38 = arith.divf %36, %37 : vector<1x16xf32>
    %39 = tpu.concatenate %34, %38 in 0 : vector<1x16xf32>, vector<1x16xf32> -> vector<2x16xf32>
    %40 = arith.truncf %39 : vector<2x16xf32> to vector<2x16xbf16>
    %c0_14 = arith.constant 0 : index
    %c0_15 = arith.constant 0 : index
    %41 = vector.load %arg4[%c0_14, %c0_15] : memref<16x4xbf16, #tpu.memory_space<vmem>>, vector<16x4xbf16>
    %cst_16 = arith.constant dense<0.000000e+00> : vector<2x4xf32>
    %42 = tpu.matmul %40, %41, %cst_16 {dimension_numbers = #tpu.dot_dimension_numbers<[1], [0], [0], [1], [0, 0, 1, 1], [], []>} : vector<2x16xbf16>, vector<16x4xbf16>, vector<2x4xf32> -> vector<2x4xf32>
    %cst_17 = arith.constant 0.000000e+00 : f32
    %43 = vector.broadcast %cst_17 : f32 to vector<2x4xf32>
    %44 = arith.maximumf %42, %43 : vector<2x4xf32>
    %45 = arith.truncf %44 : vector<2x4xf32> to vector<2x4xbf16>
    %c0_18 = arith.constant 0 : index
    %c0_19 = arith.constant 0 : index
    %46 = vector.load %arg5[%c0_18, %c0_19] : memref<4x16xbf16, #tpu.memory_space<vmem>>, vector<4x16xbf16>
    %cst_20 = arith.constant dense<0.000000e+00> : vector<2x16xf32>
    %47 = tpu.matmul %45, %46, %cst_20 {dimension_numbers = #tpu.dot_dimension_numbers<[1], [0], [0], [1], [0, 0, 1, 1], [], []>} : vector<2x4xbf16>, vector<4x16xbf16>, vector<2x16xf32> -> vector<2x16xf32>
    %48 = arith.negf %47 : vector<2x16xf32>
    %49 = math.exp %48 : vector<2x16xf32>
    %cst_21 = arith.constant 1.000000e+00 : f32
    %50 = vector.broadcast %cst_21 : f32 to vector<2x16xf32>
    %51 = arith.addf %50, %49 : vector<2x16xf32>
    %52 = arith.divf %50, %51 : vector<2x16xf32>
    %53 = vector.extract_strided_slice %52 {offsets = [0, 0], sizes = [1, 16], strides = [1, 1]} : vector<2x16xf32> to vector<1x16xf32>
    %54 = vector.broadcast %53 : vector<1x16xf32> to vector<64x16xf32>
    %55 = arith.mulf %29, %54 : vector<64x16xf32>
    %56 = vector.extract_strided_slice %52 {offsets = [1, 0], sizes = [1, 16], strides = [1, 1]} : vector<2x16xf32> to vector<1x16xf32>
    %57 = vector.broadcast %56 : vector<1x16xf32> to vector<64x16xf32>
    %58 = arith.mulf %30, %57 : vector<64x16xf32>
    %59 = tpu.concatenate %55, %58 in 0 : vector<64x16xf32>, vector<64x16xf32> -> vector<128x16xf32>
    %c16 = arith.constant 16 : index
    %c0_22 = arith.constant 0 : index
    %60 = vector.load %arg11[%c16, %c0_22] : memref<160x16xf32, #tpu.memory_space<vmem>>, vector<128x16xf32>
    tpu.vector_store %arg11[%c16, %c0_22], %59 {strides = array<i32>} : memref<160x16xf32, #tpu.memory_space<vmem>>, vector<128x16xf32>,
    %61 = tpu.iota {dimensions = array<i32: 0>} : vector<128x1xi32>
    %c7_i32 = arith.constant 7 : i32
    %62 = vector.broadcast %c7_i32 : i32 to vector<128x1xi32>
    %63 = arith.andi %61, %62 : vector<128x1xi32>
    %c3_i32 = arith.constant 3 : i32
    %64 = vector.broadcast %c3_i32 : i32 to vector<128x1xi32>
    %65 = arith.shrsi %61, %64 : vector<128x1xi32>
    %c7_i32_23 = arith.constant 7 : i32
    %66 = vector.broadcast %c7_i32_23 : i32 to vector<128x1xi32>
    %67 = arith.andi %65, %66 : vector<128x1xi32>
    %c7 = arith.constant 7 : index
    %c0_24 = arith.constant 0 : index
    %68 = vector.load %arg11[%c7, %c0_24] : memref<160x16xf32, #tpu.memory_space<vmem>>, vector<128x16xf32>
    %c1_i32 = arith.constant 1 : i32
    %69 = vector.broadcast %c1_i32 : i32 to vector<128x1xi32>
    %70 = arith.cmpi sge, %67, %69 : vector<128x1xi32>
    %c1_i32_25 = arith.constant 1 : i32
    %71 = vector.broadcast %c1_i32_25 : i32 to vector<128x1xi32>
    %72 = arith.cmpi sge, %63, %71 : vector<128x1xi32>
    %73 = arith.andi %70, %72 : vector<128x1xi1>
    %cst_26 = arith.constant 0.000000e+00 : f32
    %74 = vector.shape_cast %73 : vector<128x1xi1> to vector<128x1xi1>
    %75 = vector.broadcast %74 : vector<128x1xi1> to vector<128x16xi1>
    %76 = vector.broadcast %cst_26 : f32 to vector<128x16xf32>
    %77 = arith.select %75, %68, %76 : vector<128x16xi1>, vector<128x16xf32>
    %c8 = arith.constant 8 : index
    %c0_27 = arith.constant 0 : index
    %78 = vector.load %arg11[%c8, %c0_27] : memref<160x16xf32, #tpu.memory_space<vmem>>, vector<128x16xf32>
    %c1_i32_28 = arith.constant 1 : i32
    %79 = vector.broadcast %c1_i32_28 : i32 to vector<128x1xi32>
    %80 = arith.cmpi sge, %67, %79 : vector<128x1xi32>
    %cst_29 = arith.constant 0.000000e+00 : f32
    %81 = vector.shape_cast %80 : vector<128x1xi1> to vector<128x1xi1>
    %82 = vector.broadcast %81 : vector<128x1xi1> to vector<128x16xi1>
    %83 = vector.broadcast %cst_29 : f32 to vector<128x16xf32>
    %84 = arith.select %82, %78, %83 : vector<128x16xi1>, vector<128x16xf32>
    %c9 = arith.constant 9 : index
    %c0_30 = arith.constant 0 : index
    %85 = vector.load %arg11[%c9, %c0_30] : memref<160x16xf32, #tpu.memory_space<vmem>>, vector<128x16xf32>
    %c1_i32_31 = arith.constant 1 : i32
    %86 = vector.broadcast %c1_i32_31 : i32 to vector<128x1xi32>
    %87 = arith.cmpi sge, %67, %86 : vector<128x1xi32>
    %c6_i32 = arith.constant 6 : i32
    %88 = vector.broadcast %c6_i32 : i32 to vector<128x1xi32>
    %89 = arith.cmpi sle, %63, %88 : vector<128x1xi32>
    %90 = arith.andi %87, %89 : vector<128x1xi1>
    %cst_32 = arith.constant 0.000000e+00 : f32
    %91 = vector.shape_cast %90 : vector<128x1xi1> to vector<128x1xi1>
    %92 = vector.broadcast %91 : vector<128x1xi1> to vector<128x16xi1>
    %93 = vector.broadcast %cst_32 : f32 to vector<128x16xf32>
    %94 = arith.select %92, %85, %93 : vector<128x16xi1>, vector<128x16xf32>
    %c15 = arith.constant 15 : index
    %c0_33 = arith.constant 0 : index
    %95 = vector.load %arg11[%c15, %c0_33] : memref<160x16xf32, #tpu.memory_space<vmem>>, vector<128x16xf32>
    %c1_i32_34 = arith.constant 1 : i32
    %96 = vector.broadcast %c1_i32_34 : i32 to vector<128x1xi32>
    %97 = arith.cmpi sge, %63, %96 : vector<128x1xi32>
    %cst_35 = arith.constant 0.000000e+00 : f32
    %98 = vector.shape_cast %97 : vector<128x1xi1> to vector<128x1xi1>
    %99 = vector.broadcast %98 : vector<128x1xi1> to vector<128x16xi1>
    %100 = vector.broadcast %cst_35 : f32 to vector<128x16xf32>
    %101 = arith.select %99, %95, %100 : vector<128x16xi1>, vector<128x16xf32>
    %c17 = arith.constant 17 : index
    %c0_36 = arith.constant 0 : index
    %102 = vector.load %arg11[%c17, %c0_36] : memref<160x16xf32, #tpu.memory_space<vmem>>, vector<128x16xf32>
    %c6_i32_37 = arith.constant 6 : i32
    %103 = vector.broadcast %c6_i32_37 : i32 to vector<128x1xi32>
    %104 = arith.cmpi sle, %63, %103 : vector<128x1xi32>
    %cst_38 = arith.constant 0.000000e+00 : f32
    %105 = vector.shape_cast %104 : vector<128x1xi1> to vector<128x1xi1>
    %106 = vector.broadcast %105 : vector<128x1xi1> to vector<128x16xi1>
    %107 = vector.broadcast %cst_38 : f32 to vector<128x16xf32>
    %108 = arith.select %106, %102, %107 : vector<128x16xi1>, vector<128x16xf32>
    %c23 = arith.constant 23 : index
    %c0_39 = arith.constant 0 : index
    %109 = vector.load %arg11[%c23, %c0_39] : memref<160x16xf32, #tpu.memory_space<vmem>>, vector<128x16xf32>
    %c6_i32_40 = arith.constant 6 : i32
    %110 = vector.broadcast %c6_i32_40 : i32 to vector<128x1xi32>
    %111 = arith.cmpi sle, %67, %110 : vector<128x1xi32>
    %c1_i32_41 = arith.constant 1 : i32
    %112 = vector.broadcast %c1_i32_41 : i32 to vector<128x1xi32>
    %113 = arith.cmpi sge, %63, %112 : vector<128x1xi32>
    %114 = arith.andi %111, %113 : vector<128x1xi1>
    %cst_42 = arith.constant 0.000000e+00 : f32
    %115 = vector.shape_cast %114 : vector<128x1xi1> to vector<128x1xi1>
    %116 = vector.broadcast %115 : vector<128x1xi1> to vector<128x16xi1>
    %117 = vector.broadcast %cst_42 : f32 to vector<128x16xf32>
    %118 = arith.select %116, %109, %117 : vector<128x16xi1>, vector<128x16xf32>
    %c24 = arith.constant 24 : index
    %c0_43 = arith.constant 0 : index
    %119 = vector.load %arg11[%c24, %c0_43] : memref<160x16xf32, #tpu.memory_space<vmem>>, vector<128x16xf32>
    %c6_i32_44 = arith.constant 6 : i32
    %120 = vector.broadcast %c6_i32_44 : i32 to vector<128x1xi32>
    %121 = arith.cmpi sle, %67, %120 : vector<128x1xi32>
    %cst_45 = arith.constant 0.000000e+00 : f32
    %122 = vector.shape_cast %121 : vector<128x1xi1> to vector<128x1xi1>
    %123 = vector.broadcast %122 : vector<128x1xi1> to vector<128x16xi1>
    %124 = vector.broadcast %cst_45 : f32 to vector<128x16xf32>
    %125 = arith.select %123, %119, %124 : vector<128x16xi1>, vector<128x16xf32>
    %c25 = arith.constant 25 : index
    %c0_46 = arith.constant 0 : index
    %126 = vector.load %arg11[%c25, %c0_46] : memref<160x16xf32, #tpu.memory_space<vmem>>, vector<128x16xf32>
    %c6_i32_47 = arith.constant 6 : i32
    %127 = vector.broadcast %c6_i32_47 : i32 to vector<128x1xi32>
    %128 = arith.cmpi sle, %67, %127 : vector<128x1xi32>
    %c6_i32_48 = arith.constant 6 : i32
    %129 = vector.broadcast %c6_i32_48 : i32 to vector<128x1xi32>
    %130 = arith.cmpi sle, %63, %129 : vector<128x1xi32>
    %131 = arith.andi %128, %130 : vector<128x1xi1>
    %cst_49 = arith.constant 0.000000e+00 : f32
    %132 = vector.shape_cast %131 : vector<128x1xi1> to vector<128x1xi1>
    %133 = vector.broadcast %132 : vector<128x1xi1> to vector<128x16xi1>
    %134 = vector.broadcast %cst_49 : f32 to vector<128x16xf32>
    %135 = arith.select %133, %126, %134 : vector<128x16xi1>, vector<128x16xf32>
    %136 = tpu.concatenate %77, %84, %94, %101, %59, %108, %118, %125, %135 in 1 : vector<128x16xf32>, vector<128x16xf32>, vector<128x16xf32>, vector<128x16xf32>, vector<128x16xf32>, vector<128x16xf32>, vector<128x16xf32>, vector<128x16xf32>, vector<128x16xf32> -> vector<128x144xf32>
    %137 = arith.truncf %136 : vector<128x144xf32> to vector<128x144xbf16>
    %c0_50 = arith.constant 0 : index
    %c0_51 = arith.constant 0 : index
    %138 = vector.load %arg6[%c0_50, %c0_51] : memref<144x16xbf16, #tpu.memory_space<vmem>>, vector<144x16xbf16>
    %cst_52 = arith.constant dense<0.000000e+00> : vector<128x16xf32>
    %139 = tpu.matmul %137, %138, %cst_52 {dimension_numbers = #tpu.dot_dimension_numbers<[1], [0], [0], [1], [0, 0, 1, 1], [], []>} : vector<128x144xbf16>, vector<144x16xbf16>, vector<128x16xf32> -> vector<128x16xf32>
    %140 = vector.broadcast %3 : vector<1x16xf32> to vector<128x16xf32>
    %141 = arith.addf %139, %140 : vector<128x16xf32>
    %142 = arith.negf %141 : vector<128x16xf32>
    %143 = math.exp %142 : vector<128x16xf32>
    %cst_53 = arith.constant 1.000000e+00 : f32
    %144 = vector.broadcast %cst_53 : f32 to vector<128x16xf32>
    %145 = arith.addf %144, %143 : vector<128x16xf32>
    %146 = arith.divf %144, %145 : vector<128x16xf32>
    %147 = arith.mulf %141, %146 : vector<128x16xf32>
    %148 = arith.addf %147, %59 : vector<128x16xf32>
    %149 = arith.truncf %148 : vector<128x16xf32> to vector<128x16xbf16>
    %c0_54 = arith.constant 0 : index
    %c0_55 = arith.constant 0 : index
    %150 = vector.load %arg7[%c0_54, %c0_55] : memref<16x32xbf16, #tpu.memory_space<vmem>>, vector<16x32xbf16>
    %cst_56 = arith.constant dense<0.000000e+00> : vector<128x32xf32>
    %151 = tpu.matmul %149, %150, %cst_56 {dimension_numbers = #tpu.dot_dimension_numbers<[1], [0], [0], [1], [0, 0, 1, 1], [], []>} : vector<128x16xbf16>, vector<16x32xbf16>, vector<128x32xf32> -> vector<128x32xf32>
    %152 = arith.truncf %17 : vector<128x16xf32> to vector<128x16xbf16>
    %c0_57 = arith.constant 0 : index
    %c0_58 = arith.constant 0 : index
    %153 = vector.load %arg8[%c0_57, %c0_58] : memref<16x32xbf16, #tpu.memory_space<vmem>>, vector<16x32xbf16>
    %cst_59 = arith.constant dense<0.000000e+00> : vector<128x32xf32>
    %154 = tpu.matmul %152, %153, %cst_59 {dimension_numbers = #tpu.dot_dimension_numbers<[1], [0], [0], [1], [0, 0, 1, 1], [], []>} : vector<128x16xbf16>, vector<16x32xbf16>, vector<128x32xf32> -> vector<128x32xf32>
    %155 = arith.addf %151, %154 : vector<128x32xf32>
    %156 = vector.broadcast %4 : vector<1x32xf32> to vector<128x32xf32>
    %157 = arith.addf %155, %156 : vector<128x32xf32>
    %158 = arith.negf %157 : vector<128x32xf32>
    %159 = math.exp %158 : vector<128x32xf32>
    %cst_60 = arith.constant 1.000000e+00 : f32
    %160 = vector.broadcast %cst_60 : f32 to vector<128x32xf32>
    %161 = arith.addf %160, %159 : vector<128x32xf32>
    %162 = arith.divf %160, %161 : vector<128x32xf32>
    %163 = arith.mulf %157, %162 : vector<128x32xf32>
    %c0_61 = arith.constant 0 : index
    %c0_62 = arith.constant 0 : index
    %164 = vector.load %arg10[%c0_61, %c0_62] : memref<128x32xf32, #tpu.memory_space<vmem>>, vector<128x32xf32>
    tpu.vector_store %arg10[%c0_61, %c0_62], %163 {strides = array<i32>} : memref<128x32xf32, #tpu.memory_space<vmem>>, vector<128x32xf32>,
    return
  }
  func.func @transform_0(%arg0: i32) -> (i32, i32) {
    %c0_i32 = arith.constant 0 : i32
    %c0_i32_0 = arith.constant 0 : i32
    return %arg0, %c0_i32 : i32, i32
  }
  func.func @transform_1(%arg0: i32) -> (i32, i32) {
    %c0_i32 = arith.constant 0 : i32
    %c0_i32_0 = arith.constant 0 : i32
    %c0_i32_1 = arith.constant 0 : i32
    return %c0_i32, %c0_i32_0 : i32, i32
  }
  func.func @transform_2(%arg0: i32) -> (i32, i32) {
    %c0_i32 = arith.constant 0 : i32
    %c0_i32_0 = arith.constant 0 : i32
    %c0_i32_1 = arith.constant 0 : i32
    return %c0_i32, %c0_i32_0 : i32, i32
  }
  func.func @transform_3(%arg0: i32) -> (i32, i32) {
    %c0_i32 = arith.constant 0 : i32
    %c0_i32_0 = arith.constant 0 : i32
    %c0_i32_1 = arith.constant 0 : i32
    return %c0_i32, %c0_i32_0 : i32, i32
  }
  func.func @transform_4(%arg0: i32) -> (i32, i32) {
    %c0_i32 = arith.constant 0 : i32
    %c0_i32_0 = arith.constant 0 : i32
    %c0_i32_1 = arith.constant 0 : i32
    return %c0_i32, %c0_i32_0 : i32, i32
  }
  func.func @transform_5(%arg0: i32) -> (i32, i32) {
    %c0_i32 = arith.constant 0 : i32
    %c0_i32_0 = arith.constant 0 : i32
    %c0_i32_1 = arith.constant 0 : i32
    return %c0_i32, %c0_i32_0 : i32, i32
  }
  func.func @transform_6(%arg0: i32) -> (i32, i32) {
    %c0_i32 = arith.constant 0 : i32
    %c0_i32_0 = arith.constant 0 : i32
    %c0_i32_1 = arith.constant 0 : i32
    return %c0_i32, %c0_i32_0 : i32, i32
  }
  func.func @transform_7(%arg0: i32) -> (i32, i32) {
    %c0_i32 = arith.constant 0 : i32
    %c0_i32_0 = arith.constant 0 : i32
    %c0_i32_1 = arith.constant 0 : i32
    return %c0_i32, %c0_i32_0 : i32, i32
  }
  func.func @transform_8(%arg0: i32) -> (i32, i32) {
    %c0_i32 = arith.constant 0 : i32
    %c0_i32_0 = arith.constant 0 : i32
    %c0_i32_1 = arith.constant 0 : i32
    return %c0_i32, %c0_i32_0 : i32, i32
  }
  func.func @transform_9(%arg0: i32) -> (i32, i32) {
    %c0_i32 = arith.constant 0 : i32
    %c0_i32_0 = arith.constant 0 : i32
    return %arg0, %c0_i32 : i32, i32
  }
}

</mosaic_0001>

<bundles_post_ra>
// kernel: sec3_forward_pallas.1
= control target key start
LH: loop header
LB: loop body
LE: loop exit
PB: predicated region body
PF: predicated region fallthrough
CT: control target
= control target key end

     0   :  { %s7239_s0 = inlined_call_operand.vmem [shape: bf16[128,32], index: 0, kind: input, shape index: {}]   ;;  %s7240_s1 = inlined_call_operand.vmem [shape: bf16[32,32], index: 1, kind: input, shape index: {}]   ;;  %s7241_s2 = inlined_call_operand.vmem [shape: bf16[16,16], index: 2, kind: input, shape index: {}]   ;;  %s7242_s3 = inlined_call_operand.vmem [shape: bf16[16,4], index: 3, kind: input, shape index: {}]   ;;  %s7243_s4 = inlined_call_operand.vmem [shape: bf16[4,16], index: 4, kind: input, shape index: {}]   ;;  %s7244_s5 = inlined_call_operand.vmem [shape: bf16[144,16], index: 5, kind: input, shape index: {}]   ;;  %s7245_s6 = inlined_call_operand.vmem [shape: bf16[16,32], index: 6, kind: input, shape index: {}]   ;;  %s7246_s7 = inlined_call_operand.vmem [shape: bf16[16,32], index: 7, kind: input, shape index: {}]   ;;  %s7247_s8 = inlined_call_operand.vmem [shape: f32[1,96], index: 8, kind: input, shape index: {}]   ;;  %s7248_s9 = inlined_call_operand.hbm [shape: f32[128,32], index: 9, kind: output, shape index: {}]  }
   0x1   :  { %v3592_v0 = vld [vmem:[%s7240_s1 + $0x8] sm:$0xff]  ;;  %v3591_v1 = vld [vmem:[%s7240_s1] sm:$0xff] }
   0x2   :  { %141 = vmatpush.bf16.msra.mxu0 %v3592_v0  ;;  %3606 = vmatpush.bf16.msra.mxu3 %v3592_v0 }
   0x3   :  { %14 = vsyncpa [#allocation4], 0  ;;  %v3583_v2 = vld [vmem:[%s7239_s0] sm:$0xff]  ;;  %v3588_v3 = vld [vmem:[%s7239_s0 + $0x28] sm:$0xff]  ;;  %vm7249_vm0 = vcmask 261120   ;;  %s4190_s30 = smov 96  }
   0x4   :  { %v3584_v4 = vld [vmem:[%s7239_s0 + $0x8] sm:$0xff]  ;;  %v3589_v5 = vld [vmem:[%s7239_s0 + $0x30] sm:$0xff]  ;;  %v3590_v7 = vld [vmem:[%s7239_s0 + $0x38] sm:$0xff]  ;;  %s4192_s14 = smov 64   ;;  %s4193_s15 = smov 32  }
   0x5   :  { %v3585_v6 = vld [vmem:[%s7239_s0 + $0x10] sm:$0xff]  ;;  %v3586_v8 = vld [vmem:[%s7239_s0 + $0x18] sm:$0xff]  ;;  %v3587_v9 = vld [vmem:[%s7239_s0 + $0x20] sm:$0xff]  ;;  %s4194_s16 = smov 16   ;;  %s4195_s17 = smov 48  }
   0x6   :  { %142 = vmatpush.bf16.msra.mxu0 %v3591_v1  ;;  %3607 = vmatpush.bf16.msra.mxu3 %v3591_v1  ;;  %v4291_v10 = vld [vmem:[%s7247_s8] ss:$0 sm:$0xff]  ;;  %s4196_s18 = smov 80   ;;  %s4197_s1 = smov 112  }
   0x7   :  { %520 = vrot.lane.b32.xlu0 %v4291_v10, %s4190_s30  ;;  %v3593_v24 = vld [vmem:[%s7241_s2] sm:$0xff] }
   0x8   :  { %555 = vmatpush.bf16.msra.mxu1 %v3593_v24  ;;  %3608 = vmatpush.bf16.msra.mxu2 %v3593_v24 }
   0x9   :  { %3424 = vmatmul.msk.bf16.vlgmr.msra.gmra.mxu0 %vm7249_vm0, %v3583_v2  ;;  %3429 = vmatmul.msk.bf16.vlgmr.msra.gmra.mxu3 %vm7249_vm0, %v3588_v3 }
  0x19   :  { %3425 = vmatmul.msk.bf16.gmra.mxu0 %vm7249_vm0, %v3584_v4  ;;  %3430 = vmatmul.msk.bf16.gmra.mxu3 %vm7249_vm0, %v3589_v5 }
  0x29   :  { %3426 = vmatmul.msk.bf16.gmra.mxu0 %vm7249_vm0, %v3585_v6  ;;  %3431 = vmatmul.msk.bf16.gmra.mxu3 %vm7249_vm0, %v3590_v7 }
  0x39   :  { %3427 = vmatmul.msk.bf16.gmra.mxu0 %vm7249_vm0, %v3586_v8 }
  0x49   :  { %3428 = vmatmul.msk.bf16.gmra.mxu0 %vm7249_vm0, %v3587_v9 }
  0x86   :  { %v144_v11 = vpop.f32.mrf.mxu0 }
  0x87   :  { %v4297_v12 = vadd.f32 %v4291_v10, %v144_v11 }
  0x89   :  { %v3432_v13 = vmul.f32 -1.442695, %v4297_v12 }
  0x8b   :  { %3901 = vpow2.f32 %v3432_v13 }
  0x8c   :  { %v169_v14 = vpop.f32.mrf.mxu3 }
  0x8d   :  { %v4301_v15 = vadd.f32 %v4291_v10, %v169_v14 }
  0x8e   :  { %v146_v16 = vpop.f32.mrf.mxu0 }
  0x8f   :  { %v3442_v17 = vmul.f32 -1.442695, %v4301_v15  ;;  %v4305_v18 = vadd.f32 %v4291_v10, %v146_v16 }
  0x91   :  { %v3902_v19 = vpop.eup %3901  ;;  %3903 = vpow2.f32 %v3442_v17  ;;  %v3433_v20 = vmul.f32 -1.442695, %v4305_v18 }
  0x92   :  { %v4308_v21 = vadd.f32 1.0, %v3902_v19 }
  0x93   :  { %3905 = vpow2.f32 %v3433_v20 }
  0x94   :  { %3907 = vrcp.f32 %v4308_v21  ;;  %v171_v22 = vpop.f32.mrf.mxu3  ;;  %v259_v45 = vand.u32 2147483648, %v4308_v21  ;;  %v257_v47 = vand.u32 2147483647, %v4308_v21  ;;  %vm253_vm1 = vweird.f32 %v4308_v21 }
  0x95   :  { %v4312_v23 = vadd.f32 %v4291_v10, %v171_v22 }
  0x96   :  { %v149_v25 = vpop.f32.mrf.mxu0  ;;  %v260_v57 = vor.u32 1.1754944e-38, %v259_v45  ;;  %vm4367_vm5 = vcmp.eq.f32.partialorder %v257_v47, 8.507059e+37 }
  0x97   :  { %v3904_v26 = vpop.eup %3903  ;;  %v3443_v27 = vmul.f32 -1.442695, %v4312_v23  ;;  %v4319_v28 = vadd.f32 %v4291_v10, %v149_v25 }
  0x98   :  { %v4321_v29 = vadd.f32 1.0, %v3904_v26 }
  0x99   :  { %v3906_v30 = vpop.eup %3905  ;;  %3909 = vpow2.f32 %v3443_v27  ;;  %v3434_v31 = vmul.f32 -1.442695, %v4319_v28 }
  0x9a   :  { %v4324_v32 = vpop.eup %3907  ;;  %3911 = vrcp.f32 %v4321_v29  ;;  %v4327_v33 = vadd.f32 1.0, %v3906_v30  ;;  %v407_v48 = vand.u32 2147483647, %v4321_v29  ;;  %v409_v49 = vand.u32 2147483648, %v4321_v29 }
  0x9b   :  { %3913 = vpow2.f32 %v3434_v31  ;;  %v249_v35 = vmul.f32 %v4324_v32, %v4308_v21  ;;  %vm403_vm2 = vweird.f32 %v4321_v29  ;;  %vm254_vm3 = vweird.f32 %v4324_v32 }
  0x9c   :  { %v174_v34 = vpop.f32.mrf.mxu3  ;;  %3915 = vrcp.f32 %v4327_v33  ;;  %vm4363_vm4 = vcmp.eq.f32.partialorder %v407_v48, 8.507059e+37  ;;  %v410_v63 = vor.u32 1.1754944e-38, %v409_v49  ;;  %vm268_vm7 = vweird.f32 %v4327_v33  ;;  %vm4407_vm11 = vmor %vm253_vm1, %vm254_vm3 }
  0x9d   :  { %v4333_v36 = vadd.f32 %v4291_v10, %v174_v34  ;;  %v250_v44 = vsub.f32 1.0, %v249_v35  ;;  %v272_v4 = vand.u32 2147483647, %v4327_v33  ;;  %v274_v7 = vand.u32 2147483648, %v4327_v33 }
  0x9e   :  { %v151_v37 = vpop.f32.mrf.mxu0 }
  0x9f   :  { %v3910_v38 = vpop.eup %3909  ;;  %v4336_v39 = vadd.f32 %v4291_v10, %v151_v37  ;;  %v3444_v42 = vmul.f32 -1.442695, %v4333_v36  ;;  %v251_v56 = vmul.f32 %v4324_v32, %v250_v44  ;;  %vm4427_vm14 = vcmp.eq.f32.partialorder %v272_v4, 8.507059e+37 }
  0xa0   :  { %v4338_v40 = vpop.eup %3911  ;;  %v4340_v41 = vadd.f32 1.0, %v3910_v38 }
  0xa1   :  { %v3914_v43 = vpop.eup %3913  ;;  %v399_v46 = vmul.f32 %v4338_v40, %v4321_v29  ;;  %v3435_v53 = vmul.f32 -1.442695, %v4336_v39  ;;  %vm404_vm6 = vweird.f32 %v4338_v40  ;;  %v252_v6 = vadd.f32 %v4324_v32, %v251_v56 }
  0xa2   :  { %3917 = vrcp.f32 %v4340_v41  ;;  %v4350_v50 = vpop.eup %3915  ;;  %v4352_v52 = vadd.f32 1.0, %v3914_v43  ;;  %vm4397_vm9 = vmor %vm403_vm2, %vm404_vm6  ;;  %vm418_vm10 = vweird.f32 %v4340_v41  ;;  %v422_v24 = vand.u32 2147483647, %v4340_v41 }
  0xa3   :  { %v400_v51 = vsub.f32 1.0, %v399_v46  ;;  %3919 = vpow2.f32 %v3444_v42  ;;  %v264_v54 = vmul.f32 %v4350_v50, %v4327_v33  ;;  %vm269_vm8 = vweird.f32 %v4350_v50 }
  0xa4   :  { %v176_v55 = vpop.f32.mrf.mxu3  ;;  %3921 = vrcp.f32 %v4352_v52  ;;  %v256_v27 = vsel %vm4407_vm11, %v4324_v32, %v252_v6  ;;  %vm4423_vm13 = vmor %vm268_vm7, %vm269_vm8  ;;  %v424_v31 = vand.u32 2147483648, %v4340_v41  ;;  %v275_v42 = vor.u32 1.1754944e-38, %v274_v7 }
  0xa5   :  { %v401_v58 = vmul.f32 %v4338_v40, %v400_v51  ;;  %v265_v60 = vsub.f32 1.0, %v264_v54  ;;  %3923 = vpow2.f32 %v3435_v53  ;;  %v4372_v0 = vadd.f32 %v4291_v10, %v176_v55 }
  0xa6   :  { %v154_v61 = vpop.f32.mrf.mxu0  ;;  %v261_v45 = vsel %vm4367_vm5, %v260_v57, %v256_v27  ;;  %vm4455_vm1 = vcmp.eq.f32.partialorder %v422_v24, 8.507059e+37  ;;  %v289_v47 = vand.u32 2147483648, %v4352_v52  ;;  %v287_v59 = vand.u32 2147483647, %v4352_v52 }
  0xa7   :  { %v4375_v1 = vadd.f32 %v4291_v10, %v154_v61  ;;  %v266_v3 = vmul.f32 %v4350_v50, %v265_v60  ;;  %v3445_v9 = vmul.f32 -1.442695, %v4372_v0  ;;  %v402_v11 = vadd.f32 %v4338_v40, %v401_v58 }
  0xa8   :  { %v4377_v2 = vpop.eup %3917  ;;  %v488_v58 = vmul.f32 %v261_v45, %v4297_v12  ;;  %vm7251_vm2 = vcmask 130048   ;;  %vm283_vm3 = vweird.f32 %v4352_v52  ;;  %v290_v62 = vor.u32 1.1754944e-38, %v289_v47 }
  0xa9   :  { %v3920_v5 = vpop.eup %3919  ;;  %v414_v8 = vmul.f32 %v4377_v2, %v4340_v41  ;;  %v267_v13 = vadd.f32 %v4350_v50, %v266_v3  ;;  %3925 = vpow2.f32 %v3445_v9  ;;  %v3436_v20 = vmul.f32 -1.442695, %v4375_v1 }
  0xaa   :  { %v4391_v14 = vadd.f32 1.0, %v3920_v5  ;;  %v4393_v16 = vpop.eup %3921  ;;  %vm419_vm12 = vweird.f32 %v4377_v2  ;;  %v406_v32 = vsel %vm4397_vm9, %v4338_v40, %v402_v11  ;;  %vm4493_vm6 = vcmp.eq.f32.partialorder %v287_v59, 8.507059e+37 }
  0xab   :  { %v415_v19 = vsub.f32 1.0, %v414_v8  ;;  %v279_v25 = vmul.f32 %v4393_v16, %v4352_v52  ;;  %v3924_v26 = vpop.eup %3923  ;;  %v271_v33 = vsel %vm4423_vm13, %v4350_v50, %v267_v13  ;;  %vm4446_vm15 = vmor %vm418_vm10, %vm419_vm12  ;;  %v411_v48 = vsel %vm4363_vm4, %v410_v63, %v406_v32 }
  0xac   :  { %3927 = vrcp.f32 %v4391_v14  ;;  %v179_v34 = vpop.f32.mrf.mxu3  ;;  %v4439_v37 = vadd.f32 1.0, %v3924_v26  ;;  %v276_v49 = vsel %vm4427_vm14, %v275_v42, %v271_v33  ;;  %v425_v50 = vor.u32 1.1754944e-38, %v424_v31 }
  0xad   :  { %v416_v30 = vmul.f32 %v4377_v2, %v415_v19  ;;  %v280_v35 = vsub.f32 1.0, %v279_v25  ;;  %3929 = vpow2.f32 %v3436_v20  ;;  %v4451_v40 = vadd.f32 %v4291_v10, %v179_v34 }
  0xae   :  { %v156_v38 = vpop.f32.mrf.mxu0  ;;  %3931 = vrcp.f32 %v4439_v37  ;;  %v498_v61 = vmul.f32 %v411_v48, %v4301_v15  ;;  %vm284_vm4 = vweird.f32 %v4393_v16  ;;  %vm433_vm5 = vweird.f32 %v4391_v14 }
  0xaf   :  { %v417_v43 = vadd.f32 %v4377_v2, %v416_v30  ;;  %v3926_v41 = vpop.eup %3925  ;;  %v281_v51 = vmul.f32 %v4393_v16, %v280_v35  ;;  %v3446_v56 = vmul.f32 -1.442695, %v4451_v40  ;;  %v4475_v57 = vadd.f32 %v4291_v10, %v156_v38  ;;  %vm4509_vm8 = vmor %vm283_vm3, %vm284_vm4 }
  0xb0   :  { %v4471_v55 = vadd.f32 1.0, %v3926_v41  ;;  %v437_v8 = vand.u32 2147483647, %v4391_v14  ;;  %v439_v9 = vand.u32 2147483648, %v4391_v14  ;;  %vm298_vm7 = vweird.f32 %v4439_v37 }
  0xb1   :  { %v421_v54 = vsel %vm4446_vm15, %v4377_v2, %v417_v43  ;;  %v489_v2 = vmul.f32 %v276_v49, %v4305_v18  ;;  %v282_v4 = vadd.f32 %v4393_v16, %v281_v51  ;;  %v3437_v15 = vmul.f32 -1.442695, %v4475_v57 }
  0xb2   :  { %v4466_v53 = vpop.eup %3927  ;;  %3933 = vrcp.f32 %v4471_v55  ;;  %v426_v3 = vsel %vm4455_vm1, %v425_v50, %v421_v54  ;;  %v302_v17 = vand.u32 2147483647, %v4439_v37  ;;  %v304_v19 = vand.u32 2147483648, %v4439_v37 }
  0xb3   :  { %v429_v60 = vmul.f32 %v4466_v53, %v4391_v14  ;;  %v3930_v63 = vpop.eup %3929  ;;  %3935 = vpow2.f32 %v3446_v56  ;;  %v499_v20 = vmul.f32 %v426_v3, %v4312_v23  ;;  %vm434_vm9 = vweird.f32 %v4466_v53 }
  0xb4   :  { %v3932_v12 = vpop.eup %3931  ;;  %v4490_v5 = vadd.f32 1.0, %v3930_v63  ;;  %v181_v13 = vpop.f32.mrf.mxu3  ;;  %v286_v26 = vsel %vm4509_vm8, %v4393_v16, %v282_v4  ;;  %v4517_v27 = vpack.c.bf16 %v489_v2, %v488_v58  ;;  %vm448_vm11 = vweird.f32 %v4471_v55  ;;  %vm4551_vm14 = vmor %vm433_vm5, %vm434_vm9 }
  0xb5   :  { %v430_v18 = vsub.f32 1.0, %v429_v60  ;;  %v294_v11 = vmul.f32 %v3932_v12, %v4439_v37  ;;  %v4520_v23 = vadd.f32 %v4291_v10, %v181_v13  ;;  %vm299_vm10 = vweird.f32 %v3932_v12 }
  0xb6   :  { %v159_v6 = vpop.f32.mrf.mxu0  ;;  %3937 = vrcp.f32 %v4490_v5  ;;  %7362 = vst [vmem:[#allocation6_spill] sm:$0xff] %v4517_v27  ;;  %v452_v34 = vand.u32 2147483647, %v4471_v55  ;;  %v454_v16 = vand.u32 2147483648, %v4471_v55  ;;  %3452 = vmatmul.msk.bf16.vlgmr.msra.gmra.mxu1 %vm7251_vm2, %v4517_v27  ;;  %vm4539_vm13 = vmor %vm298_vm7, %vm299_vm10  ;;  %v305_v44 = vor.u32 1.1754944e-38, %v304_v19 }
  0xb7   :  { %v295_v24 = vsub.f32 1.0, %v294_v11  ;;  %3939 = vpow2.f32 %v3437_v15  ;;  %v4523_v52 = vadd.f32 %v4291_v10, %v159_v6  ;;  %v431_v21 = vmul.f32 %v4466_v53, %v430_v18 }
  0xb8   :  { %v3934_v25 = vpop.eup %3933  ;;  %v3447_v32 = vmul.f32 -1.442695, %v4520_v23  ;;  %v4544_v46 = vpack.c.bf16 %v499_v20, %v498_v61  ;;  %v291_v54 = vsel %vm4493_vm6, %v290_v62, %v286_v26  ;;  %v440_v56 = vor.u32 1.1754944e-38, %v439_v9 }
  0xb9   :  { %v296_v29 = vmul.f32 %v3932_v12, %v295_v24  ;;  %v444_v30 = vmul.f32 %v3934_v25, %v4471_v55  ;;  %v3936_v31 = vpop.eup %3935  ;;  %vm449_vm12 = vweird.f32 %v3934_v25  ;;  %v3438_v45 = vmul.f32 -1.442695, %v4523_v52 }
  0xba   :  { %v4533_v38 = vadd.f32 1.0, %v3936_v31  ;;  %3941 = vpow2.f32 %v3447_v32  ;;  %7365 = vst [vmem:[#allocation7_spill] sm:$0xff] %v4544_v46  ;;  %v432_v48 = vadd.f32 %v4466_v53, %v431_v21  ;;  %vm303_vm15 = vcmp.eq.f32.partialorder %v302_v17, 8.507059e+37  ;;  %vm4564_vm1 = vmor %vm448_vm11, %vm449_vm12  ;;  %3457 = vmatmul.msk.bf16.vlgmr.msra.gmra.mxu2 %vm7251_vm2, %v4544_v46 }
  0xbb   :  { %v297_v33 = vadd.f32 %v3932_v12, %v296_v29  ;;  %v445_v35 = vsub.f32 1.0, %v444_v30  ;;  %vm453_vm3 = vcmp.eq.f32.partialorder %v452_v34, 8.507059e+37  ;;  %v455_v60 = vor.u32 1.1754944e-38, %v454_v16 }
  0xbc   :  { %v4535_v42 = vpop.eup %3937  ;;  %3943 = vrcp.f32 %v4533_v38  ;;  %v436_v55 = vsel %vm4551_vm14, %v4466_v53, %v432_v48  ;;  %vm438_vm4 = vcmp.eq.f32.partialorder %v437_v8, 8.507059e+37  ;;  %v490_v4 = vmul.f32 %v291_v54, %v4319_v28 }
  0xbd   :  { %v3940_v41 = vpop.eup %3939  ;;  %v301_v49 = vsel %vm4539_vm13, %v3932_v12, %v297_v33  ;;  %v446_v50 = vmul.f32 %v3934_v25, %v445_v35  ;;  %v309_v51 = vmul.f32 %v4535_v42, %v4490_v5  ;;  %3945 = vpow2.f32 %v3438_v45 }
  0xbe   :  { %v161_v47 = vpop.f32.mrf.mxu0  ;;  %v306_v58 = vsel %vm303_vm15, %v305_v44, %v301_v49  ;;  %v4571_v62 = vadd.f32 1.0, %v3940_v41  ;;  %v441_v18 = vsel %vm438_vm4, %v440_v56, %v436_v55  ;;  %v317_v53 = vand.u32 2147483647, %v4490_v5 }
  0xbf   :  { %v447_v59 = vadd.f32 %v3934_v25, %v446_v50  ;;  %v310_v61 = vsub.f32 1.0, %v309_v51  ;;  %v4574_v63 = vadd.f32 %v4291_v10, %v161_v47  ;;  %v491_v12 = vmul.f32 %v306_v58, %v4336_v39 }
  0xc0   :  { %v3942_v3 = vpop.eup %3941  ;;  %3947 = vrcp.f32 %v4571_v62  ;;  %v319_v13 = vand.u32 2147483648, %v4490_v5  ;;  %v467_v19 = vand.u32 2147483647, %v4533_v38  ;;  %v500_v22 = vmul.f32 %v441_v18, %v4333_v36 }
  0xc1   :  { %v451_v2 = vsel %vm4564_vm1, %v3934_v25, %v447_v59  ;;  %v4584_v6 = vadd.f32 1.0, %v3942_v3  ;;  %v311_v9 = vmul.f32 %v4535_v42, %v310_v61  ;;  %v3439_v8 = vmul.f32 -1.442695, %v4574_v63 }
  0xc2   :  { %v456_v15 = vsel %vm453_vm3, %v455_v60, %v451_v2  ;;  %v4586_v7 = vpop.eup %3943  ;;  %v4597_v20 = vpack.c.bf16 %v491_v12, %v490_v4  ;;  %vm313_vm5 = vweird.f32 %v4490_v5  ;;  %vm314_vm6 = vweird.f32 %v4535_v42 }
  0xc3   :  { %v459_v39 = vmul.f32 %v4586_v7, %v4533_v38  ;;  %v3946_v17 = vpop.eup %3945  ;;  %v501_v28 = vmul.f32 %v456_v15, %v4372_v0  ;;  %3949 = vrcp.f32 %v4584_v6  ;;  %v312_v21 = vadd.f32 %v4535_v42, %v311_v9  ;;  %vm4627_vm10 = vmor %vm313_vm5, %vm314_vm6 }
  0xc4   :  { %7370 = vst [vmem:[#allocation8_spill] sm:$0xff] %v4597_v20  ;;  %v4601_v25 = vadd.f32 1.0, %v3946_v17  ;;  %vm4605_vm7 = vcmp.eq.f32.partialorder %v317_v53, 8.507059e+37  ;;  %3951 = vpow2.f32 %v3439_v8  ;;  %v320_v30 = vor.u32 1.1754944e-38, %v319_v13 }
  0xc5   :  { %v460_v24 = vsub.f32 1.0, %v459_v39  ;;  %vm463_vm8 = vweird.f32 %v4533_v38  ;;  %v469_v36 = vand.u32 2147483648, %v4533_v38  ;;  %vm4616_vm9 = vcmp.eq.f32.partialorder %v467_v19, 8.507059e+37 }
  0xc6   :  { %v164_v11 = vpop.f32.mrf.mxu0  ;;  %v3948_v26 = vpop.eup %3947  ;;  %3953 = vrcp.f32 %v4601_v25  ;;  %3453 = vmatmul.msk.bf16.gmra.mxu1 %vm7251_vm2, %v4597_v20  ;;  %v4623_v32 = vpack.c.bf16 %v501_v28, %v500_v22  ;;  %vm328_vm11 = vweird.f32 %v4571_v62  ;;  %v332_v43 = vand.u32 2147483647, %v4571_v62 }
  0xc7   :  { %v4610_v29 = vadd.f32 %v4291_v10, %v164_v11  ;;  %v324_v31 = vmul.f32 %v3948_v26, %v4571_v62  ;;  %v461_v34 = vmul.f32 %v4586_v7, %v460_v24  ;;  %v316_v47 = vsel %vm4627_vm10, %v4535_v42, %v312_v21 }
  0xc8   :  { %7375 = vst [vmem:[#allocation9_spill] sm:$0xff] %v4623_v32  ;;  %vm464_vm12 = vweird.f32 %v4586_v7  ;;  %v334_v5 = vand.u32 2147483648, %v4571_v62  ;;  %vm478_vm13 = vweird.f32 %v4584_v6  ;;  %vm329_vm14 = vweird.f32 %v3948_v26 }
  0xc9   :  { %v325_v35 = vsub.f32 1.0, %v324_v31  ;;  %v3440_v44 = vmul.f32 -1.442695, %v4610_v29  ;;  %v3950_v45 = vpop.eup %3949  ;;  %v482_v49 = vand.u32 2147483647, %v4584_v6  ;;  %v462_v51 = vadd.f32 %v4586_v7, %v461_v34  ;;  %vm4651_vm15 = vmor %vm463_vm8, %vm464_vm12 }
  0xca   :  { %v474_v37 = vmul.f32 %v3950_v45, %v4584_v6  ;;  %v3952_v50 = vpop.eup %3951  ;;  %v484_v54 = vand.u32 2147483648, %v4584_v6  ;;  %3458 = vmatmul.msk.bf16.gmra.mxu2 %vm7251_vm2, %v4623_v32  ;;  %vm479_vm1 = vweird.f32 %v3950_v45  ;;  %v470_v61 = vor.u32 1.1754944e-38, %v469_v36  ;;  %vm330_vm3 = vmor %vm328_vm11, %vm329_vm14 }
  0xcb   :  { %v326_v48 = vmul.f32 %v3948_v26, %v325_v35  ;;  %3955 = vpow2.f32 %v3440_v44  ;;  %v4655_v59 = vadd.f32 1.0, %v3952_v50  ;;  %vm333_vm4 = vcmp.eq.f32.partialorder %v332_v43, 8.507059e+37  ;;  %vm480_vm5 = vmor %vm478_vm13, %vm479_vm1 }
  0xcc   :  { %v475_v58 = vsub.f32 1.0, %v474_v37  ;;  %v3954_v60 = vpop.eup %3953  ;;  %v321_v38 = vsel %vm4605_vm7, %v320_v30, %v316_v47  ;;  %v466_v4 = vsel %vm4651_vm15, %v4586_v7, %v462_v51  ;;  %v485_v62 = vor.u32 1.1754944e-38, %v484_v54 }
  0xcd   :  { %v327_v14 = vadd.f32 %v3948_v26, %v326_v48  ;;  %v339_v12 = vmul.f32 %v3954_v60, %v4601_v25  ;;  %3957 = vrcp.f32 %v4655_v59  ;;  %vm483_vm6 = vcmp.eq.f32.partialorder %v482_v49, 8.507059e+37 }
  0xce   :  { %v166_v41 = vpop.f32.mrf.mxu0  ;;  %v476_v3 = vmul.f32 %v3950_v45, %v475_v58  ;;  %v492_v11 = vmul.f32 %v321_v38, %v4375_v1  ;;  %v471_v13 = vsel %vm4616_vm9, %v470_v61, %v466_v4  ;;  %vm344_vm7 = vweird.f32 %v3954_v60 }
  0xcf   :  { %v4647_v42 = vadd.f32 %v4291_v10, %v166_v41  ;;  %v335_v10 = vor.u32 1.1754944e-38, %v334_v5  ;;  %v331_v2 = vsel %vm330_vm3, %v3948_v26, %v327_v14  ;;  %v340_v53 = vsub.f32 1.0, %v339_v12 }
  0xd0   :  { %v477_v9 = vadd.f32 %v3950_v45, %v476_v3  ;;  %v502_v22 = vmul.f32 %v471_v13, %v4451_v40  ;;  %v349_v0 = vand.u32 2147483648, %v4601_v25  ;;  %vm343_vm8 = vweird.f32 %v4601_v25 }
  0xd1   :  { %v3441_v55 = vmul.f32 -1.442695, %v4647_v42  ;;  %v336_v15 = vsel %vm333_vm4, %v335_v10, %v331_v2  ;;  %v3956_v8 = vpop.eup %3955  ;;  %v341_v17 = vmul.f32 %v3954_v60, %v340_v53  ;;  %v364_v40 = vand.u32 2147483648, %v4655_v59  ;;  %vm345_vm9 = vmor %vm343_vm8, %vm344_vm7 }
  0xd2   :  { %v493_v18 = vmul.f32 %v336_v15, %v4475_v57  ;;  %v481_v7 = vsel %vm480_vm5, %v3950_v45, %v477_v9  ;;  %v4674_v39 = vadd.f32 1.0, %v3956_v8  ;;  %v362_v16 = vand.u32 2147483647, %v4655_v59  ;;  %v4710_v9 = vpop.permute.xlu0 %520 }
  0xd3   :  { %3959 = vpow2.f32 %v3441_v55  ;;  %v486_v6 = vsel %vm483_vm6, %v485_v62, %v481_v7  ;;  %v3958_v57 = vpop.eup %3957  ;;  %v342_v26 = vadd.f32 %v3954_v60, %v341_v17  ;;  %v350_v43 = vor.u32 1.1754944e-38, %v349_v0 }
  0xd4   :  { %v4676_v28 = vpack.c.bf16 %v493_v18, %v492_v11  ;;  %v503_v19 = vmul.f32 %v486_v6, %v4520_v23  ;;  %3961 = vrcp.f32 %v4674_v39  ;;  %v354_v1 = vmul.f32 %v3958_v57, %v4655_v59 }
  0xd5   :  { %v347_v23 = vand.u32 2147483647, %v4601_v25  ;;  %vm359_vm10 = vweird.f32 %v3958_v57  ;;  %v346_v33 = vsel %vm345_vm9, %v3954_v60, %v342_v26  ;;  %vm358_vm11 = vweird.f32 %v4655_v59 }
  0xd6   :  { %7380 = vst [vmem:[#allocation10_spill] sm:$0xff] %v4676_v28  ;;  %3454 = vmatmul.msk.bf16.gmra.mxu1 %vm7251_vm2, %v4676_v28  ;;  %v4684_v21 = vpack.c.bf16 %v503_v19, %v502_v22  ;;  %v355_v30 = vsub.f32 1.0, %v354_v1  ;;  %vm360_vm13 = vmor %vm358_vm11, %vm359_vm10  ;;  %v365_v25 = vor.u32 1.1754944e-38, %v364_v40  ;;  %vm363_vm14 = vcmp.eq.f32.partialorder %v362_v16, 8.507059e+37 }
  0xd7   :  { %vm348_vm12 = vcmp.eq.f32.partialorder %v347_v23, 8.507059e+37  ;;  %vm373_vm5 = vweird.f32 %v4674_v39 }
  0xd8   :  { %7381 = vst [vmem:[#allocation11_spill] sm:$0xff] %v4684_v21  ;;  %v356_v34 = vmul.f32 %v3958_v57, %v355_v30  ;;  %v351_v45 = vsel %vm348_vm12, %v350_v43, %v346_v33 }
  0xd9   :  { %v3960_v24 = vpop.eup %3959  ;;  %v494_v49 = vmul.f32 %v351_v45, %v4523_v52  ;;  %v377_v52 = vand.u32 2147483647, %v4674_v39 }
  0xda   :  { %v241_v36 = vadd.f32 1.0, %v3960_v24  ;;  %v3962_v31 = vpop.eup %3961  ;;  %3459 = vmatmul.msk.bf16.gmra.mxu2 %vm7251_vm2, %v4684_v21  ;;  %v357_v44 = vadd.f32 %v3958_v57, %v356_v34 }
  0xdb   :  { %v369_v35 = vmul.f32 %v3962_v31, %v4674_v39  ;;  %vm374_vm3 = vweird.f32 %v3962_v31  ;;  %vm378_vm8 = vcmp.eq.f32.partialorder %v377_v52, 8.507059e+37 }
  0xdc   :  { %3963 = vrcp.f32 %v241_v36  ;;  %v361_v47 = vsel %vm360_vm13, %v3958_v57, %v357_v44  ;;  %vm388_vm1 = vweird.f32 %v241_v36  ;;  %v394_v58 = vand.u32 2147483648, %v241_v36  ;;  %vm375_vm6 = vmor %vm373_vm5, %vm374_vm3 }
  0xdd   :  { %v366_v5 = vsel %vm363_vm14, %v365_v25, %v361_v47  ;;  %v370_v41 = vsub.f32 1.0, %v369_v35  ;;  %v392_v61 = vand.u32 2147483647, %v241_v36 }
  0xde   :  { %v495_v37 = vmul.f32 %v366_v5, %v4574_v63  ;;  %v379_v63 = vand.u32 2147483648, %v4674_v39  ;;  %v395_v55 = vor.u32 1.1754944e-38, %v394_v58 }
  0xdf   :  { %v371_v51 = vmul.f32 %v3962_v31, %v370_v41  ;;  %vm393_vm7 = vcmp.eq.f32.partialorder %v392_v61, 8.507059e+37 }
  0xe0   :  { %v4697_v56 = vpack.c.bf16 %v495_v37, %v494_v49  ;;  %v380_v2 = vor.u32 1.1754944e-38, %v379_v63 }
  0xe1   :  { %v372_v59 = vadd.f32 %v3962_v31, %v371_v51 }
  0xe2   :  { %v3964_v48 = vpop.eup %3963  ;;  %7382 = vst [vmem:[#allocation12_spill] sm:$0xff] %v4697_v56 }
  0xe3   :  { %v384_v50 = vmul.f32 %v3964_v48, %v241_v36  ;;  %vm389_vm15 = vweird.f32 %v3964_v48  ;;  %v376_v38 = vsel %vm375_vm6, %v3962_v31, %v372_v59 }
  0xe4   :  { %vm390_vm4 = vmor %vm388_vm1, %vm389_vm15  ;;  %v381_v12 = vsel %vm378_vm8, %v380_v2, %v376_v38 }
  0xe5   :  { %v385_v54 = vsub.f32 1.0, %v384_v50  ;;  %v496_v15 = vmul.f32 %v381_v12, %v4610_v29 }
  0xe6   :  { %3455 = vmatmul.msk.bf16.gmra.mxu1 %vm7251_vm2, %v4697_v56 }
  0xe7   :  { %v386_v14 = vmul.f32 %v3964_v48, %v385_v54 }
  0xe9   :  { %v387_v60 = vadd.f32 %v3964_v48, %v386_v14 }
  0xeb   :  { %v391_v10 = vsel %vm390_vm4, %v3964_v48, %v387_v60 }
  0xec   :  { %v396_v3 = vsel %vm393_vm7, %v395_v55, %v391_v10 }
  0xed   :  { %v497_v4 = vmul.f32 %v396_v3, %v4647_v42 }
  0xef   :  { %v4706_v62 = vpack.c.bf16 %v497_v4, %v496_v15 }
  0xf1   :  { %7383 = vst [vmem:[#allocation13_spill] sm:$0xff] %v4706_v62 }
  0xf6   :  { %3456 = vmatmul.msk.bf16.gmra.mxu1 %vm7251_vm2, %v4706_v62 }
 0x133   :  { %v557_v18 = vpop.f32.mrf.mxu1 }
 0x134   :  { %v4713_v8 = vadd.f32 %v557_v18, %v4710_v9 }
 0x136   :  { %v3460_v11 = vmul.f32 -1.442695, %v4713_v8 }
 0x138   :  { %3965 = vpow2.f32 %v3460_v11 }
 0x13b   :  { %v559_v53 = vpop.f32.mrf.mxu1 }
 0x13c   :  { %v4717_v42 = vadd.f32 %v559_v53, %v4710_v9 }
 0x13d   :  { %v582_v13 = vpop.f32.mrf.mxu2 }
 0x13e   :  { %v3461_v39 = vmul.f32 -1.442695, %v4717_v42  ;;  %v3966_v6 = vpop.eup %3965  ;;  %v4725_v57 = vadd.f32 %v582_v13, %v4710_v9 }
 0x13f   :  { %v4727_v1 = vadd.f32 1.0, %v3966_v6 }
 0x140   :  { %3967 = vpow2.f32 %v3461_v39  ;;  %v3470_v26 = vmul.f32 -1.442695, %v4725_v57 }
 0x141   :  { %v670_v55 = vand.u32 2147483647, %v4727_v1  ;;  %v672_v38 = vand.u32 2147483648, %v4727_v1  ;;  %vm666_vm10 = vweird.f32 %v4727_v1 }
 0x143   :  { %v562_v7 = vpop.f32.mrf.mxu1  ;;  %vm4800_vm12 = vcmp.eq.f32.partialorder %v670_v55, 8.507059e+37 }
 0x144   :  { %v4720_v29 = vadd.f32 %v562_v7, %v4710_v9 }
 0x145   :  { %v584_v22 = vpop.f32.mrf.mxu2 }
 0x146   :  { %v3462_v17 = vmul.f32 -1.442695, %v4720_v29  ;;  %v4730_v24 = vadd.f32 %v584_v22, %v4710_v9  ;;  %v3968_v0 = vpop.eup %3967 }
 0x147   :  { %v4738_v31 = vadd.f32 1.0, %v3968_v0  ;;  %v673_v0 = vor.u32 1.1754944e-38, %v672_v38 }
 0x148   :  { %3969 = vpow2.f32 %v3462_v17  ;;  %v3471_v36 = vmul.f32 -1.442695, %v4730_v24 }
 0x149   :  { %3971 = vrcp.f32 %v4727_v1  ;;  %v687_v15 = vand.u32 2147483648, %v4738_v31  ;;  %v685_v18 = vand.u32 2147483647, %v4738_v31  ;;  %vm681_vm13 = vweird.f32 %v4738_v31 }
 0x14a   :  { %3973 = vpow2.f32 %v3470_v26 }
 0x14b   :  { %v564_v19 = vpop.f32.mrf.mxu1  ;;  %3975 = vpow2.f32 %v3471_v36  ;;  %vm4819_vm15 = vcmp.eq.f32.partialorder %v685_v18, 8.507059e+37 }
 0x14c   :  { %v4735_v30 = vadd.f32 %v564_v19, %v4710_v9  ;;  %3977 = vrcp.f32 %v4738_v31 }
 0x14d   :  { %v587_v16 = vpop.f32.mrf.mxu2 }
 0x14e   :  { %v3970_v40 = vpop.eup %3969  ;;  %v3463_v34 = vmul.f32 -1.442695, %v4735_v30  ;;  %v4752_v5 = vadd.f32 %v587_v16, %v4710_v9  ;;  %v688_v16 = vor.u32 1.1754944e-38, %v687_v15 }
 0x14f   :  { %v4741_v33 = vpop.eup %3971  ;;  %v4743_v35 = vadd.f32 1.0, %v3970_v40 }
 0x150   :  { %v3974_v43 = vpop.eup %3973  ;;  %3979 = vpow2.f32 %v3463_v34  ;;  %v662_v44 = vmul.f32 %v4741_v33, %v4727_v1  ;;  %v3472_v54 = vmul.f32 -1.442695, %v4752_v5  ;;  %vm667_vm9 = vweird.f32 %v4741_v33 }
 0x151   :  { %3981 = vrcp.f32 %v4743_v35  ;;  %v3976_v45 = vpop.eup %3975  ;;  %v4749_v47 = vadd.f32 1.0, %v3974_v43  ;;  %vm4796_vm11 = vmor %vm666_vm10, %vm667_vm9  ;;  %vm696_vm3 = vweird.f32 %v4743_v35 }
 0x152   :  { %v4757_v48 = vpop.eup %3977  ;;  %v663_v37 = vsub.f32 1.0, %v662_v44  ;;  %v4759_v50 = vadd.f32 1.0, %v3976_v45 }
 0x153   :  { %v567_v23 = vpop.f32.mrf.mxu1  ;;  %3983 = vrcp.f32 %v4749_v47  ;;  %v677_v60 = vmul.f32 %v4757_v48, %v4738_v31  ;;  %v822_v53 = vand.u32 2147483648, %v4749_v47  ;;  %vm682_vm14 = vweird.f32 %v4757_v48 }
 0x154   :  { %v4755_v41 = vadd.f32 %v567_v23, %v4710_v9  ;;  %v664_v59 = vmul.f32 %v4741_v33, %v663_v37  ;;  %3985 = vrcp.f32 %v4759_v50  ;;  %vm816_vm1 = vweird.f32 %v4749_v47  ;;  %vm4852_vm5 = vmor %vm681_vm13, %vm682_vm14 }
 0x155   :  { %v589_v51 = vpop.f32.mrf.mxu2  ;;  %3987 = vpow2.f32 %v3472_v54  ;;  %v678_v12 = vsub.f32 1.0, %v677_v60  ;;  %v4824_v45 = vor.u32 1.1754944e-38, %v822_v53  ;;  %v700_v60 = vand.u32 2147483647, %v4743_v35 }
 0x156   :  { %v3980_v49 = vpop.eup %3979  ;;  %v3464_v58 = vmul.f32 -1.442695, %v4755_v41  ;;  %v665_v3 = vadd.f32 %v4741_v33, %v664_v59  ;;  %v4785_v4 = vadd.f32 %v589_v51, %v4710_v9  ;;  %vm831_vm10 = vweird.f32 %v4759_v50 }
 0x157   :  { %v4763_v14 = vpop.eup %3981  ;;  %v4769_v61 = vadd.f32 1.0, %v3980_v49  ;;  %v679_v36 = vmul.f32 %v4757_v48, %v678_v12  ;;  %v702_v12 = vand.u32 2147483648, %v4743_v35  ;;  %vm4874_vm8 = vcmp.eq.f32.partialorder %v700_v60, 8.507059e+37 }
 0x158   :  { %v692_v52 = vmul.f32 %v4763_v14, %v4743_v35  ;;  %3989 = vpow2.f32 %v3464_v58  ;;  %v669_v26 = vsel %vm4796_vm11, %v4741_v33, %v665_v3  ;;  %v3473_v23 = vmul.f32 -1.442695, %v4785_v4 }
 0x159   :  { %v4780_v2 = vpop.eup %3983  ;;  %3991 = vrcp.f32 %v4769_v61  ;;  %v820_v33 = vand.u32 2147483647, %v4749_v47  ;;  %v674_v49 = vsel %vm4800_vm12, %v673_v0, %v669_v26  ;;  %v680_v59 = vadd.f32 %v4757_v48, %v679_v36 }
 0x15a   :  { %v693_v11 = vsub.f32 1.0, %v692_v52  ;;  %v4792_v7 = vpop.eup %3985  ;;  %v812_v17 = vmul.f32 %v4780_v2, %v4749_v47  ;;  %vm697_vm4 = vweird.f32 %v4763_v14  ;;  %v4861_v39 = vmul.f32 %v674_v49, %v4713_v8 }
 0x15b   :  { %v569_v25 = vpop.f32.mrf.mxu1  ;;  %v3988_v1 = vpop.eup %3987  ;;  %v827_v54 = vmul.f32 %v4792_v7, %v4759_v50  ;;  %v684_v35 = vsel %vm4852_vm5, %v4757_v48, %v680_v59  ;;  %vm817_vm6 = vweird.f32 %v4780_v2  ;;  %vm4870_vm7 = vmor %vm696_vm3, %vm697_vm4  ;;  %vm4879_vm9 = vcmp.eq.f32.partialorder %v820_v33, 8.507059e+37 }
 0x15c   :  { %v4775_v10 = vadd.f32 %v569_v25, %v4710_v9  ;;  %v694_v37 = vmul.f32 %v4763_v14, %v693_v11  ;;  %v813_v51 = vsub.f32 1.0, %v812_v17  ;;  %v4841_v55 = vadd.f32 1.0, %v3988_v1  ;;  %vm4917_vm11 = vmor %vm816_vm1, %vm817_vm6 }
 0x15d   :  { %v592_v19 = vpop.f32.mrf.mxu2  ;;  %v828_v11 = vsub.f32 1.0, %v827_v54  ;;  %v703_v36 = vor.u32 1.1754944e-38, %v702_v12  ;;  %vm832_vm13 = vweird.f32 %v4792_v7  ;;  %vm711_vm1 = vweird.f32 %v4769_v61 }
 0x15e   :  { %v3465_v13 = vmul.f32 -1.442695, %v4775_v10  ;;  %v3990_v34 = vpop.eup %3989  ;;  %v695_v3 = vadd.f32 %v4763_v14, %v694_v37  ;;  %v814_v53 = vmul.f32 %v4780_v2, %v813_v51  ;;  %v917_v51 = vsel %vm7251_vm2, %v4861_v39, 0.0 }
 0x15f   :  { %v4816_v44 = vpop.eup %3991  ;;  %v829_v33 = vmul.f32 %v4792_v7, %v828_v11  ;;  %v852_v26 = vand.u32 2147483648, %v4841_v55  ;;  %vm846_vm5 = vweird.f32 %v4841_v55 }
 0x160   :  { %3993 = vpow2.f32 %v3465_v13  ;;  %v707_v52 = vmul.f32 %v4816_v44, %v4769_v61  ;;  %v4858_v13 = vadd.f32 %v592_v19, %v4710_v9  ;;  %v699_v0 = vsel %vm4870_vm7, %v4763_v14, %v695_v3 }
 0x161   :  { %3995 = vpow2.f32 %v3473_v23  ;;  %v835_v23 = vand.u32 2147483647, %v4759_v50  ;;  %v815_v37 = vadd.f32 %v4780_v2, %v814_v53  ;;  %v830_v11 = vadd.f32 %v4792_v7, %v829_v33 }
 0x162   :  { %v708_v8 = vsub.f32 1.0, %v707_v52  ;;  %v3474_v49 = vmul.f32 -1.442695, %v4858_v13  ;;  %vm712_vm14 = vweird.f32 %v4816_v44 }
 0x163   :  { %v572_v63 = vpop.f32.mrf.mxu1  ;;  %vm4921_vm12 = vcmp.eq.f32.partialorder %v835_v23, 8.507059e+37  ;;  %v715_v23 = vand.u32 2147483647, %v4769_v61  ;;  %vm4975_vm3 = vmor %vm711_vm1, %vm712_vm14 }
 0x164   :  { %v4807_v22 = vadd.f32 %v572_v63, %v4710_v9  ;;  %v4836_v63 = vadd.f32 1.0, %v3990_v34  ;;  %v709_v25 = vmul.f32 %v4816_v44, %v708_v8 }
 0x165   :  { %v594_v19 = vpop.f32.mrf.mxu2  ;;  %vm716_vm4 = vcmp.eq.f32.partialorder %v715_v23, 8.507059e+37 }
 0x166   :  { %v3466_v43 = vmul.f32 -1.442695, %v4807_v22  ;;  %v3994_v15 = vpop.eup %3993  ;;  %v4899_v54 = vadd.f32 %v594_v19, %v4710_v9  ;;  %v710_v17 = vadd.f32 %v4816_v44, %v709_v25  ;;  %vm726_vm6 = vweird.f32 %v4836_v63 }
 0x167   :  { %v4867_v31 = vadd.f32 1.0, %v3994_v15  ;;  %v3996_v48 = vpop.eup %3995 }
 0x168   :  { %3997 = vpow2.f32 %v3466_v43  ;;  %v689_v43 = vsel %vm4819_vm15, %v688_v16, %v684_v35  ;;  %v704_v16 = vsel %vm4874_vm8, %v703_v36, %v699_v0  ;;  %v4925_v18 = vadd.f32 1.0, %v3996_v48  ;;  %vm4961_vm15 = vmor %vm831_vm10, %vm832_vm13 }
 0x169   :  { %v4935_v47 = vmul.f32 %v704_v16, %v4720_v29  ;;  %v3475_v35 = vmul.f32 -1.442695, %v4899_v54  ;;  %vm741_vm14 = vweird.f32 %v4867_v31 }
 0x16a   :  { %vm861_vm1 = vweird.f32 %v4925_v18 }
 0x16b   :  { %v574_v40 = vpop.f32.mrf.mxu1 }
 0x16c   :  { %v4832_v58 = vadd.f32 %v574_v40, %v4710_v9  ;;  %v837_v40 = vand.u32 2147483648, %v4759_v50 }
 0x16e   :  { %v3467_v38 = vmul.f32 -1.442695, %v4832_v58  ;;  %v3998_v34 = vpop.eup %3997  ;;  %v838_v15 = vor.u32 1.1754944e-38, %v837_v40 }
 0x16f   :  { %v4896_v14 = vadd.f32 1.0, %v3998_v34  ;;  %v920_v34 = vsel %vm7251_vm2, %v4935_v47, 0.0 }
 0x170   :  { %3999 = vpow2.f32 %v3467_v38  ;;  %v4911_v38 = vmul.f32 %v689_v43, %v4717_v42  ;;  %v819_v42 = vsel %vm4917_vm11, %v4780_v2, %v815_v37  ;;  %v714_v43 = vsel %vm4975_vm3, %v4816_v44, %v710_v17 }
 0x171   :  { %4001 = vrcp.f32 %v4836_v63  ;;  %v824_v0 = vsel %vm4879_vm9, %v4824_v45, %v819_v42  ;;  %v834_v45 = vsel %vm4961_vm15, %v4792_v7, %v830_v11  ;;  %v850_v44 = vand.u32 2147483647, %v4841_v55 }
 0x172   :  { %4003 = vrcp.f32 %v4841_v55  ;;  %v918_v29 = vsel %vm7251_vm2, %v4911_v38, 0.0  ;;  %v4991_v3 = vmul.f32 %v824_v0, %v4725_v57  ;;  %v839_v42 = vsel %vm4921_vm12, %v838_v15, %v834_v45 }
 0x173   :  { %v577_v1 = vpop.f32.mrf.mxu1  ;;  %4005 = vrcp.f32 %v4867_v31  ;;  %v730_v0 = vand.u32 2147483647, %v4836_v63  ;;  %v867_v45 = vand.u32 2147483648, %v4925_v18  ;;  %vm5081_vm15 = vcmp.eq.f32.partialorder %v850_v44, 8.507059e+37 }
 0x174   :  { %v4906_v60 = vadd.f32 %v577_v1, %v4710_v9  ;;  %4007 = vpow2.f32 %v3474_v49  ;;  %v717_v1 = vand.u32 2147483648, %v4769_v61  ;;  %v919_v49 = vadd.f32 %v918_v29, %v917_v51 }
 0x175   :  { %4009 = vrcp.f32 %v4896_v14  ;;  %v4999_v51 = vor.u32 1.1754944e-38, %v852_v26  ;;  %vm5034_vm9 = vcmp.eq.f32.partialorder %v730_v0, 8.507059e+37 }
 0x176   :  { %v4000_v59 = vpop.eup %3999  ;;  %v3468_v8 = vmul.f32 -1.442695, %v4906_v60  ;;  %4011 = vrcp.f32 %v4925_v18 }
 0x177   :  { %v4908_v52 = vpop.eup %4001  ;;  %v4939_v6 = vadd.f32 1.0, %v4000_v59  ;;  %v718_v59 = vor.u32 1.1754944e-38, %v717_v1  ;;  %v5010_v1 = vmul.f32 %v839_v42, %v4730_v24  ;;  %v732_v24 = vand.u32 2147483648, %v4836_v63 }
 0x178   :  { %v4927_v53 = vpop.eup %4003  ;;  %v722_v2 = vmul.f32 %v4908_v52, %v4836_v63  ;;  %vm727_vm7 = vweird.f32 %v4908_v52 }
 0x179   :  { %v4946_v19 = vpop.eup %4005  ;;  %v842_v48 = vmul.f32 %v4927_v53, %v4841_v55  ;;  %4013 = vrcp.f32 %v4939_v6  ;;  %v719_v17 = vsel %vm716_vm4, %v718_v59, %v714_v43  ;;  %vm847_vm8 = vweird.f32 %v4927_v53  ;;  %vm5047_vm10 = vmor %vm726_vm6, %vm727_vm7 }
 0x17a   :  { %4015 = vpow2.f32 %v3475_v35  ;;  %v4008_v61 = vpop.eup %4007  ;;  %v723_v37 = vsub.f32 1.0, %v722_v2  ;;  %v737_v33 = vmul.f32 %v4946_v19, %v4867_v31  ;;  %v921_v35 = vadd.f32 %v920_v34, %v919_v49  ;;  %vm5057_vm11 = vmor %vm846_vm5, %vm847_vm8 }
 0x17b   :  { %v579_v40 = vpop.f32.mrf.mxu1  ;;  %4017 = vpow2.f32 %v3468_v8  ;;  %v4985_v7 = vpop.eup %4009  ;;  %v843_v16 = vsub.f32 1.0, %v842_v48  ;;  %v5005_v12 = vadd.f32 1.0, %v4008_v61  ;;  %v5016_v23 = vmul.f32 %v719_v17, %v4735_v30 }
 0x17c   :  { %v4988_v25 = vadd.f32 %v579_v40, %v4710_v9  ;;  %v4996_v11 = vpop.eup %4011  ;;  %v724_v57 = vmul.f32 %v4908_v52, %v723_v37  ;;  %v738_v8 = vsub.f32 1.0, %v737_v33  ;;  %v752_v15 = vmul.f32 %v4985_v7, %v4896_v14 }
 0x17d   :  { %v844_v48 = vmul.f32 %v4927_v53, %v843_v16  ;;  %v857_v40 = vmul.f32 %v4996_v11, %v4925_v18  ;;  %v922_v49 = vsel %vm7251_vm2, %v5016_v23, 0.0  ;;  %v733_v17 = vor.u32 1.1754944e-38, %v732_v24 }
 0x17e   :  { %v3469_v9 = vmul.f32 -1.442695, %v4988_v25  ;;  %v725_v26 = vadd.f32 %v4908_v52, %v724_v57  ;;  %v739_v30 = vmul.f32 %v4946_v19, %v738_v8  ;;  %v753_v61 = vsub.f32 1.0, %v752_v15 }
 0x17f   :  { %v5002_v2 = vpop.eup %4013  ;;  %v5031_v43 = vadd.f32 %v4927_v53, %v844_v48  ;;  %v858_v59 = vsub.f32 1.0, %v857_v40  ;;  %v5052_v57 = vor.u32 1.1754944e-38, %v867_v45  ;;  %v747_v8 = vand.u32 2147483648, %v4867_v31 }
 0x180   :  { %v4016_v29 = vpop.eup %4015  ;;  %v767_v34 = vmul.f32 %v5002_v2, %v4939_v6  ;;  %4019 = vpow2.f32 %v3469_v9  ;;  %v865_v9 = vand.u32 2147483647, %v4925_v18  ;;  %v729_v63 = vsel %vm5047_vm10, %v4908_v52, %v725_v26 }
 0x181   :  { %v4018_v36 = vpop.eup %4017  ;;  %4021 = vrcp.f32 %v5005_v12  ;;  %v5038_v33 = vadd.f32 1.0, %v4016_v29  ;;  %v740_v48 = vadd.f32 %v4946_v19, %v739_v30  ;;  %vm742_vm12 = vweird.f32 %v4946_v19 }
 0x182   :  { %v5025_v50 = vadd.f32 1.0, %v4018_v36  ;;  %v768_v16 = vsub.f32 1.0, %v767_v34  ;;  %v754_v0 = vmul.f32 %v4985_v7, %v753_v61  ;;  %v5067_v36 = vadd.f32 %v922_v49, %v921_v35  ;;  %vm5088_vm3 = vmor %vm741_vm14, %vm742_vm12 }
 0x183   :  { %v849_v55 = vsel %vm5057_vm11, %v4927_v53, %v5031_v43  ;;  %vm862_vm13 = vweird.f32 %v4996_v11  ;;  %v859_v52 = vmul.f32 %v4996_v11, %v858_v59  ;;  %v745_v34 = vand.u32 2147483647, %v4867_v31 }
 0x184   :  { %4023 = vrcp.f32 %v5025_v50  ;;  %v769_v35 = vmul.f32 %v5002_v2, %v768_v16  ;;  %v734_v53 = vsel %vm5034_vm9, %v733_v17, %v729_v63  ;;  %v748_v26 = vor.u32 1.1754944e-38, %v747_v8  ;;  %vm5158_vm14 = vmor %vm861_vm1, %vm862_vm13 }
 0x185   :  { %4025 = vrcp.f32 %v5038_v33  ;;  %v760_v30 = vand.u32 2147483647, %v4896_v14  ;;  %v744_v44 = vsel %vm5088_vm3, %v4946_v19, %v740_v48  ;;  %v755_v43 = vadd.f32 %v4985_v7, %v754_v0 }
 0x186   :  { %v4020_v15 = vpop.eup %4019  ;;  %vm757_vm4 = vweird.f32 %v4985_v7  ;;  %v762_v37 = vand.u32 2147483648, %v4896_v14  ;;  %v777_v59 = vand.u32 2147483648, %v4939_v6  ;;  %vm746_vm5 = vcmp.eq.f32.partialorder %v745_v34, 8.507059e+37 }
 0x187   :  { %v5075_v40 = vpop.eup %4021  ;;  %v5093_v61 = vadd.f32 1.0, %v4020_v15  ;;  %vm756_vm6 = vweird.f32 %v4896_v14  ;;  %v770_v19 = vadd.f32 %v5002_v2, %v769_v35  ;;  %vm772_vm7 = vweird.f32 %v5002_v2  ;;  %v3594_v14 = vld [vmem:[%s7242_s3] sm:$0xff] }
 0x188   :  { %v872_v49 = vmul.f32 %v5075_v40, %v5005_v12  ;;  %v5115_v17 = vmul.f32 %v734_v53, %v4755_v41  ;;  %v5118_v8 = vadd.f32 %v4996_v11, %v859_v52  ;;  %v749_v15 = vsel %vm746_vm5, %v748_v26, %v744_v44  ;;  %vm5120_vm8 = vmor %vm756_vm6, %vm757_vm4  ;;  %989 = vmatpush.bf16.msrb.mxu2 %v3594_v14 }
 0x189   :  { %4027 = vrcp.f32 %v5093_v61  ;;  %v759_v48 = vsel %vm5120_vm8, %v4985_v7, %v755_v43  ;;  %vm761_vm9 = vcmp.eq.f32.partialorder %v760_v30, 8.507059e+37  ;;  %vm771_vm10 = vweird.f32 %v4939_v6 }
 0x18a   :  { %v5095_v31 = vpop.eup %4023  ;;  %v775_v41 = vand.u32 2147483647, %v4939_v6  ;;  %v873_v0 = vsub.f32 1.0, %v872_v49  ;;  %v763_v52 = vor.u32 1.1754944e-38, %v762_v37  ;;  %vm5132_vm11 = vmor %vm771_vm10, %vm772_vm7  ;;  %v778_v35 = vor.u32 1.1754944e-38, %v777_v59 }
 0x18b   :  { %v782_v16 = vmul.f32 %v5095_v31, %v5025_v50  ;;  %v5112_v42 = vpop.eup %4025  ;;  %v5138_v45 = vmul.f32 %v749_v15, %v4775_v10  ;;  %v774_v6 = vsel %vm5132_vm11, %v5002_v2, %v770_v19  ;;  %vm787_vm12 = vweird.f32 %v5095_v31 }
 0x18c   :  { %v887_v7 = vmul.f32 %v5112_v42, %v5038_v33  ;;  %v764_v30 = vsel %vm761_vm9, %v763_v52, %v759_v48  ;;  %v790_v43 = vand.u32 2147483647, %v5025_v50  ;;  %v792_v37 = vand.u32 2147483648, %v5025_v50 }
 0x18d   :  { %v783_v63 = vsub.f32 1.0, %v782_v16  ;;  %v5152_v10 = vsel %vm5081_vm15, %v4999_v51, %v849_v55  ;;  %vm776_vm3 = vcmp.eq.f32.partialorder %v775_v41, 8.507059e+37  ;;  %vm786_vm4 = vweird.f32 %v5025_v50 }
 0x18e   :  { %v924_v59 = vsel %vm7251_vm2, %v5115_v17, 0.0  ;;  %v864_v51 = vsel %vm5158_vm14, %v4996_v11, %v5118_v8  ;;  %v874_v55 = vmul.f32 %v5075_v40, %v873_v0  ;;  %v779_v24 = vsel %vm776_vm3, %v778_v35, %v774_v6  ;;  %vm5173_vm13 = vmor %vm786_vm4, %vm787_vm12 }
 0x18f   :  { %v784_v53 = vmul.f32 %v5095_v31, %v783_v63  ;;  %v4028_v26 = vpop.eup %4027  ;;  %v5178_v50 = vmul.f32 %v764_v30, %v4807_v22  ;;  %v888_v19 = vsub.f32 1.0, %v887_v7  ;;  %v926_v11 = vsel %vm7251_vm2, %v5138_v45, 0.0 }
 0x190   :  { %v797_v49 = vmul.f32 %v4028_v26, %v5093_v61  ;;  %vm791_vm15 = vcmp.eq.f32.partialorder %v790_v43, 8.507059e+37  ;;  %v793_v8 = vor.u32 1.1754944e-38, %v792_v37  ;;  %v807_v63 = vand.u32 2147483648, %v5093_v61 }
 0x191   :  { %v785_v44 = vadd.f32 %v5095_v31, %v784_v53  ;;  %vm5188_vm1 = vcmp.eq.f32.partialorder %v865_v9, 8.507059e+37  ;;  %v5193_v22 = vmul.f32 %v779_v24, %v4832_v58  ;;  %vm802_vm5 = vweird.f32 %v4028_v26  ;;  %v997_v24 = vld [vmem:[%s7243_s4] sm:$0x3] }
 0x192   :  { %v798_v29 = vsub.f32 1.0, %v797_v49  ;;  %v925_v41 = vadd.f32 %v924_v59, %v5067_v36  ;;  %vm876_vm6 = vweird.f32 %v5005_v12  ;;  %vm877_vm7 = vweird.f32 %v5075_v40 }
 0x193   :  { %v789_v15 = vsel %vm5173_vm13, %v5095_v31, %v785_v44  ;;  %v805_v31 = vand.u32 2147483647, %v5093_v61  ;;  %v928_v18 = vsel %vm7251_vm2, %v5178_v50, 0.0  ;;  %v889_v9 = vmul.f32 %v5112_v42, %v888_v19  ;;  %vm5221_vm14 = vmor %vm876_vm6, %vm877_vm7 }
 0x194   :  { %v799_v48 = vmul.f32 %v4028_v26, %v798_v29  ;;  %v794_v0 = vsel %vm791_vm15, %v793_v8, %v789_v15  ;;  %vm801_vm8 = vweird.f32 %v5093_v61  ;;  %v927_v58 = vadd.f32 %v926_v11, %v925_v41 }
 0x195   :  { %v875_v34 = vadd.f32 %v5075_v40, %v874_v55  ;;  %vm803_vm9 = vmor %vm801_vm8, %vm802_vm5  ;;  %v808_v35 = vor.u32 1.1754944e-38, %v807_v63  ;;  %v930_v36 = vsel %vm7251_vm2, %v5193_v22, 0.0  ;;  %v5207_v53 = vmul.f32 %v794_v0, %v4906_v60 }
 0x196   :  { %v800_v52 = vadd.f32 %v4028_v26, %v799_v48  ;;  %vm806_vm10 = vcmp.eq.f32.partialorder %v805_v31, 8.507059e+37  ;;  %v880_v6 = vand.u32 2147483647, %v5005_v12  ;;  %v882_v30 = vand.u32 2147483648, %v5005_v12 }
 0x197   :  { %v929_v44 = vadd.f32 %v928_v18, %v927_v58  ;;  %v890_v61 = vadd.f32 %v5112_v42, %v889_v9  ;;  %vm891_vm11 = vweird.f32 %v5038_v33  ;;  %vm892_vm12 = vweird.f32 %v5112_v42 }
 0x198   :  { %v804_v7 = vsel %vm803_vm9, %v4028_v26, %v800_v52  ;;  %v895_v26 = vand.u32 2147483647, %v5038_v33  ;;  %v897_v2 = vand.u32 2147483648, %v5038_v33  ;;  %v4191_v59 = vmov 64.0   ;;  %vm5244_vm4 = vmor %vm891_vm11, %vm892_vm12 }
 0x199   :  { %v809_v43 = vsel %vm806_vm10, %v808_v35, %v804_v7  ;;  %v931_v49 = vadd.f32 %v930_v36, %v929_v44  ;;  %4029 = vrcp.f32 %v4191_v59  ;;  %v946_v55 = vsel %vm7251_vm2, %v5207_v53, 0.0 }
 0x19a   :  { %v5215_v37 = vmul.f32 %v809_v43, %v4988_v25  ;;  %v879_v25 = vsel %vm5221_vm14, %v5075_v40, %v875_v34  ;;  %vm1002_vm3 = vcmask 1041408   ;;  %v869_v16 = vsel %vm5188_vm1, %v5052_v57, %v864_v51 }
 0x19b   :  { %v883_v19 = vor.u32 1.1754944e-38, %v882_v30  ;;  %v1004_v29 = vsel %vm1002_vm3, %v997_v24, 0  ;;  %v949_v11 = vsel %vm7251_vm2, %v4991_v3, 0.0  ;;  %v5252_v8 = vmul.f32 %v5152_v10, %v4752_v5 }
 0x19c   :  { %v947_v12 = vsel %vm7251_vm2, %v5215_v37, 0.0  ;;  %vm881_vm13 = vcmp.eq.f32.partialorder %v880_v6, 8.507059e+37  ;;  %v894_v57 = vsel %vm5244_vm4, %v5112_v42, %v890_v61  ;;  %1013 = vmatpush.bf16.msrb.mxu3 %v1004_v29  ;;  %v898_v51 = vor.u32 1.1754944e-38, %v897_v2 }
 0x19d   :  { %v948_v15 = vadd.f32 %v947_v12, %v946_v55  ;;  %v884_v33 = vsel %vm881_vm13, %v883_v19, %v879_v25  ;;  %v932_v63 = vrot.slane %v931_v49, 4  ;;  %v951_v48 = vsel %vm7251_vm2, %v5010_v1, 0.0 }
 0x19e   :  { %v5260_v31 = vmul.f32 %v869_v16, %v4785_v4  ;;  %vm896_vm15 = vcmp.eq.f32.partialorder %v895_v26, 8.507059e+37  ;;  %v953_v0 = vsel %vm7251_vm2, %v5252_v8, 0.0  ;;  %v5265_v42 = vmul.f32 %v884_v33, %v4858_v13 }
 0x19f   :  { %v950_v14 = vadd.f32 %v949_v11, %v948_v15  ;;  %v4030_v41 = vpop.eup %4029  ;;  %v899_v5 = vsel %vm896_vm15, %v898_v51, %v894_v57  ;;  %v933_v18 = vadd.f32 %v932_v63, %v931_v49  ;;  %vm968_vm5 = vcmask 1040384   ;;  %v3603_v63 = vld [vmem:[%s7244_s5 + $0x40] sm:$0xff] }
 0x1a0   :  { %v955_v52 = vsel %vm7251_vm2, %v5260_v31, 0.0  ;;  %v5270_v58 = vmul.f32 %v899_v5, %v4899_v54  ;;  %v939_v4 = vmul.f32 64.0, %v4030_v41  ;;  %v957_v35 = vsel %vm7251_vm2, %v5265_v42, 0.0  ;;  %2439 = vmatpush.bf16.msra.mxu3 %v3603_v63 }
 0x1a1   :  { %v952_v10 = vadd.f32 %v951_v48, %v950_v14  ;;  %v934_v36 = vrot.slane %v933_v18, 2  ;;  %vm943_vm1 = vweird.f32 %v4030_v41  ;;  %vm998_vm6 = vcmask 31744  }
 0x1a2   :  { %v959_v6 = vsel %vm7251_vm2, %v5270_v58, 0.0  ;;  %v940_v13 = vsub.f32 1.0, %v939_v4  ;;  %v1072_v14 = vlaneseq }
 0x1a3   :  { %v954_v9 = vadd.f32 %v953_v0, %v952_v10  ;;  %v935_v44 = vadd.f32 %v934_v36, %v933_v18 }
 0x1a4   :  { %v941_v61 = vmul.f32 %v4030_v41, %v940_v13 }
 0x1a5   :  { %v956_v34 = vadd.f32 %v955_v52, %v954_v9  ;;  %v936_v26 = vrot.slane %v935_v44, 1 }
 0x1a6   :  { %v942_v54 = vadd.f32 %v4030_v41, %v941_v61 }
 0x1a7   :  { %v958_v7 = vadd.f32 %v957_v35, %v956_v34  ;;  %v937_v59 = vadd.f32 %v936_v26, %v935_v44 }
 0x1a8   :  { %v944_v55 = vsel %vm943_vm1, %v4030_v41, %v942_v54  ;;  %v5280_v41 = vshrl.u32 %v1072_v14, 7 }
 0x1a9   :  { %v960_v30 = vadd.f32 %v959_v6, %v958_v7  ;;  %v945_v24 = vmul.f32 %v944_v55, %v937_v59 }
 0x1aa   :  { %v1074_v0 = vadd.s32 8, %v5280_v41  ;;  %v1105_v54 = vshra.s32 %v5280_v41, 3  ;;  %v5824_v56 = vadd.s32 96, %v5280_v41 }
 0x1ab   :  { %v961_v43 = vrot.slane %v960_v30, 4 }
 0x1ac   :  { %v1106_v18 = vshra.s32 %v1074_v0, 3  ;;  %v1090_v9 = vand.u32 7, %v1074_v0  ;;  %7545 = vst [vmem:[#allocation38_spill] sm:$0xff] %v5824_v56 }
 0x1ad   :  { %v962_v60 = vadd.f32 %v961_v43, %v960_v30  ;;  %v7432_v30 = vmov 0 }
 0x1ae   :  { %v5283_v52 = vand.u32 7, %v1106_v18  ;;  %vm5286_vm8 = vcmp.ge.s32.totalorder %v1090_v9, 1  ;;  %vm5370_vm13 = vcmp.le.s32.totalorder %v1090_v9, 6 }
 0x1af   :  { %v963_v2 = vrot.slane %v962_v60, 2 }
 0x1b0   :  { %vm1154_vm7 = vcmp.ge.s32.totalorder %v5283_v52, 1 }
 0x1b1   :  { %v964_v49 = vadd.f32 %v963_v2, %v962_v60  ;;  %vm5294_vm10 = vmand %vm1154_vm7, %vm5286_vm8 }
 0x1b2   :  { %v7433_v30 = vsel %vm5294_vm10, 4294967295, %v7432_v30 }
 0x1b3   :  { %v965_v25 = vrot.slane %v964_v49, 1  ;;  %7434 = vst [vmem:[#allocation14_spill] sm:$0xff] %v7433_v30 }
 0x1b5   :  { %v966_v12 = vadd.f32 %v965_v25, %v964_v49 }
 0x1b7   :  { %v967_v16 = vmul.f32 %v966_v12, %v944_v55 }
 0x1b9   :  { %v969_v19 = vsel %vm968_vm5, %v945_v24, %v967_v16  ;;  %vm5403_vm5 = vmand %vm1154_vm7, %vm5370_vm13 }
 0x1ba   :  { %v970_v40 = vpack.c.bf16 %v969_v19, %v969_v19 }
 0x1bc   :  { %3480 = vmatmul.msk.bf16.vlgmr.msrb.gmra.mxu2 %vm7251_vm2, %v970_v40  ;;  %v5566_v40 = vadd.s32 48, %v5280_v41 }
 0x1be   :  { %v7559_v27 = vand.u32 7, %v5566_v40 }
 0x23f   :  { %v991_v15 = vpop.f32.mrf.mxu2 }
 0x240   :  { %v995_v29 = vmax.f32 %v991_v15, 0.0 }
 0x242   :  { %v996_v11 = vpack.c.bf16 %v995_v29, %v995_v29 }
 0x244   :  { %3481 = vmatmul.msk.bf16.vlgmr.msrb.gmra.mxu3 %vm998_vm6, %v996_v11  ;;  %vm1509_vm6 = vcmp.le.s32.totalorder %v5283_v52, 6  ;;  %v7495_v52 = vmov 0 }
 0x247   :  { %v993_v57 = vpop.f32.mrf.mxu2 }
 0x248   :  { %v1249_v57 = vld [vmem:[#allocation2 + $0x8] sm:$0xff] }
 0x2c7   :  { %v1015_v33 = vpop.f32.mrf.mxu3 }
 0x2c8   :  { %v3482_v51 = vmul.f32 -1.442695, %v1015_v33 }
 0x2ca   :  { %4031 = vpow2.f32 %v3482_v51  ;;  %v5418_v51 = vadd.s32 24, %v5280_v41 }
 0x2cf   :  { %v1017_v48 = vpop.f32.mrf.mxu3 }
 0x2d0   :  { %v4032_v5 = vpop.eup %4031 }
 0x2d1   :  { %v1022_v10 = vadd.f32 1.0, %v4032_v5 }
 0x2d3   :  { %4033 = vrcp.f32 %v1022_v10  ;;  %v1034_v7 = vand.u32 2147483648, %v1022_v10  ;;  %v1032_v13 = vand.u32 2147483647, %v1022_v10  ;;  %vm1028_vm11 = vweird.f32 %v1022_v10 }
 0x2d5   :  { %v1035_v43 = vor.u32 1.1754944e-38, %v1034_v7  ;;  %vm1033_vm14 = vcmp.eq.f32.partialorder %v1032_v13, 8.507059e+37  ;;  %v7462_v7 = vmov 0 }
 0x2d9   :  { %v4034_v4 = vpop.eup %4033 }
 0x2da   :  { %v1024_v34 = vmul.f32 %v4034_v4, %v1022_v10  ;;  %vm1029_vm9 = vweird.f32 %v4034_v4 }
 0x2db   :  { %vm1030_vm12 = vmor %vm1028_vm11, %vm1029_vm9 }
 0x2dc   :  { %v1025_v36 = vsub.f32 1.0, %v1024_v34  ;;  %vm5446_vm11 = vmand %vm1509_vm6, %vm5370_vm13 }
 0x2de   :  { %v1026_v6 = vmul.f32 %v4034_v4, %v1025_v36 }
 0x2e0   :  { %v1027_v44 = vadd.f32 %v4034_v4, %v1026_v6 }
 0x2e2   :  { %v1031_v61 = vsel %vm1030_vm12, %v4034_v4, %v1027_v44  ;;  %v1108_v44 = vshra.s32 %v5418_v51, 3 }
 0x2e3   :  { %v1036_v60 = vsel %vm1033_vm14, %v1035_v43, %v1031_v61  ;;  %vm5504_vm14 = vmand %vm1509_vm6, %vm5286_vm8 }
 0x2e4   :  { %v1038_v26 = vperm.slane %v1036_v60, 0  ;;  %v5298_v2 = vperm.slane %v1036_v60, 1 }
 0x2e6   :  { %v5302_v49 = vmul.f32 %v1038_v26, %v5178_v50  ;;  %v5305_v59 = vmul.f32 %v1038_v26, %v5193_v22  ;;  %v5308_v25 = vmul.f32 %v1038_v26, %v5115_v17  ;;  %v5311_v55 = vmul.f32 %v1038_v26, %v5138_v45 }
 0x2e7   :  { %v5314_v12 = vmul.f32 %v1038_v26, %v4861_v39  ;;  %v5317_v24 = vmul.f32 %v1038_v26, %v4911_v38  ;;  %v5335_v39 = vmul.f32 %v5298_v2, %v5010_v1  ;;  %v1089_v38 = vand.u32 7, %v5280_v41 }
 0x2e8   :  { %7435 = vst [vmem:[#allocation15_spill] sm:$0xff] %v5302_v49  ;;  %v3635_v50 = vpack.i.bf16 %v5305_v59, %v5302_v49  ;;  %v3630_v22 = vpack.i.bf16 %v5311_v55, %v5308_v25  ;;  %v5338_v45 = vand.u32 7, %v1105_v54  ;;  %v5345_v16 = vmul.f32 %v5298_v2, %v4991_v3 }
 0x2e9   :  { %7436 = vst [vmem:[#allocation16_spill] sm:$0xff] %v5305_v59  ;;  %v3620_v17 = vpack.i.bf16 %v5317_v24, %v5314_v12  ;;  %v5350_v19 = vmul.f32 %v1038_v26, %v5016_v23  ;;  %v5355_v1 = vmul.f32 %v1038_v26, %v4935_v47  ;;  %vm5359_vm3 = vcmp.le.s32.totalorder %v1089_v38, 6 }
 0x2ea   :  { %7437 = vst [vmem:[#allocation17_spill] sm:$0xff] %v5308_v25  ;;  %3636 = vrot.lane.b32.xlu1 %v3635_v50, %s4192_s14  ;;  %3631 = vrot.lane.b32.xlu0 %v3630_v22, %s4192_s14  ;;  %vm7250_vm4 = vcmp.ge.s32.totalorder %v5338_v45, 1  ;;  %v5366_v3 = vmul.f32 %v5298_v2, %v5215_v37  ;;  %v5376_v47 = vmul.f32 %v5298_v2, %v5207_v53  ;;  %v5383_v37 = vadd.s32 16, %v5280_v41 }
 0x2eb   :  { %7438 = vst [vmem:[#allocation18_spill] sm:$0xff] %v5311_v55  ;;  %3621 = vrot.lane.b32.xlu2 %v3620_v17, %s4192_s14  ;;  %v3645_v15 = vpack.i.bf16 %v5335_v39, %v5345_v16  ;;  %v3625_v29 = vpack.i.bf16 %v5350_v19, %v5355_v1  ;;  %vm5393_vm15 = vmand %vm7250_vm4, %vm5359_vm3  ;;  %vm1508_vm1 = vcmp.le.s32.totalorder %v5338_v45, 6  ;;  %v5411_v33 = vmul.f32 %v5298_v2, %v5252_v8 }
 0x2ec   :  { %7439 = vst [vmem:[#allocation19_spill] sm:$0xff] %v5314_v12  ;;  %v1107_v5 = vshra.s32 %v5383_v37, 3  ;;  %vm5427_vm9 = vmand %vm1508_vm1, %vm5359_vm3  ;;  %v1297_v18 = vsel %vm7250_vm4, %v1249_v57, 0.0  ;;  %vm5450_vm12 = vcmp.ge.s32.totalorder %v1089_v38, 1  ;;  %v1091_v13 = vand.u32 7, %v5383_v37 }
 0x2ed   :  { %7440 = vst [vmem:[#allocation20_spill] sm:$0xff] %v5317_v24  ;;  %v7463_v7 = vsel %vm5450_vm12, 4294967295, %v7462_v7  ;;  %v5471_v50 = vadd.s32 32, %v5280_v41  ;;  %v5475_v22 = vmul.f32 %v5298_v2, %v5260_v31  ;;  %v5495_v31 = vmul.f32 %v5298_v2, %v5265_v42 }
 0x2ee   :  { %1063 = vst.msk [vmem:[#allocation2 + $0x48] sm:$0xff] %vm7251_vm2, %v5305_v59  ;;  %v5468_v54 = vand.u32 7, %v1107_v5  ;;  %v1092_v57 = vand.u32 7, %v5418_v51  ;;  %v5514_v42 = vmul.f32 %v5298_v2, %v5270_v58  ;;  %v5523_v8 = vand.u32 7, %v1108_v44 }
 0x2ef   :  { %1062 = vst.msk [vmem:[#allocation2 + $0x40] sm:$0xff] %vm7251_vm2, %v5302_v49  ;;  %v7255_v58 = vand.u32 7, %v5471_v50  ;;  %v5555_v44 = vadd.s32 72, %v5280_v41 }
 0x2f0   :  { %1061 = vst.msk [vmem:[#allocation2 + $0x38] sm:$0xff] %vm7251_vm2, %v5311_v55  ;;  %vm5605_vm4 = vcmp.ge.s32.totalorder %v1092_v57, 1 }
 0x2f1   :  { %7441 = vst [vmem:[#allocation21_spill] sm:$0xff] %v5335_v39 }
 0x2f2   :  { %7442 = vst [vmem:[#allocation22_spill] sm:$0xff] %v5338_v45  ;;  %3646 = vrot.lane.b32.xlu0 %v3645_v15, %s4192_s14  ;;  %v3640_v15 = vpack.i.bf16 %v5366_v3, %v5376_v47 }
 0x2f3   :  { %1060 = vst.msk [vmem:[#allocation2 + $0x30] sm:$0xff] %vm7251_vm2, %v5308_v25  ;;  %3626 = vrot.lane.b32.xlu2 %v3625_v29, %s4192_s14  ;;  %v7526_v25 = vmov 0 }
 0x2f4   :  { %7443 = vst [vmem:[#allocation23_spill] sm:$0xff] %v5345_v16 }
 0x2f5   :  { %1057 = vst.msk [vmem:[#allocation2 + $0x18] sm:$0xff] %vm7251_vm2, %v5317_v24 }
 0x2f6   :  { %7444 = vst [vmem:[#allocation24_spill] sm:$0xff] %v5350_v19 }
 0x2f7   :  { %1056 = vst.msk [vmem:[#allocation2 + $0x10] sm:$0xff] %vm7251_vm2, %v5314_v12 }
 0x2f8   :  { %7445 = vst [vmem:[#allocation25_spill] sm:$0xff] %v5355_v1 }
 0x2f9   :  { %1067 = vst.msk [vmem:[#allocation2 + $0x68] sm:$0xff] %vm7251_vm2, %v5335_v39 }
 0x2fa   :  { %7448 = vst [vmem:[#allocation26_spill] sm:$0xff] %v5366_v3 }
 0x2fb   :  { %1066 = vst.msk [vmem:[#allocation2 + $0x60] sm:$0xff] %vm7251_vm2, %v5345_v16  ;;  %3641 = vrot.lane.b32.xlu2 %v3640_v15, %s4192_s14 }
 0x2fc   :  { %7451 = vst [vmem:[#allocation27_spill] sm:$0xff] %v5376_v47 }
 0x2fd   :  { %1059 = vst.msk [vmem:[#allocation2 + $0x28] sm:$0xff] %vm7251_vm2, %v5350_v19  ;;  %v7529_v19 = vmov 0 }
 0x2fe   :  { %1058 = vst.msk [vmem:[#allocation2 + $0x20] sm:$0xff] %vm7251_vm2, %v5355_v1  ;;  %v1313_v63 = vld [vmem:[#allocation2 + $0x9] sm:$0xff]  ;;  %v5420_v14 = vld [vmem:[#allocation2 + $0x11] sm:$0xff] }
 0x2ff   :  { %1065 = vst.msk [vmem:[#allocation2 + $0x58] sm:$0xff] %vm7251_vm2, %v5366_v3  ;;  %v1250_v48 = vld [vmem:[#allocation2 + $0x10] sm:$0xff]  ;;  %v1393_v10 = vsel %vm5393_vm15, %v1313_v63, 0.0  ;;  %v1394_v0 = vsel %vm5403_vm5, %v5420_v14, 0.0  ;;  %v5510_v63 = vadd.s32 40, %v5280_v41  ;;  %vm5525_vm15 = vcmp.le.s32.totalorder %v1091_v13, 6 }
 0x300   :  { %7456 = vst [vmem:[#allocation28_spill] sm:$0xff] %v5411_v33  ;;  %v1298_v9 = vsel %vm1154_vm7, %v1250_v48, 0.0  ;;  %v5440_v4 = vld [vmem:[#allocation2 + $0xf] sm:$0xff]  ;;  %v3655_v36 = vpack.i.bf16 %v1394_v0, %v1393_v10  ;;  %v5466_v26 = vld [vmem:[#allocation2 + $0x17] sm:$0xff]  ;;  %vm5489_vm7 = vmand %vm1508_vm1, %vm5450_vm12  ;;  %vm7252_vm5 = vcmp.le.s32.totalorder %v5468_v54, 6  ;;  %v1109_v10 = vshra.s32 %v5471_v50, 3 }
 0x301   :  { %1064 = vst.msk [vmem:[#allocation2 + $0x50] sm:$0xff] %vm7251_vm2, %v5376_v47  ;;  %v3650_v60 = vpack.i.bf16 %v1298_v9, %v1297_v18  ;;  %v1442_v48 = vsel %vm5450_vm12, %v5440_v4, 0.0  ;;  %v1443_v5 = vsel %vm5286_vm8, %v5466_v26, 0.0  ;;  %v7254_v2 = vand.u32 7, %v5510_v63 }
 0x302   :  { %7459 = vst [vmem:[#allocation29_spill] sm:$0xff] %v5440_v4  ;;  %3656 = vrot.lane.b32.xlu1 %v3655_v36, %s4193_s15  ;;  %v1572_v35 = vsel %vm5489_vm7, %v5466_v26, 0.0  ;;  %vm7256_vm8 = vcmp.ge.s32.totalorder %v5468_v54, 1  ;;  %v5544_v18 = vadd.s32 64, %v5280_v41  ;;  %v3660_v9 = vpack.i.bf16 %v1443_v5, %v1442_v48 }
 0x303   :  { %7464 = vst [vmem:[#allocation30_spill] sm:$0xff] %v7463_v7  ;;  %3651 = vrot.lane.b32.xlu0 %v3650_v60, %s4194_s16  ;;  %v1491_v34 = vsel %vm5359_vm3, %v5420_v14, 0.0  ;;  %vm7262_vm3 = vcmp.le.s32.totalorder %v5523_v8, 6  ;;  %v5578_v37 = vand.u32 7, %v1109_v10  ;;  %vm5587_vm7 = vmand %vm7256_vm8, %vm5525_vm15  ;;  %v7499_v3 = vmov 0 }
 0x304   :  { %1068 = vst.msk [vmem:[#allocation2 + $0x70] sm:$0xff] %vm7251_vm2, %v5411_v33  ;;  %vm7502_vm8 = vcmp.ge.s32.totalorder %v5468_v54, 1  ;;  %v5693_v14 = vadd.s32 80, %v5280_v41  ;;  %v7520_v5 = vmov 0  ;;  %v7536_v60 = vand.u32 7, %v5471_v50 }
 0x305   :  { %v5461_v43 = vld [vmem:[#allocation2 + $0x19] sm:$0xff]  ;;  %v5463_v61 = vld [vmem:[#allocation2 + $0x21] sm:$0xff]  ;;  %7465 = vst [vmem:[#allocation31_spill] sm:$0xff] %v5466_v26 }
 0x306   :  { %7466 = vst [vmem:[#allocation32_spill] sm:$0xff] %v5475_v22  ;;  %v1687_v17 = vsel %vm5427_vm9, %v5461_v43, 0.0  ;;  %v1688_v38 = vsel %vm5446_vm11, %v5463_v61, 0.0  ;;  %v5498_v53 = vld [vmem:[#allocation2 + $0x1f] sm:$0xff]  ;;  %v1492_v36 = vsel %vm5370_vm13, %v5461_v43, 0.0  ;;  %vm5559_vm9 = vcmp.le.s32.totalorder %v1092_v57, 6  ;;  %vm5574_vm13 = vmand %vm7252_vm5, %vm5525_vm15 }
 0x307   :  { %7469 = vst [vmem:[#allocation33_spill] sm:$0xff] %v5495_v31  ;;  %v2269_v29 = vpack.c.bf16 %v1688_v38, %v1687_v17  ;;  %v1573_v0 = vsel %vm5504_vm14, %v5498_v53, 0.0  ;;  %vm7253_vm11 = vcmp.ge.s32.totalorder %v5523_v8, 1  ;;  %v1110_v17 = vshra.s32 %v5510_v63, 3  ;;  %v1251_v38 = vld [vmem:[#allocation2 + $0x18] sm:$0xff]  ;;  %v1252_v15 = vld [vmem:[#allocation2 + $0x20] sm:$0xff] }
 0x308   :  { %7470 = vst [vmem:[#allocation34_spill] sm:$0xff] %v5498_v53  ;;  %v3670_v23 = vpack.i.bf16 %v1573_v0, %v1572_v35  ;;  %v3665_v11 = vpack.i.bf16 %v1492_v36, %v1491_v34  ;;  %vm5591_vm14 = vcmp.ge.s32.totalorder %v1091_v13, 1  ;;  %v1113_v35 = vshra.s32 %v5544_v18, 3  ;;  %vm5601_vm0 = vmand %vm7253_vm11, %vm5559_vm9  ;;  %v5957_v13 = vld [vmem:[#allocation2 + $0x38] sm:$0xff] }
 0x309   :  { %7473 = vst [vmem:[#allocation35_spill] sm:$0xff] %v5514_v42  ;;  %3519 = vmatmul.msk.bf16.vlgmr.msra.gmra.mxu3 %vm7251_vm2, %v2269_v29  ;;  %v5581_v29 = vadd.s32 56, %v5280_v41  ;;  %vm5617_vm5 = vcmp.ge.s32.totalorder %v7254_v2, 1  ;;  %v1114_v34 = vshra.s32 %v5555_v44, 3  ;;  %vm5627_vm11 = vmand %vm7262_vm3, %vm5559_vm9  ;;  %v1622_v36 = vsel %vm1508_vm1, %v1251_v38, 0.0  ;;  %v6058_v33 = vld [vmem:[#allocation2 + $0x51] sm:$0xff] }
 0x30a   :  { %1069 = vst.msk [vmem:[#allocation2 + $0x78] sm:$0xff] %vm7251_vm2, %v5475_v22  ;;  %3661 = vrot.lane.b32.xlu1 %v3660_v9, %s4195_s17  ;;  %3666 = vrot.lane.b32.xlu2 %v3665_v11, %s4196_s18  ;;  %v5635_v6 = vand.u32 7, %v1110_v17  ;;  %v1111_v2 = vshra.s32 %v5566_v40, 3  ;;  %v5640_v11 = vld [vmem:[#allocation2 + $0x31] sm:$0xff]  ;;  %vm7494_vm1 = vcmp.ge.s32.totalorder %v5468_v54, 1  ;;  %v1395_v17 = vsel %vm5587_vm7, %v5461_v43, 0.0 }
 0x30b   :  { %1070 = vst.msk [vmem:[#allocation2 + $0x80] sm:$0xff] %vm7251_vm2, %v5495_v31  ;;  %3671 = vrot.lane.b32.xlu0 %v3670_v23, %s4190_s30  ;;  %v1623_v23 = vsel %vm1509_vm6, %v1252_v15, 0.0  ;;  %v1112_v16 = vshra.s32 %v5581_v29, 3  ;;  %vm5650_vm6 = vmand %vm7494_vm1, %vm5591_vm14  ;;  %v1396_v39 = vsel %vm5601_vm0, %v5463_v61, 0.0  ;;  %v5661_v59 = vand.u32 7, %v1113_v35 }
 0x30c   :  { %1071 = vst.msk [vmem:[#allocation2 + $0x88] sm:$0xff] %vm7251_vm2, %v5514_v42  ;;  %vm5611_vm2 = vcmp.ge.s32.totalorder %v7255_v58, 1  ;;  %v5638_v58 = vld [vmem:[#allocation2 + $0x29] sm:$0xff]  ;;  %v7496_v52 = vsel %vm5650_vm6, 4294967295, %v7495_v52  ;;  %vm7498_vm3 = vcmp.ge.s32.totalorder %v5523_v8, 1  ;;  %v3675_v49 = vpack.i.bf16 %v1623_v23, %v1622_v36 }
 0x30d   :  { %7497 = vst [vmem:[#allocation36_spill] sm:$0xff] %v7496_v52  ;;  %vm5667_vm1 = vmand %vm7498_vm3, %vm5605_vm4  ;;  %v1299_v43 = vsel %vm7502_vm8, %v1251_v38, 0.0  ;;  %v5675_v10 = vand.u32 7, %v1114_v34  ;;  %v1689_v35 = vsel %vm5574_vm13, %v5638_v58, 0.0  ;;  %v1690_v47 = vsel %vm5627_vm11, %v5640_v11, 0.0  ;;  %v5687_v36 = vld [vmem:[#allocation2 + $0x27] sm:$0xff] }
 0x30e   :  { %v7500_v3 = vsel %vm5667_vm1, 4294967295, %v7499_v3  ;;  %vm7503_vm7 = vmmov %vm7498_vm3  ;;  %v5684_v55 = vand.u32 7, %v1111_v2  ;;  %v3685_v38 = vpack.i.bf16 %v1396_v39, %v1395_v17  ;;  %v5690_v34 = vand.u32 7, %v1112_v16 }
 0x30f   :  { %7501 = vst [vmem:[#allocation37_spill] sm:$0xff] %v7500_v3  ;;  %v1300_v48 = vsel %vm7503_vm7, %v1252_v15, 0.0  ;;  %v7270_v15 = vand.u32 7, %v5581_v29  ;;  %vm7504_vm8 = vcmp.le.s32.totalorder %v5468_v54, 6  ;;  %v7508_v39 = vmov 0 }
 0x310   :  { %v3680_v23 = vpack.i.bf16 %v1300_v48, %v1299_v43  ;;  %vm5699_vm11 = vmand %vm7504_vm8, %vm5591_vm14  ;;  %v2271_v16 = vpack.c.bf16 %v1690_v47, %v1689_v35  ;;  %v7510_v57 = vand.u32 7, %v5555_v44  ;;  %v7511_v17 = vmov 0  ;;  %v1253_v35 = vld [vmem:[#allocation2 + $0x28] sm:$0xff] }
 0x311   :  { %vm7513_vm8 = vcmp.ge.s32.totalorder %v5578_v37, 1  ;;  %v7514_v43 = vmov 0  ;;  %v1444_v47 = vsel %vm5591_vm14, %v5498_v53, 0.0  ;;  %v1445_v48 = vsel %vm5605_vm4, %v5687_v36, 0.0  ;;  %v6133_v52 = vld [vmem:[#allocation2 + $0x77] sm:$0xff] }
 0x312   :  { %3676 = vrot.lane.b32.xlu1 %v3675_v49, %s4197_s1  ;;  %v7507_v49 = vand.u32 7, %v5544_v18  ;;  %vm5714_vm0 = vcmp.ge.s32.totalorder %v7510_v57, 1  ;;  %vm5722_vm3 = vmand %vm7513_vm8, %vm5611_vm2  ;;  %3681 = vrot.lane.b32.xlu2 %v3680_v23, %s4194_s16  ;;  %v7517_v57 = vmov 0  ;;  %vm7519_vm10 = vcmp.ge.s32.totalorder %v5635_v6, 1  ;;  %v6135_v3 = vld [vmem:[#allocation2 + $0x7f] sm:$0xff] }
 0x313   :  { %3686 = vrot.lane.b32.xlu0 %v3685_v38, %s4193_s15  ;;  %v7512_v17 = vsel %vm5714_vm0, 4294967295, %v7511_v17  ;;  %v7515_v43 = vsel %vm5722_vm3, 4294967295, %v7514_v43  ;;  %v1254_v38 = vld [vmem:[#allocation2 + $0x30] sm:$0xff]  ;;  %vm5744_vm12 = vmand %vm7519_vm10, %vm5617_vm5  ;;  %vm7522_vm14 = vcmask 130048   ;;  %vm5752_vm7 = vcmp.ge.s32.totalorder %v7270_v15, 1 }
 0x314   :  { %vm5706_vm13 = vcmp.ge.s32.totalorder %v7507_v49, 1  ;;  %v7516_v49 = vand.u32 7, %v5566_v40  ;;  %v7521_v5 = vsel %vm5744_vm12, 4294967295, %v7520_v5  ;;  %v7523_v23 = vmov 0 }
 0x315   :  { %v7509_v39 = vsel %vm5706_vm13, 4294967295, %v7508_v39  ;;  %v7524_v23 = vsel %vm5752_vm7, 4294967295, %v7523_v23  ;;  %vm7525_vm6 = vcmp.ge.s32.totalorder %v5661_v59, 1  ;;  %v1494_v15 = vsel %vm5559_vm9, %v5638_v58, 0.0 }
 0x316   :  { %vm5736_vm8 = vcmp.ge.s32.totalorder %v7516_v49, 1  ;;  %v1115_v49 = vshra.s32 %v5693_v14, 3  ;;  %vm5761_vm10 = vmand %vm7525_vm6, %vm5706_vm13  ;;  %v3690_v1 = vpack.i.bf16 %v1445_v48, %v1444_v47  ;;  %vm7531_vm6 = vcmp.le.s32.totalorder %v5468_v54, 6  ;;  %v5810_v48 = vld [vmem:[#allocation2 + $0x2f] sm:$0xff] }
 0x317   :  { %v7518_v57 = vsel %vm5736_vm8, 4294967295, %v7517_v57  ;;  %v7527_v25 = vsel %vm5761_vm10, 4294967295, %v7526_v25  ;;  %v1624_v24 = vsel %vm7531_vm6, %v1253_v35, 0.0  ;;  %vm7532_vm13 = vcmp.le.s32.totalorder %v5523_v8, 6 }
 0x318   :  { %v1625_v51 = vsel %vm7532_vm13, %v1254_v38, 0.0  ;;  %v5799_v54 = vadd.s32 88, %v5280_v41  ;;  %vm7539_vm13 = vcmp.ge.s32.totalorder %v5690_v34, 1  ;;  %v7540_v47 = vmov 0 }
 0x319   :  { %3520 = vmatmul.msk.bf16.gmra.mxu3 %vm7522_vm14, %v2271_v16  ;;  %v1493_v16 = vsel %vm5525_vm15, %v5463_v61, 0.0  ;;  %vm7528_vm14 = vcmp.ge.s32.totalorder %v5675_v10, 1  ;;  %vm7533_vm15 = vcmp.ge.s32.totalorder %v5684_v55, 1  ;;  %v7534_v61 = vmov 0  ;;  %vm5805_vm6 = vmand %vm7539_vm13, %vm5752_vm7 }
 0x31a   :  { %vm5775_vm3 = vmand %vm7528_vm14, %vm5714_vm0  ;;  %vm5793_vm14 = vcmp.le.s32.totalorder %v7536_v60, 6  ;;  %v7541_v47 = vsel %vm5805_vm6, 4294967295, %v7540_v47  ;;  %3691 = vrot.lane.b32.xlu1 %v3690_v1, %s4195_s17  ;;  %v3695_v50 = vpack.i.bf16 %v1494_v15, %v1493_v16  ;;  %v7290_v32 = vand.u32 7, %v5693_v14  ;;  %v5855_v16 = vld [vmem:[#allocation2 + $0x39] sm:$0xff] }
 0x31b   :  { %v7530_v19 = vsel %vm5775_vm3, 4294967295, %v7529_v19  ;;  %vm5787_vm9 = vmand %vm7533_vm15, %vm5736_vm8  ;;  %vm7542_vm15 = vcmp.le.s32.totalorder %v5523_v8, 6  ;;  %v5821_v21 = vand.u32 7, %v1115_v49  ;;  %v3705_v62 = vpack.i.bf16 %v1625_v51, %v1624_v24  ;;  %v5852_v49 = vld [vmem:[#allocation2 + $0x37] sm:$0xff]  ;;  %v5857_v51 = vld [vmem:[#allocation2 + $0x41] sm:$0xff] }
 0x31c   :  { %v7535_v61 = vsel %vm5787_vm9, 4294967295, %v7534_v61  ;;  %vm5816_vm0 = vmand %vm7542_vm15, %vm5605_vm4  ;;  %v7546_v1 = vand.u32 7, %v5510_v63  ;;  %v7547_v15 = vmov 0  ;;  %vm7288_vm6 = vcmp.le.s32.totalorder %v5635_v6, 6  ;;  %3696 = vrot.lane.b32.xlu0 %v3695_v50, %s4196_s18 }
 0x31d   :  { %v5834_v8 = vadd.s32 104, %v5280_v41  ;;  %3706 = vrot.lane.b32.xlu2 %v3705_v62, %s4197_s1  ;;  %vm7550_vm4 = vcmp.le.s32.totalorder %v5578_v37, 6  ;;  %v1574_v63 = vsel %vm5699_vm11, %v5687_v36, 0.0  ;;  %v1575_v0 = vsel %vm5816_vm0, %v5810_v48, 0.0 }
 0x31e   :  { %vm5828_vm13 = vcmp.le.s32.totalorder %v7546_v1, 6  ;;  %vm5842_vm15 = vmand %vm7550_vm4, %vm5793_vm14  ;;  %v1116_v62 = vshra.s32 %v5799_v54, 3  ;;  %vm5869_vm11 = vcmp.ge.s32.totalorder %v7290_v32, 1  ;;  %v7555_v2 = vmov 0 }
 0x31f   :  { %v7548_v15 = vsel %vm5828_vm13, 4294967295, %v7547_v15  ;;  %7549 = vst [vmem:[#allocation39_spill] sm:$0xff] %v5834_v8  ;;  %vm5863_vm4 = vmand %vm7288_vm6, %vm5828_vm13  ;;  %v7556_v2 = vsel %vm5869_vm11, 4294967295, %v7555_v2  ;;  %v1117_v60 = vshra.s32 %v5824_v56, 3  ;;  %vm7557_vm9 = vcmp.ge.s32.totalorder %v5578_v37, 1 }
 0x320   :  { %v1301_v1 = vsel %vm7557_vm9, %v1253_v35, 0.0  ;;  %vm7558_vm3 = vcmp.ge.s32.totalorder %v5635_v6, 1  ;;  %vm5881_vm6 = vcmp.le.s32.totalorder %v7559_v27, 6  ;;  %v1118_v32 = vshra.s32 %v5834_v8, 3 }
 0x321   :  { %v1302_v46 = vsel %vm7558_vm3, %v1254_v38, 0.0  ;;  %v3700_v28 = vpack.i.bf16 %v1575_v0, %v1574_v63  ;;  %v1446_v4 = vsel %vm5611_vm2, %v5810_v48, 0.0  ;;  %v1447_v35 = vsel %vm5617_vm5, %v5852_v49, 0.0  ;;  %vm7562_vm3 = vmmov %vm7557_vm9  ;;  %v1258_v38 = vld [vmem:[#allocation2 + $0x50] sm:$0xff] }
 0x322   :  { %vm5896_vm9 = vmand %vm7562_vm3, %vm5793_vm14  ;;  %v7565_v40 = vand.u32 7, %v5581_v29  ;;  %v1691_v63 = vsel %vm5842_vm15, %v5855_v16, 0.0  ;;  %v1692_v0 = vsel %vm5863_vm4, %v5857_v51, 0.0  ;;  %v5913_v45 = vand.u32 7, %v1116_v62 }
 0x323   :  { %vm7568_vm3 = vcmp.ge.s32.totalorder %v5821_v21, 1  ;;  %v7569_v29 = vmov 0  ;;  %3701 = vrot.lane.b32.xlu1 %v3700_v28, %s4190_s30  ;;  %v3710_v24 = vpack.i.bf16 %v1302_v46, %v1301_v1  ;;  %vm7571_vm15 = vcmp.ge.s32.totalorder %v5635_v6, 1 }
 0x324   :  { %vm5902_vm0 = vcmp.le.s32.totalorder %v7565_v40, 6  ;;  %vm5919_vm10 = vmand %vm7568_vm3, %vm5869_vm11  ;;  %v7304_v62 = vand.u32 7, %v5824_v56  ;;  %v5934_v40 = vand.u32 7, %v1117_v60  ;;  %v3720_v30 = vpack.i.bf16 %v1447_v35, %v1446_v4  ;;  %v5959_v60 = vld [vmem:[#allocation2 + $0x40] sm:$0xff] }
 0x325   :  { %v7570_v29 = vsel %vm5919_vm10, 4294967295, %v7569_v29  ;;  %vm5928_vm4 = vmand %vm7571_vm15, %vm5828_vm13  ;;  %vm7574_vm3 = vcmp.le.s32.totalorder %v5578_v37, 6  ;;  %vm7303_vm15 = vcmp.le.s32.totalorder %v5690_v34, 6  ;;  %v5946_v1 = vand.u32 7, %v1118_v32  ;;  %3711 = vrot.lane.b32.xlu0 %v3710_v24, %s4194_s16 }
 0x326   :  { %vm5940_vm11 = vmand %vm7574_vm3, %vm5611_vm2  ;;  %v2273_v7 = vpack.c.bf16 %v1692_v0, %v1691_v63  ;;  %vm7577_vm12 = vcmp.le.s32.totalorder %v5635_v6, 6  ;;  %v5962_v35 = vadd.s32 112, %v5280_v41  ;;  %3721 = vrot.lane.b32.xlu2 %v3720_v30, %s4195_s17  ;;  %v1397_v32 = vsel %vm5896_vm9, %v5638_v58, 0.0  ;;  %v5971_v63 = vld [vmem:[#allocation2 + $0x3f] sm:$0xff] }
 0x327   :  { %vm5953_vm10 = vmand %vm7577_vm12, %vm5617_vm5  ;;  %v1398_v9 = vsel %vm5928_vm4, %v5640_v11, 0.0  ;;  %vm7581_vm2 = vcmp.le.s32.totalorder %v5684_v55, 6  ;;  %v7584_v30 = vand.u32 7, %v5799_v54  ;;  %vm7587_vm3 = vcmask 130048  }
 0x328   :  { %7580 = vst [vmem:[#allocation40_spill] sm:$0xff] %v5962_v35  ;;  %vm5977_vm12 = vmand %vm7581_vm2, %vm5881_vm6  ;;  %vm6000_vm7 = vcmp.ge.s32.totalorder %v7304_v62, 1  ;;  %v7590_v27 = vmov 0  ;;  %v6005_v50 = vadd.s32 120, %v5280_v41  ;;  %vm7595_vm2 = vcmp.ge.s32.totalorder %v5684_v55, 1 }
 0x329   :  { %vm5983_vm5 = vcmp.ge.s32.totalorder %v7584_v30, 1  ;;  %3521 = vmatmul.msk.bf16.gmra.mxu3 %vm7587_vm3, %v2273_v7  ;;  %vm5993_vm4 = vmand %vm7303_vm15, %vm5902_vm0  ;;  %v7591_v27 = vsel %vm6000_vm7, 4294967295, %v7590_v27  ;;  %v1119_v7 = vshra.s32 %v5962_v35, 3  ;;  %vm7593_vm3 = vcmp.le.s32.totalorder %v5578_v37, 6 }
 0x32a   :  { %7592 = vst [vmem:[#allocation41_spill] sm:$0xff] %v6005_v50  ;;  %v1626_v30 = vsel %vm7593_vm3, %v5957_v13, 0.0  ;;  %vm7594_vm15 = vcmp.le.s32.totalorder %v5635_v6, 6  ;;  %vm6018_vm9 = vmand %vm7595_vm2, %vm5881_vm6  ;;  %vm7324_vm8 = vcmp.ge.s32.totalorder %v5946_v1, 1  ;;  %v7598_v41 = vand.u32 7, %v5834_v8 }
 0x32b   :  { %v1627_v28 = vsel %vm7594_vm15, %v5959_v60, 0.0  ;;  %v7599_v42 = vmov 0  ;;  %v3715_v37 = vpack.i.bf16 %v1398_v9, %v1397_v32  ;;  %v1576_v6 = vsel %vm5940_vm11, %v5852_v49, 0.0  ;;  %v6056_v9 = vld [vmem:[#allocation2 + $0x49] sm:$0xff] }
 0x32c   :  { %vm6025_vm13 = vcmp.ge.s32.totalorder %v7598_v41, 1  ;;  %v1577_v31 = vsel %vm5953_vm10, %v5971_v63, 0.0  ;;  %v1120_v22 = vshra.s32 %v6005_v50, 3  ;;  %vm7601_vm15 = vcmp.ge.s32.totalorder %v5913_v45, 1  ;;  %v6086_v32 = vld [vmem:[#allocation2 + $0x47] sm:$0xff] }
 0x32d   :  { %v7600_v42 = vsel %vm6025_vm13, 4294967295, %v7599_v42  ;;  %vm6040_vm2 = vmand %vm7601_vm15, %vm5983_vm5  ;;  %vm7604_vm11 = vcmp.ge.s32.totalorder %v5934_v40, 1  ;;  %v7605_v46 = vmov 0  ;;  %3716 = vrot.lane.b32.xlu1 %v3715_v37, %s4193_s15  ;;  %v3735_v4 = vpack.i.bf16 %v1627_v28, %v1626_v30 }
 0x32e   :  { %vm6051_vm3 = vmand %vm7604_vm11, %vm6000_vm7  ;;  %v7320_v8 = vand.u32 7, %v5962_v35  ;;  %v6061_v56 = vand.u32 7, %v1119_v7  ;;  %v7608_v53 = vmov 0  ;;  %v3730_v28 = vpack.i.bf16 %v1577_v31, %v1576_v6  ;;  %v6129_v7 = vld [vmem:[#allocation2 + $0x57] sm:$0xff]  ;;  %v6148_v35 = vld [vmem:[#allocation2 + $0x6f] sm:$0xff] }
 0x32f   :  { %v7606_v46 = vsel %vm6051_vm3, 4294967295, %v7605_v46  ;;  %vm6070_vm15 = vmand %vm7324_vm8, %vm6025_vm13  ;;  %vm7610_vm11 = vcmp.ge.s32.totalorder %v5690_v34, 1  ;;  %v6083_v37 = vand.u32 7, %v1120_v22  ;;  %3736 = vrot.lane.b32.xlu0 %v3735_v4, %s4197_s1  ;;  %v1693_v31 = vsel %vm5977_vm12, %v6056_v9, 0.0 }
 0x330   :  { %v7609_v53 = vsel %vm6070_vm15, 4294967295, %v7608_v53  ;;  %vm6078_vm1 = vmand %vm7610_vm11, %vm5902_vm0  ;;  %3731 = vrot.lane.b32.xlu2 %v3730_v28, %s4190_s30  ;;  %v1694_v6 = vsel %vm5993_vm4, %v6058_v33, 0.0  ;;  %v1495_v30 = vsel %vm5793_vm14, %v5640_v11, 0.0  ;;  %vm7613_vm11 = vnez %v7548_v15  ;;  %v6127_v28 = vld [vmem:[#allocation2 + $0x4f] sm:$0xff] }
 0x331   :  { %v1496_v22 = vsel %vm7613_vm11, %v5855_v16, 0.0  ;;  %v1399_v4 = vsel %vm6018_vm9, %v5855_v16, 0.0  ;;  %v1400_v0 = vsel %vm6078_vm1, %v5857_v51, 0.0  ;;  %vm7327_vm12 = vcmp.ge.s32.totalorder %v6061_v56, 1 }
 0x332   :  { %vm6110_vm4 = vcmp.ge.s32.totalorder %v7320_v8, 1  ;;  %v7614_v58 = vmov 0  ;;  %vm7616_vm14 = vnez %v7518_v57  ;;  %vm7617_vm11 = vnez %v7524_v23  ;;  %v6131_v8 = vld [vmem:[#allocation2 + $0x5f] sm:$0xff] }
 0x333   :  { %v7615_v58 = vsel %vm6110_vm4, 4294967295, %v7614_v58  ;;  %v1448_v12 = vsel %vm7616_vm14, %v5971_v63, 0.0  ;;  %v1449_v11 = vsel %vm7617_vm11, %v6086_v32, 0.0  ;;  %v7618_v15 = vand.u32 7, %v6005_v50  ;;  %vm6141_vm8 = vmand %vm7327_vm12, %vm6110_vm4  ;;  %v6146_v50 = vld [vmem:[#allocation2 + $0x67] sm:$0xff] }
 0x334   :  { %v7619_v16 = vmov 0  ;;  %v3725_v62 = vpack.i.bf16 %v1496_v22, %v1495_v30  ;;  %v2275_v26 = vpack.c.bf16 %v1694_v6, %v1693_v31  ;;  %v3745_v30 = vpack.i.bf16 %v1400_v0, %v1399_v4 }
 0x335   :  { %vm6123_vm1 = vcmp.ge.s32.totalorder %v7618_v15, 1  ;;  %v7621_v15 = vmov 0  ;;  %v3750_v22 = vpack.i.bf16 %v1449_v11, %v1448_v12  ;;  %vm7624_vm10 = vnez %v7521_v5 }
 0x336   :  { %v7620_v16 = vsel %vm6123_vm1, 4294967295, %v7619_v16  ;;  %v7622_v15 = vsel %vm6141_vm8, 4294967295, %v7621_v15  ;;  %3726 = vrot.lane.b32.xlu1 %v3725_v62, %s4196_s18  ;;  %v1238_v6 = vsel %vm7624_vm10, %v5810_v48, 0.0  ;;  %vm7625_vm12 = vcmp.ge.s32.totalorder %v6083_v37, 1 }
 0x337   :  { %vm6160_vm4 = vmand %vm7625_vm12, %vm6123_vm1  ;;  %v7626_v62 = vmov 0  ;;  %vm7628_vm13 = vcmp.le.s32.totalorder %v5684_v55, 6  ;;  %vm7632_vm10 = vnez %v7530_v19  ;;  %vm7633_vm12 = vnez %v7535_v61  ;;  %3751 = vrot.lane.b32.xlu0 %v3750_v22, %s4195_s17 }
 0x338   :  { %v7627_v62 = vsel %vm6160_vm4, 4294967295, %v7626_v62  ;;  %vm6168_vm7 = vmand %vm7628_vm13, %vm7616_vm14  ;;  %vm7634_vm1 = vnez %v7541_v47  ;;  %vm7635_vm13 = vcmp.le.s32.totalorder %v5690_v34, 6  ;;  %vm7638_vm9 = vnez %v7570_v29  ;;  %3746 = vrot.lane.b32.xlu2 %v3745_v30, %s4193_s15 }
 0x339   :  { %vm6189_vm14 = vmand %vm7635_vm13, %vm7617_vm11  ;;  %vm7639_vm11 = vcmp.ge.s32.totalorder %v5684_v55, 1  ;;  %vm7640_vm13 = vcmp.ge.s32.totalorder %v5690_v34, 1  ;;  %vm7641_vm8 = vcmask 130048   ;;  %v1578_v30 = vsel %vm6168_vm7, %v6086_v32, 0.0 }
 0x33a   :  { %v1303_v57 = vsel %vm7639_vm11, %v5957_v13, 0.0  ;;  %v1304_v12 = vsel %vm7640_vm13, %v5959_v60, 0.0  ;;  %3522 = vmatmul.msk.bf16.gmra.mxu3 %vm7641_vm8, %v2275_v26  ;;  %v1579_v13 = vsel %vm6189_vm14, %v6127_v28, 0.0  ;;  %v1497_v60 = vsel %vm5881_vm6, %v5857_v51, 0.0  ;;  %v1257_v51 = vld [vmem:[#allocation2 + $0x48] sm:$0xff] }
 0x33b   :  { %v3740_v23 = vpack.i.bf16 %v1304_v12, %v1303_v57  ;;  %v1498_v11 = vsel %vm5902_vm0, %v6056_v9, 0.0  ;;  %v7642_v22 = vand.u32 7, %v5544_v18  ;;  %v7645_v4 = vand.u32 7, %v5555_v44  ;;  %v1259_v44 = vld [vmem:[#allocation2 + $0x58] sm:$0xff] }
 0x33c   :  { %v3760_v20 = vpack.i.bf16 %v1579_v13, %v1578_v30  ;;  %v3755_v12 = vpack.i.bf16 %v1498_v11, %v1497_v60  ;;  %vm7648_vm14 = vcmp.ge.s32.totalorder %v5661_v59, 1  ;;  %vm7651_vm13 = vcmp.ge.s32.totalorder %v5675_v10, 1  ;;  %v6278_v30 = vld [vmem:[#allocation2 + $0x61] sm:$0xff] }
 0x33d   :  { %vm6233_vm8 = vcmp.le.s32.totalorder %v7642_v22, 6  ;;  %vm6239_vm7 = vcmp.le.s32.totalorder %v7645_v4, 6  ;;  %vm7654_vm0 = vcmp.le.s32.totalorder %v5661_v59, 6  ;;  %vm7657_vm4 = vcmp.le.s32.totalorder %v5684_v55, 6  ;;  %v1260_v11 = vld [vmem:[#allocation2 + $0x60] sm:$0xff] }
 0x33e   :  { %3741 = vrot.lane.b32.xlu1 %v3740_v23, %s4194_s16  ;;  %vm6250_vm11 = vmand %vm7648_vm14, %vm6233_vm8  ;;  %v1628_v57 = vsel %vm7657_vm4, %v1257_v51, 0.0  ;;  %vm7658_vm3 = vcmp.le.s32.totalorder %v5690_v34, 6  ;;  %v6276_v23 = vld [vmem:[#allocation2 + $0x59] sm:$0xff]  ;;  %vm7661_vm4 = vcmp.ge.s32.totalorder %v5675_v10, 1  ;;  %v7670_v26 = vand.u32 7, %v5693_v14 }
 0x33f   :  { %3761 = vrot.lane.b32.xlu0 %v3760_v20, %s4190_s30  ;;  %vm6259_vm6 = vmand %vm7651_vm13, %vm6239_vm7  ;;  %v1629_v22 = vsel %vm7658_vm3, %v1258_v38, 0.0  ;;  %vm7659_vm13 = vcmp.le.s32.totalorder %v5675_v10, 6  ;;  %v1401_v13 = vsel %vm6250_vm11, %v6056_v9, 0.0  ;;  %vm7660_vm3 = vcmp.ge.s32.totalorder %v5661_v59, 1  ;;  %v3601_v10 = vld [vmem:[%s7244_s5 + $0x30] sm:$0xff] }
 0x340   :  { %3756 = vrot.lane.b32.xlu2 %v3755_v12, %s4196_s18  ;;  %vm6268_vm14 = vmand %vm7654_vm0, %vm6233_vm8  ;;  %v1402_v55 = vsel %vm6259_vm6, %v6058_v33, 0.0  ;;  %v3765_v60 = vpack.i.bf16 %v1629_v22, %v1628_v57  ;;  %v1305_v34 = vsel %vm7660_vm3, %v1257_v51, 0.0  ;;  %v1306_v4 = vsel %vm7661_vm4, %v1258_v38, 0.0 }
 0x341   :  { %vm1648_vm15 = vmand %vm7659_vm13, %vm6239_vm7  ;;  %v1695_v20 = vsel %vm6268_vm14, %v6276_v23, 0.0  ;;  %v3775_v9 = vpack.i.bf16 %v1402_v55, %v1401_v13  ;;  %v3770_v18 = vpack.i.bf16 %v1306_v4, %v1305_v34  ;;  %vm7662_vm6 = vnez %v7509_v39  ;;  %v3602_v39 = vld [vmem:[%s7244_s5 + $0x38] sm:$0xff] }
 0x342   :  { %v1696_v12 = vsel %vm1648_vm15, %v6278_v30, 0.0  ;;  %v1450_v51 = vsel %vm7662_vm6, %v6127_v28, 0.0  ;;  %vm7663_vm0 = vnez %v7512_v17  ;;  %vm7664_vm15 = vcmask 130048   ;;  %vm7666_vm14 = vmmov %vm7659_vm13  ;;  %2383 = vmatpush.bf16.msra.mxu2 %v3602_v39  ;;  %v6421_v39 = vld [vmem:[#allocation2 + $0x68] sm:$0xff] }
 0x343   :  { %v2277_v31 = vpack.c.bf16 %v1696_v12, %v1695_v20  ;;  %v1451_v38 = vsel %vm7663_vm0, %v6129_v7, 0.0  ;;  %v1499_v57 = vsel %vm6233_vm8, %v6058_v33, 0.0  ;;  %v1500_v22 = vsel %vm6239_vm7, %v6276_v23, 0.0  ;;  %vm7673_vm4 = vmmov %vm7666_vm14  ;;  %v6371_v12 = vld [vmem:[#allocation2 + $0x69] sm:$0xff] }
 0x344   :  { %v3780_v13 = vpack.i.bf16 %v1451_v38, %v1450_v51  ;;  %vm7665_vm11 = vcmp.le.s32.totalorder %v5661_v59, 6  ;;  %v3785_v33 = vpack.i.bf16 %v1500_v22, %v1499_v57  ;;  %vm6329_vm8 = vcmp.le.s32.totalorder %v7670_v26, 6  ;;  %v3600_v17 = vld [vmem:[%s7244_s5 + $0x28] sm:$0xff] }
 0x345   :  { %v1630_v55 = vsel %vm7665_vm11, %v1259_v44, 0.0  ;;  %vm7667_vm13 = vmmov %vm7665_vm11  ;;  %vm1518_vm7 = vcmp.le.s32.totalorder %v5821_v21, 6  ;;  %v7676_v14 = vand.u32 7, %v5799_v54  ;;  %vm7340_vm11 = vcmp.le.s32.totalorder %v5913_v45, 6 }
 0x346   :  { %3766 = vrot.lane.b32.xlu1 %v3765_v60, %s4197_s1  ;;  %v1631_v60 = vsel %vm7666_vm14, %v1260_v11, 0.0  ;;  %vm6322_vm3 = vmand %vm7667_vm13, %vm7662_vm6  ;;  %vm7681_vm13 = vcmp.ge.s32.totalorder %v5821_v21, 1  ;;  %2384 = vmatpush.bf16.msra.mxu2 %v3601_v10  ;;  %v1501_v59 = vsel %vm6329_vm8, %v6278_v30, 0.0  ;;  %v1327_v10 = vld [vmem:[#allocation2 + $0x79] sm:$0xff] }
 0x347   :  { %3776 = vrot.lane.b32.xlu0 %v3775_v9, %s4193_s15  ;;  %v3795_v34 = vpack.i.bf16 %v1631_v60, %v1630_v55  ;;  %vm6347_vm6 = vcmp.le.s32.totalorder %v7676_v14, 6  ;;  %v1580_v54 = vsel %vm6322_vm3, %v6129_v7, 0.0  ;;  %v6373_v9 = vld [vmem:[#allocation2 + $0x71] sm:$0xff]  ;;  %v1307_v51 = vsel %vm7681_vm13, %v1259_v44, 0.0 }
 0x348   :  { %3771 = vrot.lane.b32.xlu2 %v3770_v18, %s4194_s16  ;;  %vm1650_vm14 = vmand %vm7340_vm11, %vm6347_vm6  ;;  %v6379_v18 = vpop.permute.xlu2 %3621  ;;  %vm7682_vm3 = vcmp.ge.s32.totalorder %v5913_v45, 1 }
 0x349   :  { %v1308_v38 = vsel %vm7682_vm3, %v1260_v11, 0.0  ;;  %v1698_v60 = vsel %vm1650_vm14, %v6373_v9, 0.0  ;;  %vm6408_vm11 = vmand %vm7682_vm3, %vm6347_vm6  ;;  %vm7691_vm14 = vcmp.le.s32.totalorder %v5913_v45, 6  ;;  %v3599_v45 = vld [vmem:[%s7244_s5 + $0x20] sm:$0xff]  ;;  %vm7341_vm3 = vcmp.le.s32.totalorder %v5946_v1, 6 }
 0x34a   :  { %3523 = vmatmul.msk.bf16.gmra.mxu3 %vm7664_vm15, %v2277_v31  ;;  %vm6338_vm15 = vmand %vm7673_vm4, %vm7663_vm0  ;;  %vm7683_vm4 = vnez %v7556_v2  ;;  %v3800_v11 = vpack.i.bf16 %v1308_v38, %v1307_v51  ;;  %v1404_v2 = vsel %vm6408_vm11, %v6278_v30, 0.0  ;;  %2385 = vmatpush.bf16.msra.mxu2 %v3600_v17  ;;  %v6511_v17 = vld [vmem:[#allocation2 + $0x81] sm:$0xff] }
 0x34b   :  { %vm6361_vm0 = vmand %vm1518_vm7, %vm6329_vm8  ;;  %v1581_v20 = vsel %vm6338_vm15, %v6131_v8, 0.0  ;;  %v1452_v22 = vsel %vm7683_vm4, %v6131_v8, 0.0 }
 0x34c   :  { %v3790_v57 = vpack.i.bf16 %v1581_v20, %v1580_v54  ;;  %v1697_v55 = vsel %vm6361_vm0, %v6371_v12, 0.0  ;;  %vm7684_vm15 = vmmov %vm7681_vm13  ;;  %v7696_v20 = vld [vmem:[#allocation38_spill] sm:$0xff] }
 0x34d   :  { %vm6399_vm13 = vmand %vm7684_vm15, %vm6329_vm8  ;;  %v2279_v26 = vpack.c.bf16 %v1698_v60, %v1697_v55  ;;  %vm7694_vm15 = vcmask 130048   ;;  %v7697_v51 = vand.u32 7, %v7696_v20  ;;  %v7700_v55 = vld [vmem:[#allocation39_spill] sm:$0xff] }
 0x34e   :  { %3781 = vrot.lane.b32.xlu1 %v3780_v13, %s4195_s17  ;;  %v1453_v13 = vsel %vm5983_vm5, %v6146_v50, 0.0  ;;  %vm6417_vm0 = vmand %vm1518_vm7, %vm7683_vm4  ;;  %v1403_v14 = vsel %vm6399_vm13, %v6276_v23, 0.0  ;;  %v1632_v23 = vsel %vm1518_vm7, %v6421_v39, 0.0  ;;  %vm1520_vm7 = vcmp.le.s32.totalorder %v5934_v40, 6  ;;  %2386 = vmatpush.bf16.msra.mxu2 %v3599_v45 }
 0x34f   :  { %3786 = vrot.lane.b32.xlu0 %v3785_v33, %s4196_s18  ;;  %v3810_v33 = vpack.i.bf16 %v1453_v13, %v1452_v22  ;;  %vm6436_vm4 = vmand %vm7691_vm14, %vm5983_vm5  ;;  %vm6454_vm5 = vcmp.le.s32.totalorder %v7697_v51, 6  ;;  %v1582_v22 = vsel %vm6417_vm0, %v6146_v50, 0.0  ;;  %v7701_v60 = vand.u32 7, %v7700_v55 }
 0x350   :  { %3796 = vrot.lane.b32.xlu2 %v3795_v34, %s4197_s1  ;;  %v6423_v34 = vld [vmem:[#allocation2 + $0x70] sm:$0xff]  ;;  %v6444_v54 = vpop.permute.xlu2 %3626  ;;  %vm7695_vm11 = vmmov %vm7691_vm14  ;;  %v1583_v21 = vsel %vm6436_vm4, %v6148_v35, 0.0  ;;  %vm7706_vm14 = vcmp.ge.s32.totalorder %v5934_v40, 1 }
 0x351   :  { %v1633_v24 = vsel %vm7695_vm11, %v6423_v34, 0.0  ;;  %vm6471_vm13 = vcmp.le.s32.totalorder %v7701_v60, 6  ;;  %vm6480_vm0 = vmand %vm1520_vm7, %vm6454_vm5  ;;  %v1458_v60 = vld [vmem:[#allocation2 + $0x89] sm:$0xff] }
 0x352   :  { %v3830_v13 = vpack.i.bf16 %v1633_v24, %v1632_v23  ;;  %vm6489_vm4 = vmand %vm7706_vm14, %vm6454_vm5  ;;  %vm7715_vm14 = vnez %v7600_v42  ;;  %v1504_v30 = vsel %vm6471_vm13, %v1327_v10, 0.0 }
 0x353   :  { %vm6517_vm8 = vmand %vm7341_vm3, %vm6471_vm13  ;;  %v1455_v23 = vsel %vm7715_vm14, %v6133_v52, 0.0  ;;  %v1405_v20 = vsel %vm6489_vm4, %v6371_v12, 0.0 }
 0x356   :  { %3791 = vrot.lane.b32.xlu1 %v3790_v57, %s4190_s30  ;;  %v3805_v57 = vpack.i.bf16 %v1404_v2, %v1403_v14  ;;  %v1502_v14 = vsel %vm6347_vm6, %v6371_v12, 0.0  ;;  %vm7714_vm6 = vnez %v7591_v27  ;;  %v3596_v27 = vld [vmem:[%s7244_s5 + $0x8] sm:$0xff]  ;;  %v1503_v2 = vsel %vm6454_vm5, %v6373_v9, 0.0 }
 0x357   :  { %3801 = vrot.lane.b32.xlu0 %v3800_v11, %s4194_s16  ;;  %v3825_v11 = vpack.i.bf16 %v1583_v21, %v1582_v22  ;;  %v1454_v4 = vsel %vm7714_vm6, %v6148_v35, 0.0  ;;  %v3815_v24 = vpack.i.bf16 %v1502_v14, %v1501_v59  ;;  %v1699_v22 = vsel %vm6480_vm0, %v1327_v10, 0.0  ;;  %vm6548_vm4 = vmand %vm1520_vm7, %vm7714_vm6  ;;  %v7722_v59 = vld [vmem:[#allocation32_spill] sm:$0xff] }
 0x358   :  { %3811 = vrot.lane.b32.xlu2 %v3810_v33, %s4195_s17  ;;  %v6521_v0 = vpop.permute.xlu2 %3641  ;;  %v1700_v21 = vsel %vm6517_vm8, %v6511_v17, 0.0  ;;  %v3845_v45 = vpack.i.bf16 %v1455_v23, %v1454_v4  ;;  %vm6557_vm0 = vmand %vm7341_vm3, %vm7715_vm14  ;;  %v1584_v42 = vsel %vm6548_vm4, %v6133_v52, 0.0  ;;  %v7723_v4 = vld [vmem:[#allocation40_spill] sm:$0xff]  ;;  %vm1522_vm5 = vcmp.le.s32.totalorder %v6061_v56, 6 }
 0x359   :  { %v2281_v55 = vpack.c.bf16 %v1700_v21, %v1699_v22  ;;  %v1585_v33 = vsel %vm6557_vm0, %v6135_v3, 0.0  ;;  %v7724_v23 = vand.u32 7, %v7723_v4  ;;  %v3850_v22 = vpack.i.bf16 %v1504_v30, %v1503_v2  ;;  %v7745_v21 = vld [vmem:[#allocation30_spill] sm:$0xff] }
 0x35a   :  { %3524 = vmatmul.msk.bf16.gmra.mxu3 %vm7694_vm15, %v2279_v26  ;;  %v3598_v26 = vld [vmem:[%s7244_s5 + $0x18] sm:$0xff]  ;;  %vm7709_vm15 = vcmp.ge.s32.totalorder %v5946_v1, 1  ;;  %v3860_v44 = vpack.i.bf16 %v1585_v33, %v1584_v42  ;;  %vm7731_vm6 = vcmp.ge.s32.totalorder %v6061_v56, 1  ;;  %vm7734_vm4 = vcmp.ge.s32.totalorder %v6083_v37, 1 }
 0x35b   :  { %vm6507_vm11 = vmand %vm7709_vm15, %vm6471_vm13  ;;  %2387 = vmatpush.bf16.msra.mxu2 %v3598_v26  ;;  %vm7720_vm15 = vcmask 130048   ;;  %v7721_v26 = vld [vmem:[#allocation28_spill] sm:$0xff]  ;;  %vm1523_vm13 = vcmp.le.s32.totalorder %v6083_v37, 6  ;;  %v3644_v19 = vunpack.i.h.bf16 %v6521_v0 }
 0x35c   :  { %v1406_v51 = vsel %vm6507_vm11, %v6373_v9, 0.0  ;;  %v3820_v14 = vpack.i.bf16 %v7722_v59, %v7721_v26  ;;  %vm6585_vm11 = vcmp.le.s32.totalorder %v7724_v23, 6  ;;  %v3595_v9 = vld [vmem:[%s7244_s5] sm:$0xff]  ;;  %v6599_v38 = vpop.permute.xlu1 %3636 }
 0x35d   :  { %v3840_v12 = vpack.i.bf16 %v1406_v51, %v1405_v20  ;;  %v7727_v20 = vld [vmem:[#allocation41_spill] sm:$0xff]  ;;  %vm6607_vm14 = vmand %vm7731_vm6, %vm6585_vm11  ;;  %vm7739_vm6 = vcmp.ge.s32.totalorder %v5934_v40, 1 }
 0x35e   :  { %3806 = vrot.lane.b32.xlu1 %v3805_v57, %s4193_s15  ;;  %v3597_v57 = vld [vmem:[%s7244_s5 + $0x10] sm:$0xff]  ;;  %v7728_v51 = vand.u32 7, %v7727_v20  ;;  %v1263_v20 = vld [vmem:[#allocation2 + $0x78] sm:$0xff] }
 0x35f   :  { %3831 = vrot.lane.b32.xlu0 %v3830_v13, %s4197_s1  ;;  %2388 = vmatpush.bf16.msra.mxu2 %v3597_v57  ;;  %v1309_v13 = vsel %vm7739_vm6, %v6421_v39, 0.0  ;;  %v1407_v39 = vsel %vm6607_vm14, %v1327_v10, 0.0  ;;  %v1137_v10 = vld [vmem:[#allocation2 + $0x7] sm:$0xff]  ;;  %vm7746_vm14 = vnez %v7745_v21 }
 0x360   :  { %3826 = vrot.lane.b32.xlu2 %v3825_v11, %s4190_s30  ;;  %v6566_v11 = vpop.permute.xlu0 %3631  ;;  %vm6591_vm8 = vcmp.le.s32.totalorder %v7728_v51, 6  ;;  %v1264_v51 = vld [vmem:[#allocation2 + $0x80] sm:$0xff] }
 0x361   :  { %vm6616_vm0 = vmand %vm7734_vm4, %vm6591_vm8  ;;  %vm7740_vm4 = vcmp.ge.s32.totalorder %v5946_v1, 1  ;;  %v1506_v40 = vsel %vm6591_vm8, %v1458_v60, 0.0 }
 0x362   :  { %vm6639_vm3 = vmand %vm1523_vm13, %vm6591_vm8  ;;  %vm7762_vm8 = vnez %v7620_v16  ;;  %v4163_v16 = vld [vmem:[%s7247_s8] ss:$0 sm:$0xff] }
 0x363   :  { %2389 = vmatpush.bf16.msra.mxu2 %v3596_v27  ;;  %v1638_v27 = vld [vmem:[#allocation2 + $0x91] sm:$0xff] }
 0x364   :  { %v6568_v31 = vpop.permute.xlu2 %3666  ;;  %v1702_v4 = vsel %vm6639_vm3, %v1638_v27, 0.0  ;;  %v1634_v27 = vsel %vm1520_vm7, %v1263_v20, 0.0  ;;  %vm7751_vm3 = vcmp.le.s32.totalorder %v5946_v1, 6  ;;  %vm7753_vm7 = vcmp.ge.s32.totalorder %v6061_v56, 1 }
 0x365   :  { %v1635_v42 = vsel %vm7751_vm3, %v1264_v51, 0.0  ;;  %v1311_v1 = vsel %vm7753_vm7, %v1263_v20, 0.0  ;;  %vm7763_vm3 = vcmask 261120  }
 0x366   :  { %3816 = vrot.lane.b32.xlu1 %v3815_v24, %s4196_s18  ;;  %vm7764_vm7 = vmmov %vm7763_vm3 }
 0x367   :  { %3846 = vrot.lane.b32.xlu0 %v3845_v45, %s4195_s17  ;;  %2390 = vmatpush.bf16.msra.mxu2 %v3595_v9  ;;  %v7743_v9 = vld [vmem:[#allocation33_spill] sm:$0xff]  ;;  %v7747_v45 = vld [vmem:[#allocation22_spill] sm:$0xff] }
 0x368   :  { %3841 = vrot.lane.b32.xlu2 %v3840_v12, %s4193_s15  ;;  %v6643_v33 = vpop.permute.xlu0 %3646 }
 0x369   :  { %v3648_v41 = vunpack.i.l.bf16 %v6643_v33 }
 0x36a   :  { %3525 = vmatmul.msk.bf16.gmra.mxu3 %vm7720_vm15, %v2281_v55  ;;  %vm6625_vm15 = vmand %vm1522_vm5, %vm6585_vm11  ;;  %v1310_v55 = vsel %vm7740_vm4, %v6423_v34, 0.0  ;;  %v1408_v34 = vsel %vm6616_vm0, %v6511_v17, 0.0  ;;  %vm7748_vm0 = vcmp.ge.s32.totalorder %v7747_v45, 1  ;;  %vm7754_vm4 = vcmp.ge.s32.totalorder %v6083_v37, 1 }
 0x36b   :  { %v3835_v2 = vpack.i.bf16 %v1310_v55, %v1309_v13  ;;  %v1701_v30 = vsel %vm6625_vm15, %v1458_v60, 0.0  ;;  %v3875_v23 = vpack.i.bf16 %v1408_v34, %v1407_v39  ;;  %vm6663_vm6 = vmand %vm7748_vm0, %vm7746_vm14  ;;  %vm7752_vm15 = vcmask 130048   ;;  %v7756_v13 = vld [vmem:[#allocation14_spill] sm:$0xff] }
 0x36c   :  { %v2283_v12 = vpack.c.bf16 %v1702_v4, %v1701_v30  ;;  %v1233_v39 = vsel %vm6663_vm6, %v1137_v10, 0.0  ;;  %v1312_v21 = vsel %vm7754_vm4, %v1264_v51, 0.0  ;;  %v6687_v10 = vld [vmem:[#allocation2 + $0x87] sm:$0xff]  ;;  %vm7755_vm14 = vmmov %vm7752_vm15  ;;  %vm7757_vm0 = vnez %v7756_v13 }
 0x36d   :  { %vm7760_vm6 = vmmov %vm7755_vm14  ;;  %v1457_v51 = vsel %vm7762_vm8, %v6687_v10, 0.0  ;;  %vm2200_vm4 = vcmask 523264  }
 0x36e   :  { %3821 = vrot.lane.b32.xlu1 %v3820_v14, %s4192_s14  ;;  %v6645_v14 = vpop.permute.xlu2 %3681 }
 0x36f   :  { %3861 = vrot.lane.b32.xlu0 %v3860_v44, %s4190_s30  ;;  %v7744_v44 = vld [vmem:[#allocation35_spill] sm:$0xff] }
 0x370   :  { %3851 = vrot.lane.b32.xlu2 %v3850_v22, %s4196_s18  ;;  %v3855_v22 = vpack.i.bf16 %v7744_v44, %v7743_v9 }
 0x374   :  { %v3657_v55 = vpop.permute.xlu1 %3656 }
 0x375   :  { %v3652_v34 = vpop.permute.xlu0 %3651  ;;  %v3659_v24 = vunpack.i.h.bf16 %v3657_v55  ;;  %v3658_v57 = vunpack.i.l.bf16 %v3657_v55  ;;  %v1589_v55 = vld [vmem:[#allocation2 + $0x90] sm:$0xff] }
 0x376   :  { %3836 = vrot.lane.b32.xlu1 %v3835_v2, %s4194_s16  ;;  %v3654_v30 = vunpack.i.h.bf16 %v3652_v34  ;;  %v3653_v4 = vunpack.i.l.bf16 %v3652_v34 }
 0x377   :  { %3876 = vrot.lane.b32.xlu0 %v3875_v23, %s4193_s15  ;;  %v6676_v2 = vpop.permute.xlu2 %3706  ;;  %v1505_v23 = vsel %vm6585_vm11, %v6511_v17, 0.0  ;;  %vm7761_vm11 = vnez %v7615_v58 }
 0x378   :  { %3856 = vrot.lane.b32.xlu2 %v3855_v22, %s4192_s14  ;;  %v3865_v22 = vpack.i.bf16 %v1635_v42, %v1634_v27  ;;  %v2151_v45 = vsel %vm7755_vm14, %v1233_v39, %v3653_v4  ;;  %v3885_v60 = vpack.i.bf16 %v1506_v40, %v1505_v23  ;;  %v3870_v27 = vpack.i.bf16 %v1312_v21, %v1311_v1  ;;  %v1588_v42 = vld [vmem:[#allocation2 + $0x88] sm:$0xff] }
 0x379   :  { %v1456_v20 = vsel %vm7761_vm11, %v6135_v3, 0.0  ;;  %v2167_v39 = vsel %vm7763_vm3, %v2151_v45, %v3658_v57  ;;  %v3623_v1 = vunpack.i.l.bf16 %v6379_v18  ;;  %v1636_v45 = vsel %vm1522_vm5, %v1588_v42, 0.0  ;;  %vm6733_vm3 = vmand %vm1523_vm13, %vm7762_vm8 }
 0x37a   :  { %3526 = vmatmul.msk.bf16.gmra.mxu3 %vm7752_vm15, %v2283_v12  ;;  %v7758_v12 = vld [vmem:[#allocation29_spill] sm:$0xff]  ;;  %vm2183_vm15 = vcmask 392192   ;;  %v3880_v21 = vpack.i.bf16 %v1457_v51, %v1456_v20  ;;  %vm2217_vm14 = vcmask 654336   ;;  %v3668_v20 = vunpack.i.l.bf16 %v6568_v31 }
 0x37b   :  { %v7759_v34 = vsel %vm7757_vm0, %v7758_v12, 0.0  ;;  %vm2234_vm0 = vcmask 785408  }
 0x37c   :  { %v2152_v17 = vsel %vm7760_vm6, %v7759_v34, %v3654_v30  ;;  %v3662_v4 = vpop.permute.xlu1 %3661  ;;  %vm6724_vm6 = vmand %vm1522_vm5, %vm7761_vm11  ;;  %vm2251_vm5 = vcmask 916480   ;;  %vm7773_vm11 = vcmask 130048  }
 0x37d   :  { %v2168_v30 = vsel %vm7764_vm7, %v2152_v17, %v3659_v24  ;;  %v3664_v23 = vunpack.i.h.bf16 %v3662_v4  ;;  %v3663_v40 = vunpack.i.l.bf16 %v3662_v4  ;;  %v3672_v13 = vpop.permute.xlu0 %3671  ;;  %v1637_v17 = vsel %vm1523_vm13, %v1589_v55, 0.0  ;;  %vm7778_vm7 = vmmov %vm7773_vm11 }
 0x37e   :  { %3866 = vrot.lane.b32.xlu1 %v3865_v22, %s4197_s1  ;;  %v3624_v22 = vunpack.i.h.bf16 %v6379_v18  ;;  %v3669_v18 = vunpack.i.h.bf16 %v6568_v31  ;;  %v3895_v56 = vpack.i.bf16 %v1637_v17, %v1636_v45  ;;  %v7776_v31 = vld [vmem:[#allocation31_spill] sm:$0xff] }
 0x37f   :  { %3886 = vrot.lane.b32.xlu0 %v3885_v60, %s4196_s18  ;;  %v2184_v12 = vsel %vm2183_vm15, %v2167_v39, %v3663_v40  ;;  %v2185_v34 = vsel %vm2183_vm15, %v2168_v30, %v3664_v23  ;;  %v3674_v60 = vunpack.i.h.bf16 %v3672_v13  ;;  %v1507_v39 = vld [vmem:[#allocation2 + $0x8f] sm:$0xff] }
 0x380   :  { %3871 = vrot.lane.b32.xlu2 %v3870_v27, %s4194_s16  ;;  %v2201_v24 = vsel %vm2200_vm4, %v2184_v12, %v3623_v1  ;;  %v2202_v57 = vsel %vm2200_vm4, %v2185_v34, %v3624_v22  ;;  %v3673_v27 = vunpack.i.l.bf16 %v3672_v13  ;;  %v6718_v51 = vpop.permute.xlu2 %3721  ;;  %v1586_v22 = vsel %vm6724_vm6, %v6687_v10, 0.0  ;;  %s3372_s16 = sshll.u32 %s7248_s9, 4  ;;  %s3373_s16 = int_to_ptr.hbm [resolvable:$true] %s3372_s16 }
 0x381   :  { %v2218_v4 = vsel %vm2217_vm14, %v2201_v24, %v3668_v20  ;;  %v2219_v58 = vsel %vm2217_vm14, %v2202_v57, %v3669_v18  ;;  %v1587_v1 = vsel %vm6733_vm3, %v1507_v39, 0.0  ;;  %v3684_v12 = vunpack.i.h.bf16 %v6645_v14  ;;  %v7771_v18 = vld [vmem:[#allocation34_spill] sm:$0xff]  ;;  %v7774_v39 = vld [vmem:[#allocation36_spill] sm:$0xff] }
 0x382   :  { %v2235_v30 = vsel %vm2234_vm0, %v2218_v4, %v3673_v27  ;;  %v2236_v55 = vsel %vm2234_vm0, %v2219_v58, %v3674_v60  ;;  %v3683_v34 = vunpack.i.l.bf16 %v6645_v14  ;;  %v3890_v24 = vpack.i.bf16 %v1587_v1, %v1586_v22  ;;  %v7769_v27 = vld [vmem:[#allocation37_spill] sm:$0xff] }
 0x383   :  { %vm7770_vm13 = vnez %v7769_v27  ;;  %vm7775_vm8 = vnez %v7774_v39  ;;  %vm7780_vm6 = vcmask 261120   ;;  %v3724_v48 = vunpack.i.h.bf16 %v6718_v51 }
 0x384   :  { %v3677_v23 = vpop.permute.xlu1 %3676  ;;  %v7772_v20 = vsel %vm7770_vm13, %v7771_v18, 0.0  ;;  %v7777_v4 = vsel %vm7775_vm8, %v7776_v31, 0.0  ;;  %vm7781_vm3 = vmmov %vm7780_vm6  ;;  %vm7789_vm8 = vnez %v7515_v43  ;;  %v7793_v43 = vld [vmem:[#allocation9_spill] sm:$0xff] }
 0x385   :  { %v3679_v37 = vunpack.i.h.bf16 %v3677_v23  ;;  %v3678_v40 = vunpack.i.l.bf16 %v3677_v23  ;;  %v2154_v42 = vsel %vm7773_vm11, %v7772_v20, %v3684_v12  ;;  %v2153_v14 = vsel %vm7778_vm7, %v7777_v4, %v3683_v34  ;;  %v7784_v20 = vld [vmem:[#allocation7_spill] sm:$0xff]  ;;  %vm7788_vm11 = vmmov %vm7778_vm7 }
 0x386   :  { %3881 = vrot.lane.b32.xlu1 %v3880_v21, %s4195_s17  ;;  %v3687_v21 = vpop.permute.xlu0 %3686  ;;  %v3629_v12 = vunpack.i.h.bf16 %v6444_v54  ;;  %v3628_v34 = vunpack.i.l.bf16 %v6444_v54  ;;  %v7785_v54 = vld [vmem:[#allocation13_spill] sm:$0xff]  ;;  %v3709_v4 = vunpack.i.h.bf16 %v6676_v2  ;;  %vm7795_vm13 = vmmov %vm7778_vm7  ;;  %s4199_s17 = smov 128  }
 0x387   :  { %2356 = vrot.lane.b32.xlu0 %v4163_v16, %s4196_s18  ;;  %v2252_v13 = vsel %vm2251_vm5, %v2235_v30, %v3678_v40  ;;  %v2253_v45 = vsel %vm2251_vm5, %v2236_v55, %v3679_v37  ;;  %v3689_v57 = vunpack.i.h.bf16 %v3687_v21  ;;  %v3688_v60 = vunpack.i.l.bf16 %v3687_v21  ;;  %v7782_v40 = vld [vmem:[#allocation8_spill] sm:$0xff]  ;;  %s4200_s18 = smov 8  }
 0x388   :  { %3896 = vrot.lane.b32.xlu2 %v3895_v56, %s4197_s1  ;;  %v2268_v17 = vpack.c.bf16 %v2253_v45, %v2252_v13  ;;  %v7779_v56 = vld [vmem:[#allocation10_spill] sm:$0xff] }
 0x389   :  { %v2170_v30 = vsel %vm7780_vm6, %v2154_v42, %v3689_v57  ;;  %v2169_v55 = vsel %vm7781_vm3, %v2153_v14, %v3688_v60  ;;  %v3708_v14 = vunpack.i.l.bf16 %v6676_v2  ;;  %vm7792_vm6 = vmmov %vm7781_vm3 }
 0x38a   :  { %2391 = vmatmul.bf16.vlgmr.msra.gmra.mxu2 %v2268_v17  ;;  %v6756_v10 = vpop.permute.xlu2 %3731  ;;  %v7783_v17 = vld [vmem:[#allocation6_spill] sm:$0xff] }
 0x38c   :  { %v3692_v58 = vpop.permute.xlu1 %3691 }
 0x38d   :  { %v3694_v23 = vunpack.i.h.bf16 %v3692_v58  ;;  %v3693_v37 = vunpack.i.l.bf16 %v3692_v58 }
 0x38e   :  { %3891 = vrot.lane.b32.xlu1 %v3890_v24, %s4190_s30  ;;  %v3697_v22 = vpop.permute.xlu0 %3696 }
 0x38f   :  { %2841 = vrot.lane.b32.xlu0 %v7779_v56, %s4197_s1  ;;  %v2187_v1 = vsel %vm2183_vm15, %v2170_v30, %v3694_v23  ;;  %v2186_v21 = vsel %vm2183_vm15, %v2169_v55, %v3693_v37  ;;  %v3699_v13 = vunpack.i.h.bf16 %v3697_v22  ;;  %v3698_v45 = vunpack.i.l.bf16 %v3697_v22 }
 0x390   :  { %2839 = vrot.lane.b32.xlu2 %v7782_v40, %s4197_s1  ;;  %v2203_v24 = vsel %vm2200_vm4, %v2186_v21, %v3628_v34  ;;  %v2204_v57 = vsel %vm2200_vm4, %v2187_v1, %v3629_v12  ;;  %v7786_v1 = vld [vmem:[#allocation12_spill] sm:$0xff] }
 0x391   :  { %v2220_v60 = vsel %vm2217_vm14, %v2203_v24, %v3698_v45  ;;  %v2221_v27 = vsel %vm2217_vm14, %v2204_v57, %v3699_v13  ;;  %v7790_v13 = vsel %vm7789_vm8, %v5687_v36, 0.0  ;;  %vm7798_vm8 = vmmov %vm7781_vm3 }
 0x392   :  { %v6786_v42 = vpop.permute.xlu2 %3746 }
 0x395   :  { %v3702_v18 = vpop.permute.xlu1 %3701 }
 0x396   :  { %2837 = vrot.lane.b32.xlu1 %v7783_v17, %s4197_s1  ;;  %v3704_v39 = vunpack.i.h.bf16 %v3702_v18  ;;  %v3703_v31 = vunpack.i.l.bf16 %v3702_v18  ;;  %v7791_v17 = vld [vmem:[#allocation11_spill] sm:$0xff]  ;;  %v3633_v18 = vunpack.i.l.bf16 %v6566_v11 }
 0x397   :  { %2847 = vrot.lane.b32.xlu0 %v7784_v20, %s4197_s1  ;;  %v3712_v58 = vpop.permute.xlu0 %3711 }
 0x398   :  { %2845 = vrot.lane.b32.xlu2 %v7785_v54, %s4197_s1  ;;  %v2237_v56 = vsel %vm2234_vm0, %v2220_v60, %v3703_v31  ;;  %v2238_v30 = vsel %vm2234_vm0, %v2221_v27, %v3704_v39  ;;  %v3714_v37 = vunpack.i.h.bf16 %v3712_v58  ;;  %v3713_v40 = vunpack.i.l.bf16 %v3712_v58 }
 0x399   :  { %v2254_v55 = vsel %vm2251_vm5, %v2237_v56, %v3708_v14  ;;  %v2255_v23 = vsel %vm2251_vm5, %v2238_v30, %v3709_v4  ;;  %v3634_v27 = vunpack.i.h.bf16 %v6566_v11  ;;  %v3734_v54 = vunpack.i.h.bf16 %v6756_v10 }
 0x39a   :  { %v2270_v22 = vpack.c.bf16 %v2255_v23, %v2254_v55  ;;  %v2156_v2 = vsel %vm7788_vm11, %v1238_v6, %v3714_v37  ;;  %v2155_v45 = vsel %vm7778_vm7, %v7790_v13, %v3713_v40  ;;  %v3757_v57 = vpop.permute.xlu2 %3756  ;;  %v3723_v6 = vunpack.i.l.bf16 %v6718_v51  ;;  %vm7797_vm11 = vmmov %vm7778_vm7 }
 0x39b   :  { %v3733_v4 = vunpack.i.l.bf16 %v6756_v10  ;;  %vm7799_vm7 = vmmov %vm7781_vm3 }
 0x39c   :  { %2396 = vmatmul.bf16.gmra.mxu2 %v2270_v22 }
 0x39e   :  { %2843 = vrot.lane.b32.xlu1 %v7786_v1, %s4197_s1 }
 0x39f   :  { %v3717_v21 = vpop.permute.xlu1 %3716  ;;  %3011 = vrot.lane.b32.xlu0 %v4163_v16, %s4192_s14 }
 0x3a0   :  { %v3719_v12 = vunpack.i.h.bf16 %v3717_v21  ;;  %v3718_v34 = vunpack.i.l.bf16 %v3717_v21  ;;  %2851 = vrot.lane.b32.xlu2 %v7791_v17, %s4197_s1  ;;  %v3748_v17 = vunpack.i.l.bf16 %v6786_v42 }
 0x3a1   :  { %v3737_v24 = vpop.permute.xlu0 %3736 }
 0x3a2   :  { %v2172_v16 = vsel %vm7792_vm6, %v2156_v2, %v3719_v12  ;;  %v2171_v5 = vsel %vm7781_vm3, %v2155_v45, %v3718_v34  ;;  %v3739_v56 = vunpack.i.h.bf16 %v3737_v24  ;;  %v3738_v30 = vunpack.i.l.bf16 %v3737_v24  ;;  %v3772_v40 = vpop.permute.xlu2 %3771 }
 0x3a3   :  { %v2189_v36 = vsel %vm2183_vm15, %v2172_v16, %v3724_v48  ;;  %v2188_v60 = vsel %vm2183_vm15, %v2171_v5, %v3723_v6  ;;  %v3639_v45 = vunpack.i.h.bf16 %v6599_v38  ;;  %v3638_v12 = vunpack.i.l.bf16 %v6599_v38 }
 0x3a4   :  { %v2205_v51 = vsel %vm2200_vm4, %v2188_v60, %v3633_v18  ;;  %v2206_v14 = vsel %vm2200_vm4, %v2189_v36, %v3634_v27  ;;  %v3749_v34 = vunpack.i.h.bf16 %v6786_v42  ;;  %v7794_v48 = vsel %vm7634_vm1, %v5971_v63, 0.0  ;;  %vm7801_vm1 = vmmov %vm7797_vm11 }
 0x3a5   :  { %v3759_v18 = vunpack.i.h.bf16 %v3757_v57  ;;  %vm7804_vm6 = vmmov %vm7801_vm1 }
 0x3a6   :  { %2849 = vrot.lane.b32.xlu1 %v7793_v43, %s4197_s1  ;;  %v7796_v43 = vsel %vm7633_vm12, %v5852_v49, 0.0  ;;  %vm7802_vm12 = vnez %v7527_v25 }
 0x3a8   :  { %v3727_v20 = vpop.permute.xlu1 %3726 }
 0x3a9   :  { %v3729_v39 = vunpack.i.h.bf16 %v3727_v20  ;;  %v3728_v31 = vunpack.i.l.bf16 %v3727_v20  ;;  %v3752_v58 = vpop.permute.xlu0 %3751  ;;  %v3758_v20 = vunpack.i.l.bf16 %v3757_v57 }
 0x3aa   :  { %v3754_v16 = vunpack.i.h.bf16 %v3752_v58  ;;  %v3753_v5 = vunpack.i.l.bf16 %v3752_v58 }
 0x3ab   :  { %v2222_v55 = vsel %vm2217_vm14, %v2205_v51, %v3728_v31  ;;  %v2223_v23 = vsel %vm2217_vm14, %v2206_v14, %v3729_v39  ;;  %v3797_v31 = vpop.permute.xlu2 %3796 }
 0x3ac   :  { %v2239_v11 = vsel %vm2234_vm0, %v2222_v55, %v3733_v4  ;;  %v2240_v37 = vsel %vm2234_vm0, %v2223_v23, %v3734_v54  ;;  %v3773_v55 = vunpack.i.l.bf16 %v3772_v40 }
 0x3ad   :  { %v2256_v22 = vsel %vm2251_vm5, %v2239_v11, %v3738_v30  ;;  %v2257_v10 = vsel %vm2251_vm5, %v2240_v37, %v3739_v56  ;;  %v3774_v30 = vunpack.i.h.bf16 %v3772_v40 }
 0x3ae   :  { %v2272_v1 = vpack.c.bf16 %v2257_v10, %v2256_v22 }
 0x3b0   :  { %v3742_v21 = vpop.permute.xlu1 %3741  ;;  %2401 = vmatmul.bf16.gmra.mxu2 %v2272_v1  ;;  %v7800_v1 = vsel %vm7632_vm10, %v6127_v28, 0.0  ;;  %v3643_v28 = vunpack.i.l.bf16 %v6521_v0  ;;  %v3798_v0 = vunpack.i.l.bf16 %v3797_v31  ;;  %vm7807_vm10 = vmmov %vm7801_vm1 }
 0x3b1   :  { %v3744_v2 = vunpack.i.h.bf16 %v3742_v21  ;;  %v3743_v13 = vunpack.i.l.bf16 %v3742_v21  ;;  %v3762_v24 = vpop.permute.xlu0 %3761  ;;  %v2160_v21 = vsel %vm7801_vm1, %v7800_v1, %v3774_v30 }
 0x3b2   :  { %v3764_v42 = vunpack.i.h.bf16 %v3762_v24  ;;  %v3763_v27 = vunpack.i.l.bf16 %v3762_v24 }
 0x3b3   :  { %v2158_v6 = vsel %vm7795_vm13, %v7794_v48, %v3744_v2  ;;  %v2157_v36 = vsel %vm7797_vm11, %v7796_v43, %v3743_v13  ;;  %v7803_v2 = vsel %vm7802_vm12, %v6086_v32, 0.0  ;;  %vm7805_vm13 = vmmov %vm7781_vm3 }
 0x3b4   :  { %v2174_v38 = vsel %vm7798_vm8, %v2158_v6, %v3749_v34  ;;  %v2173_v60 = vsel %vm7799_vm7, %v2157_v36, %v3748_v17  ;;  %v2159_v13 = vsel %vm7804_vm6, %v7803_v2, %v3773_v55  ;;  %v3812_v34 = vpop.permute.xlu2 %3811  ;;  %vm7809_vm11 = vmmov %vm7801_vm1 }
 0x3b5   :  { %v2191_v47 = vsel %vm2183_vm15, %v2174_v38, %v3754_v16  ;;  %v2190_v63 = vsel %vm2183_vm15, %v2173_v60, %v3753_v5  ;;  %vm7810_vm8 = vmmov %vm7781_vm3 }
 0x3b6   :  { %v2207_v39 = vsel %vm2200_vm4, %v2190_v63, %v3638_v12  ;;  %v2208_v61 = vsel %vm2200_vm4, %v2191_v47, %v3639_v45  ;;  %vm7814_vm7 = vmmov %vm7801_vm1  ;;  %vm7815_vm1 = vnez %v7606_v46 }
 0x3b7   :  { %v2224_v49 = vsel %vm2217_vm14, %v2207_v39, %v3758_v20  ;;  %v2225_v54 = vsel %vm2217_vm14, %v2208_v61, %v3759_v18  ;;  %v3799_v18 = vunpack.i.h.bf16 %v3797_v31  ;;  %v7808_v31 = vsel %vm7638_vm9, %v6129_v7, 0.0  ;;  %vm7817_vm12 = vmmov %vm7804_vm6 }
 0x3b8   :  { %v3767_v4 = vpop.permute.xlu1 %3766  ;;  %v2241_v51 = vsel %vm2234_vm0, %v2224_v49, %v3763_v27  ;;  %v2242_v14 = vsel %vm2234_vm0, %v2225_v54, %v3764_v42  ;;  %vm7812_vm9 = vnez %v7609_v53 }
 0x3b9   :  { %v3769_v58 = vunpack.i.h.bf16 %v3767_v4  ;;  %v3768_v57 = vunpack.i.l.bf16 %v3767_v4  ;;  %v3777_v56 = vpop.permute.xlu0 %3776 }
 0x3ba   :  { %v3779_v37 = vunpack.i.h.bf16 %v3777_v56  ;;  %v3778_v22 = vunpack.i.l.bf16 %v3777_v56 }
 0x3bb   :  { %v2258_v23 = vsel %vm2251_vm5, %v2241_v51, %v3768_v57  ;;  %v2259_v11 = vsel %vm2251_vm5, %v2242_v14, %v3769_v58  ;;  %v7806_v14 = vsel %vm6040_vm2, %v6131_v8, 0.0  ;;  %vm7811_vm2 = vmmov %vm7781_vm3 }
 0x3bc   :  { %v2274_v10 = vpack.c.bf16 %v2259_v11, %v2258_v23  ;;  %v2176_v40 = vsel %vm7781_vm3, %v2160_v21, %v3779_v37  ;;  %v2175_v45 = vsel %vm7805_vm13, %v2159_v13, %v3778_v22  ;;  %v3827_v47 = vpop.permute.xlu2 %3826  ;;  %v3814_v23 = vunpack.i.h.bf16 %v3812_v34  ;;  %vm7818_vm6 = vmmov %vm7811_vm2 }
 0x3bd   :  { %v3813_v11 = vunpack.i.l.bf16 %v3812_v34  ;;  %v3649_v37 = vunpack.i.h.bf16 %v6643_v33  ;;  %v3828_v34 = vunpack.i.l.bf16 %v3827_v47  ;;  %vm7819_vm3 = vmmov %vm7811_vm2  ;;  %vm7820_vm13 = vnez %v7627_v62 }
 0x3c0   :  { %v3782_v12 = vpop.permute.xlu1 %3781  ;;  %2406 = vmatmul.bf16.gmra.mxu2 %v2274_v10 }
 0x3c1   :  { %v3784_v17 = vunpack.i.h.bf16 %v3782_v12  ;;  %v3783_v24 = vunpack.i.l.bf16 %v3782_v12  ;;  %v3787_v16 = vpop.permute.xlu0 %3786  ;;  %v3829_v12 = vunpack.i.h.bf16 %v3827_v47 }
 0x3c2   :  { %v3789_v5 = vunpack.i.h.bf16 %v3787_v16  ;;  %v3788_v48 = vunpack.i.l.bf16 %v3787_v16 }
 0x3c3   :  { %v2193_v25 = vsel %vm2183_vm15, %v2176_v40, %v3784_v17  ;;  %v2192_v32 = vsel %vm2183_vm15, %v2175_v45, %v3783_v24 }
 0x3c4   :  { %v2209_v6 = vsel %vm2200_vm4, %v2192_v32, %v3643_v28  ;;  %v2210_v43 = vsel %vm2200_vm4, %v2193_v25, %v3644_v19  ;;  %v3842_v10 = vpop.permute.xlu2 %3841 }
 0x3c5   :  { %v2226_v36 = vsel %vm2217_vm14, %v2209_v6, %v3788_v48  ;;  %v2227_v38 = vsel %vm2217_vm14, %v2210_v43, %v3789_v5  ;;  %v3605_v5 = vld [vmem:[%s7246_s7] sm:$0xff]  ;;  %v3843_v47 = vunpack.i.l.bf16 %v3842_v10 }
 0x3c6   :  { %v3604_v48 = vld [vmem:[%s7245_s6] sm:$0xff]  ;;  %2890 = vmatpush.bf16.msrb.mxu1 %v3605_v5  ;;  %s4198_s6 = smov [#allocation3]  }
 0x3c7   :  { %2969 = vmatpush.bf16.msrb.mxu0 %v3604_v48  ;;  %s3370_s7 = sshll.u32 %s4198_s6, 4  ;;  %s3371_s7 = int_to_ptr.vmem [resolvable:$true] %s3370_s7 }
 0x3c8   :  { %v3792_v60 = vpop.permute.xlu1 %3791 }
 0x3c9   :  { %v3794_v42 = vunpack.i.h.bf16 %v3792_v60  ;;  %v3793_v27 = vunpack.i.l.bf16 %v3792_v60  ;;  %v3802_v20 = vpop.permute.xlu0 %3801 }
 0x3ca   :  { %v3804_v61 = vunpack.i.h.bf16 %v3802_v20  ;;  %v3803_v49 = vunpack.i.l.bf16 %v3802_v20  ;;  %v3844_v20 = vunpack.i.h.bf16 %v3842_v10 }
 0x3cb   :  { %v2243_v63 = vsel %vm2234_vm0, %v2226_v36, %v3793_v27  ;;  %v2244_v39 = vsel %vm2234_vm0, %v2227_v38, %v3794_v42 }
 0x3cc   :  { %v2260_v54 = vsel %vm2251_vm5, %v2243_v63, %v3798_v0  ;;  %v2261_v4 = vsel %vm2251_vm5, %v2244_v39, %v3799_v18  ;;  %v2162_v58 = vsel %vm7807_vm10, %v7806_v14, %v3804_v61  ;;  %v2161_v57 = vsel %vm7809_vm11, %v7808_v31, %v3803_v49  ;;  %v3852_v43 = vpop.permute.xlu2 %3851  ;;  %vm7822_vm10 = vmmov %vm7814_vm7 }
 0x3cd   :  { %v2276_v51 = vpack.c.bf16 %v2261_v4, %v2260_v54  ;;  %v7813_v61 = vsel %vm7812_vm9, %v6148_v35, 0.0  ;;  %v7816_v54 = vsel %vm7815_vm1, %v6146_v50, 0.0  ;;  %vm7823_vm11 = vnez %v7622_v15  ;;  %vm7826_vm9 = vmmov %vm7811_vm2 }
 0x3d0   :  { %v3807_v56 = vpop.permute.xlu1 %3806  ;;  %2411 = vmatmul.bf16.gmra.mxu2 %v2276_v51 }
 0x3d1   :  { %v3809_v30 = vunpack.i.h.bf16 %v3807_v56  ;;  %v3808_v55 = vunpack.i.l.bf16 %v3807_v56  ;;  %v3832_v1 = vpop.permute.xlu0 %3831  ;;  %v3853_v56 = vunpack.i.l.bf16 %v3852_v43 }
 0x3d2   :  { %v3834_v33 = vunpack.i.h.bf16 %v3832_v1  ;;  %v3833_v17 = vunpack.i.l.bf16 %v3832_v1 }
 0x3d3   :  { %v2178_v8 = vsel %vm7810_vm8, %v2162_v58, %v3809_v30  ;;  %v2177_v22 = vsel %vm7811_vm2, %v2161_v57, %v3808_v55  ;;  %v3854_v57 = vunpack.i.h.bf16 %v3852_v43  ;;  %vm7825_vm8 = vmmov %vm7814_vm7 }
 0x3d4   :  { %v2195_v29 = vsel %vm2183_vm15, %v2178_v8, %v3814_v23  ;;  %v2194_v7 = vsel %vm2183_vm15, %v2177_v22, %v3813_v11  ;;  %v3857_v42 = vpop.permute.xlu2 %3856 }
 0x3d5   :  { %v2211_v21 = vsel %vm2200_vm4, %v2194_v7, %v3648_v41  ;;  %v2212_v2 = vsel %vm2200_vm4, %v2195_v29, %v3649_v37  ;;  %v3858_v62 = vunpack.i.l.bf16 %v3857_v42 }
 0x3d8   :  { %v3817_v13 = vpop.permute.xlu1 %3816 }
 0x3d9   :  { %v3819_v40 = vunpack.i.h.bf16 %v3817_v13  ;;  %v3818_v45 = vunpack.i.l.bf16 %v3817_v13  ;;  %v3847_v36 = vpop.permute.xlu0 %3846 }
 0x3da   :  { %v3849_v63 = vunpack.i.h.bf16 %v3847_v36  ;;  %v3848_v39 = vunpack.i.l.bf16 %v3847_v36 }
 0x3db   :  { %v2228_v24 = vsel %vm2217_vm14, %v2211_v21, %v3818_v45  ;;  %v2229_v19 = vsel %vm2217_vm14, %v2212_v2, %v3819_v40 }
 0x3dc   :  { %v2245_v28 = vsel %vm2234_vm0, %v2228_v24, %v3828_v34  ;;  %v2246_v16 = vsel %vm2234_vm0, %v2229_v19, %v3829_v12  ;;  %v3872_v7 = vpop.permute.xlu2 %3871  ;;  %v7821_v24 = vsel %vm7820_vm13, %v6135_v3, 0.0  ;;  %v2441_v3 = vpop.f32.mrf.mxu3 }
 0x3dd   :  { %v2262_v25 = vsel %vm2251_vm5, %v2245_v28, %v3833_v17  ;;  %v2263_v32 = vsel %vm2251_vm5, %v2246_v16, %v3834_v33  ;;  %v3874_v13 = vunpack.i.h.bf16 %v3872_v7  ;;  %v3873_v40 = vunpack.i.l.bf16 %v3872_v7 }
 0x3de   :  { %v2278_v6 = vpack.c.bf16 %v2263_v32, %v2262_v25  ;;  %v7824_v28 = vsel %vm7823_vm11, %v6133_v52, 0.0 }
 0x3df   :  { %v2166_v19 = vsel %vm7822_vm10, %v7821_v24, %v3874_v13  ;;  %v2165_v16 = vsel %vm7825_vm8, %v7824_v28, %v3873_v40 }
 0x3e0   :  { %v3822_v38 = vpop.permute.xlu1 %3821  ;;  %2416 = vmatmul.bf16.gmra.mxu2 %v2278_v6  ;;  %v3859_v6 = vunpack.i.h.bf16 %v3857_v42 }
 0x3e1   :  { %v3862_v27 = vpop.permute.xlu0 %3861  ;;  %v3824_v51 = vunpack.i.h.bf16 %v3822_v38  ;;  %v3823_v14 = vunpack.i.l.bf16 %v3822_v38 }
 0x3e2   :  { %v3864_v23 = vunpack.i.h.bf16 %v3862_v27  ;;  %v3863_v11 = vunpack.i.l.bf16 %v3862_v27 }
 0x3e4   :  { %v3897_v36 = vpop.permute.xlu2 %3896 }
 0x3e8   :  { %v3837_v60 = vpop.permute.xlu1 %3836 }
 0x3e9   :  { %v3839_v18 = vunpack.i.h.bf16 %v3837_v60  ;;  %v3838_v0 = vunpack.i.l.bf16 %v3837_v60  ;;  %v3877_v10 = vpop.permute.xlu0 %3876 }
 0x3ea   :  { %v3879_v45 = vunpack.i.h.bf16 %v3877_v10  ;;  %v3878_v12 = vunpack.i.l.bf16 %v3877_v10 }
 0x3eb   :  { %v2164_v49 = vsel %vm7814_vm7, %v7813_v61, %v3839_v18  ;;  %v2163_v4 = vsel %vm7817_vm12, %v7816_v54, %v3838_v0 }
 0x3ec   :  { %v2180_v58 = vsel %vm7818_vm6, %v2164_v49, %v3844_v20  ;;  %v2179_v31 = vsel %vm7819_vm3, %v2163_v4, %v3843_v47  ;;  %v2182_v25 = vsel %vm7811_vm2, %v2166_v19, %v3879_v45  ;;  %v2181_v32 = vsel %vm7826_vm9, %v2165_v16, %v3878_v12 }
 0x3ed   :  { %v2197_v53 = vsel %vm2183_vm15, %v2180_v58, %v3849_v63  ;;  %v2196_v35 = vsel %vm2183_vm15, %v2179_v31, %v3848_v39  ;;  %v3899_v20 = vunpack.i.h.bf16 %v3897_v36  ;;  %v3898_v47 = vunpack.i.l.bf16 %v3897_v36 }
 0x3ee   :  { %v2213_v30 = vsel %vm2200_vm4, %v2196_v35, %v3823_v14  ;;  %v2214_v46 = vsel %vm2200_vm4, %v2197_v53, %v3824_v51  ;;  %v2443_v51 = vpop.f32.mrf.mxu3 }
 0x3ef   :  { %v2230_v50 = vsel %vm2217_vm14, %v2213_v30, %v3853_v56  ;;  %v2231_v55 = vsel %vm2217_vm14, %v2214_v46, %v3854_v57  ;;  %v2840_v30 = vpop.permute.xlu2 %2839 }
 0x3f0   :  { %v3867_v37 = vpop.permute.xlu1 %3866  ;;  %v2247_v22 = vsel %vm2234_vm0, %v2230_v50, %v3863_v11  ;;  %v2248_v29 = vsel %vm2234_vm0, %v2231_v55, %v3864_v23 }
 0x3f1   :  { %v3869_v41 = vunpack.i.h.bf16 %v3867_v37  ;;  %v3868_v8 = vunpack.i.l.bf16 %v3867_v37  ;;  %v3887_v43 = vpop.permute.xlu0 %3886 }
 0x3f2   :  { %v3889_v52 = vunpack.i.h.bf16 %v3887_v43  ;;  %v3888_v60 = vunpack.i.l.bf16 %v3887_v43 }
 0x3f3   :  { %v2264_v1 = vsel %vm2251_vm5, %v2247_v22, %v3868_v8  ;;  %v2265_v21 = vsel %vm2251_vm5, %v2248_v29, %v3869_v41 }
 0x3f4   :  { %v2280_v2 = vpack.c.bf16 %v2265_v21, %v2264_v1 }
 0x3f6   :  { %2421 = vmatmul.bf16.gmra.mxu2 %v2280_v2  ;;  %v2446_v57 = vpop.f32.mrf.mxu3 }
 0x3f8   :  { %v3882_v34 = vpop.permute.xlu1 %3881 }
 0x3f9   :  { %v3884_v33 = vunpack.i.h.bf16 %v3882_v34  ;;  %v3883_v17 = vunpack.i.l.bf16 %v3882_v34  ;;  %v6956_v58 = vpop.permute.xlu0 %2356 }
 0x3fb   :  { %v2199_v5 = vsel %vm2183_vm15, %v2182_v25, %v3884_v33  ;;  %v2198_v48 = vsel %vm2183_vm15, %v2181_v32, %v3883_v17  ;;  %vm7827_vm15 = vmmov %vm7814_vm7 }
 0x3fc   :  { %v2216_v38 = vsel %vm2200_vm4, %v2199_v5, %v3859_v6  ;;  %v2215_v15 = vsel %vm2200_vm4, %v2198_v48, %v3858_v62  ;;  %vm7828_vm4 = vmmov %vm7814_vm7 }
 0x3fd   :  { %v2232_v63 = vsel %vm2217_vm14, %v2215_v15, %v3888_v60  ;;  %v2233_v39 = vsel %vm2217_vm14, %v2216_v38, %v3889_v52  ;;  %vm7829_vm14 = vmmov %vm7828_vm4 }
 0x3fe   :  { %v2448_v55 = vpop.f32.mrf.mxu3  ;;  %vm7830_vm10 = vmmov %vm7828_vm4 }
 0x3ff   :  { %vm7833_vm8 = vmmov %vm7828_vm4 }
 0x400   :  { %v3892_v27 = vpop.permute.xlu1 %3891 }
 0x401   :  { %v3894_v18 = vunpack.i.h.bf16 %v3892_v27  ;;  %v3893_v0 = vunpack.i.l.bf16 %v3892_v27  ;;  %v2842_v13 = vpop.permute.xlu0 %2841 }
 0x403   :  { %v2249_v42 = vsel %vm2234_vm0, %v2232_v63, %v3893_v0  ;;  %v2250_v61 = vsel %vm2234_vm0, %v2233_v39, %v3894_v18 }
 0x404   :  { %v2266_v49 = vsel %vm2251_vm5, %v2249_v42, %v3898_v47  ;;  %v2267_v54 = vsel %vm2251_vm5, %v2250_v61, %v3899_v20 }
 0x405   :  { %v2282_v4 = vpack.c.bf16 %v2267_v54, %v2266_v49 }
 0x406   :  { %v2451_v10 = vpop.f32.mrf.mxu3 }
 0x407   :  { %2426 = vmatmul.bf16.gmra.mxu2 %v2282_v4 }
 0x408   :  { %v2838_v14 = vpop.permute.xlu1 %2837 }
 0x409   :  { %3547 = vmatmul.msk.bf16.vlgmr.msrb.gmra.mxu1 %vm7827_vm15, %v2838_v14 }
 0x40d   :  { %v2392_v31 = vpop.f32.mrf.mxu2 }
 0x40e   :  { %v2393_v56 = vadd.f32 %v2392_v31, %v6956_v58  ;;  %v2453_v32 = vpop.f32.mrf.mxu3 }
 0x410   :  { %v6959_v53 = vadd.f32 %v2441_v3, %v2393_v56  ;;  %v2844_v63 = vpop.permute.xlu1 %2843  ;;  %v7831_v56 = vld [vmem:[#allocation19_spill] sm:$0xff] }
 0x412   :  { %v3527_v35 = vmul.f32 -1.442695, %v6959_v53 }
 0x414   :  { %4035 = vpow2.f32 %v3527_v35 }
 0x415   :  { %v2394_v46 = vpop.f32.mrf.mxu2 }
 0x416   :  { %v2395_v50 = vadd.f32 %v2394_v46, %v6956_v58 }
 0x418   :  { %v6964_v23 = vadd.f32 %v2443_v51, %v2395_v50  ;;  %v2456_v51 = vpop.f32.mrf.mxu3 }
 0x419   :  { %3548 = vmatmul.msk.bf16.gmra.mxu1 %vm7828_vm4, %v2840_v30  ;;  %v7832_v30 = vld [vmem:[#allocation20_spill] sm:$0xff] }
 0x41a   :  { %v4036_v11 = vpop.eup %4035  ;;  %v3528_v37 = vmul.f32 -1.442695, %v6964_v23 }
 0x41b   :  { %v2529_v41 = vadd.f32 1.0, %v4036_v11 }
 0x41c   :  { %4037 = vpow2.f32 %v3528_v37 }
 0x41d   :  { %4039 = vrcp.f32 %v2529_v41  ;;  %v2556_v28 = vand.u32 2147483648, %v2529_v41  ;;  %vm2550_vm5 = vweird.f32 %v2529_v41  ;;  %v2554_v5 = vand.u32 2147483647, %v2529_v41 }
 0x41f   :  { %v2397_v8 = vpop.f32.mrf.mxu2  ;;  %v2557_v3 = vor.u32 1.1754944e-38, %v2556_v28  ;;  %vm2555_vm1 = vcmp.eq.f32.partialorder %v2554_v5, 8.507059e+37 }
 0x420   :  { %v2398_v22 = vadd.f32 %v2397_v8, %v6956_v58 }
 0x422   :  { %v6968_v29 = vadd.f32 %v2446_v57, %v2398_v22  ;;  %v4038_v7 = vpop.eup %4037 }
 0x423   :  { %v4040_v1 = vpop.eup %4039  ;;  %v2530_v21 = vadd.f32 1.0, %v4038_v7 }
 0x424   :  { %v3529_v2 = vmul.f32 -1.442695, %v6968_v29  ;;  %v2546_v40 = vmul.f32 %v4040_v1, %v2529_v41  ;;  %vm2551_vm0 = vweird.f32 %v4040_v1 }
 0x425   :  { %4041 = vrcp.f32 %v2530_v21  ;;  %vm2552_vm7 = vmor %vm2550_vm5, %vm2551_vm0  ;;  %v2569_v36 = vand.u32 2147483647, %v2530_v21  ;;  %v2571_v38 = vand.u32 2147483648, %v2530_v21  ;;  %vm2565_vm6 = vweird.f32 %v2530_v21 }
 0x426   :  { %v2547_v45 = vsub.f32 1.0, %v2546_v40  ;;  %4043 = vpow2.f32 %v3529_v2 }
 0x427   :  { %v2399_v12 = vpop.f32.mrf.mxu2  ;;  %vm2570_vm13 = vcmp.eq.f32.partialorder %v2569_v36, 8.507059e+37  ;;  %v2572_v47 = vor.u32 1.1754944e-38, %v2571_v38 }
 0x428   :  { %v2400_v34 = vadd.f32 %v2399_v12, %v6956_v58  ;;  %v2548_v33 = vmul.f32 %v4040_v1, %v2547_v45  ;;  %v2458_v12 = vpop.f32.mrf.mxu3 }
 0x429   :  { %3549 = vmatmul.msk.bf16.gmra.mxu1 %vm7829_vm14, %v2842_v13 }
 0x42a   :  { %v6973_v17 = vadd.f32 %v2448_v55, %v2400_v34  ;;  %v2549_v24 = vadd.f32 %v4040_v1, %v2548_v33 }
 0x42b   :  { %v4042_v19 = vpop.eup %4041 }
 0x42c   :  { %v3530_v16 = vmul.f32 -1.442695, %v6973_v17  ;;  %v4044_v25 = vpop.eup %4043  ;;  %v2561_v48 = vmul.f32 %v4042_v19, %v2530_v21  ;;  %v2553_v62 = vsel %vm2552_vm7, %v4040_v1, %v2549_v24  ;;  %vm2566_vm12 = vweird.f32 %v4042_v19  ;;  %vm7836_vm7 = vmmov %vm7833_vm8 }
 0x42d   :  { %v6976_v6 = vadd.f32 1.0, %v4044_v25  ;;  %v2558_v27 = vsel %vm2555_vm1, %v2557_v3, %v2553_v62  ;;  %vm2567_vm3 = vmor %vm2565_vm6, %vm2566_vm12 }
 0x42e   :  { %4045 = vpow2.f32 %v3530_v16  ;;  %v2562_v43 = vsub.f32 1.0, %v2561_v48  ;;  %v2785_v39 = vmul.f32 %v2558_v27, %v6959_v53  ;;  %v2846_v48 = vpop.permute.xlu2 %2845  ;;  %vm7839_vm12 = vmmov %vm7836_vm7 }
 0x42f   :  { %4047 = vrcp.f32 %v6976_v6  ;;  %vm2580_vm2 = vweird.f32 %v6976_v6 }
 0x430   :  { %v2563_v52 = vmul.f32 %v4042_v19, %v2562_v43  ;;  %v2801_v35 = vadd.f32 %v2785_v39, %v7831_v56 }
 0x432   :  { %v2564_v18 = vadd.f32 %v4042_v19, %v2563_v52 }
 0x433   :  { %v2402_v15 = vpop.f32.mrf.mxu2 }
 0x434   :  { %v2403_v60 = vadd.f32 %v2402_v15, %v6956_v58  ;;  %v4046_v20 = vpop.eup %4045  ;;  %v2568_v42 = vsel %vm2567_vm3, %v4042_v19, %v2564_v18 }
 0x435   :  { %v2532_v61 = vadd.f32 1.0, %v4046_v20  ;;  %v4048_v54 = vpop.eup %4047  ;;  %v2573_v4 = vsel %vm2570_vm13, %v2572_v47, %v2568_v42  ;;  %v7837_v47 = vld [vmem:[#allocation25_spill] sm:$0xff]  ;;  %v2461_v42 = vpop.f32.mrf.mxu3 }
 0x436   :  { %v6980_v0 = vadd.f32 %v2451_v10, %v2403_v60  ;;  %v2786_v14 = vmul.f32 %v2573_v4, %v6964_v23  ;;  %v2576_v31 = vmul.f32 %v4048_v54, %v6976_v6  ;;  %vm2581_vm11 = vweird.f32 %v4048_v54 }
 0x437   :  { %4049 = vrcp.f32 %v2532_v61  ;;  %v2586_v23 = vand.u32 2147483648, %v6976_v6  ;;  %v2584_v10 = vand.u32 2147483647, %v6976_v6  ;;  %vm6997_vm9 = vmor %vm2580_vm2, %vm2581_vm11  ;;  %v2599_v33 = vand.u32 2147483647, %v2532_v61 }
 0x438   :  { %v3531_v49 = vmul.f32 -1.442695, %v6980_v0  ;;  %v2802_v53 = vadd.f32 %v2786_v14, %v7832_v30  ;;  %v2577_v46 = vsub.f32 1.0, %v2576_v31  ;;  %v2601_v24 = vand.u32 2147483648, %v2532_v61 }
 0x439   :  { %3550 = vmatmul.msk.bf16.gmra.mxu1 %vm7830_vm10, %v2844_v63  ;;  %v2587_v34 = vor.u32 1.1754944e-38, %v2586_v23  ;;  %vm2585_vm15 = vcmp.eq.f32.partialorder %v2584_v10, 8.507059e+37  ;;  %vm2595_vm14 = vweird.f32 %v2532_v61  ;;  %vm2600_vm5 = vcmp.eq.f32.partialorder %v2599_v33, 8.507059e+37  ;;  %v7838_v63 = vld [vmem:[#allocation24_spill] sm:$0xff] }
 0x43a   :  { %4051 = vpow2.f32 %v3531_v49  ;;  %v2578_v55 = vmul.f32 %v4048_v54, %v2577_v46  ;;  %v2817_v37 = vpack.c.bf16 %v2802_v53, %v2801_v35  ;;  %v2602_v6 = vor.u32 1.1754944e-38, %v2601_v24 }
 0x43b   :  { %v2404_v57 = vpop.f32.mrf.mxu2 }
 0x43c   :  { %v2405_v50 = vadd.f32 %v2404_v57, %v6956_v58  ;;  %v2579_v8 = vadd.f32 %v4048_v54, %v2578_v55  ;;  %3559 = vmatmul.msk.bf16.vlgmr.msrb.gmra.mxu0 %vm7833_vm8, %v2817_v37 }
 0x43d   :  { %v4050_v41 = vpop.eup %4049  ;;  %v2463_v10 = vpop.f32.mrf.mxu3 }
 0x43e   :  { %v6990_v11 = vadd.f32 %v2453_v32, %v2405_v50  ;;  %v2591_v1 = vmul.f32 %v4050_v41, %v2532_v61  ;;  %v2583_v13 = vsel %vm6997_vm9, %v4048_v54, %v2579_v8  ;;  %vm2596_vm4 = vweird.f32 %v4050_v41  ;;  %vm7842_vm9 = vmmov %vm7836_vm7 }
 0x43f   :  { %v2588_v16 = vsel %vm2585_vm15, %v2587_v34, %v2583_v13  ;;  %vm2597_vm0 = vmor %vm2595_vm14, %vm2596_vm4 }
 0x440   :  { %v3532_v22 = vmul.f32 -1.442695, %v6990_v11  ;;  %v4052_v7 = vpop.eup %4051  ;;  %v2592_v40 = vsub.f32 1.0, %v2591_v1  ;;  %v2787_v62 = vmul.f32 %v2588_v16, %v6968_v29  ;;  %v2848_v1 = vpop.permute.xlu0 %2847  ;;  %vm7845_vm4 = vmmov %vm7836_vm7 }
 0x441   :  { %v7001_v2 = vadd.f32 1.0, %v4052_v7 }
 0x442   :  { %4053 = vpow2.f32 %v3532_v22  ;;  %v2593_v19 = vmul.f32 %v4050_v41, %v2592_v40  ;;  %v2803_v29 = vadd.f32 %v2787_v62, %v7837_v47  ;;  %v7844_v62 = vld [vmem:[#allocation18_spill] sm:$0xff] }
 0x443   :  { %v2407_v45 = vpop.f32.mrf.mxu2  ;;  %4055 = vrcp.f32 %v7001_v2  ;;  %vm2610_vm6 = vweird.f32 %v7001_v2  ;;  %v2614_v57 = vand.u32 2147483647, %v7001_v2 }
 0x444   :  { %v2408_v28 = vadd.f32 %v2407_v45, %v6956_v58  ;;  %v2594_v25 = vadd.f32 %v4050_v41, %v2593_v19 }
 0x445   :  { %vm2615_vm13 = vcmp.eq.f32.partialorder %v2614_v57, 8.507059e+37 }
 0x446   :  { %v7007_v32 = vadd.f32 %v2456_v51, %v2408_v28  ;;  %v2598_v43 = vsel %vm2597_vm0, %v4050_v41, %v2594_v25  ;;  %v2616_v51 = vand.u32 2147483648, %v7001_v2 }
 0x447   :  { %v2603_v15 = vsel %vm2600_vm5, %v2602_v6, %v2598_v43 }
 0x448   :  { %v4054_v5 = vpop.eup %4053  ;;  %v3533_v36 = vmul.f32 -1.442695, %v7007_v32  ;;  %v2788_v52 = vmul.f32 %v2603_v15, %v6973_v17  ;;  %v2617_v37 = vor.u32 1.1754944e-38, %v2616_v51 }
 0x449   :  { %v2534_v3 = vadd.f32 1.0, %v4054_v5  ;;  %3551 = vmatmul.msk.bf16.gmra.mxu1 %vm7836_vm7, %v2846_v48  ;;  %v4056_v38 = vpop.eup %4055  ;;  %v7843_v48 = vld [vmem:[#allocation17_spill] sm:$0xff] }
 0x44a   :  { %v2606_v60 = vmul.f32 %v4056_v38, %v7001_v2  ;;  %v2804_v39 = vadd.f32 %v2788_v52, %v7838_v63  ;;  %vm2611_vm1 = vweird.f32 %v4056_v38 }
 0x44b   :  { %4057 = vrcp.f32 %v2534_v3  ;;  %v2409_v27 = vpop.f32.mrf.mxu2  ;;  %vm7024_vm3 = vmor %vm2610_vm6, %vm2611_vm1  ;;  %v2629_v41 = vand.u32 2147483647, %v2534_v3  ;;  %v2631_v8 = vand.u32 2147483648, %v2534_v3  ;;  %vm2625_vm11 = vweird.f32 %v2534_v3 }
 0x44c   :  { %4059 = vpow2.f32 %v3533_v36  ;;  %v2607_v18 = vsub.f32 1.0, %v2606_v60  ;;  %v2410_v20 = vadd.f32 %v2409_v27, %v6956_v58  ;;  %v2818_v54 = vpack.c.bf16 %v2804_v39, %v2803_v29  ;;  %v2466_v60 = vpop.f32.mrf.mxu3 }
 0x44d   :  { %vm2630_vm2 = vcmp.eq.f32.partialorder %v2629_v41, 8.507059e+37  ;;  %v2632_v40 = vor.u32 1.1754944e-38, %v2631_v8 }
 0x44e   :  { %v2608_v61 = vmul.f32 %v4056_v38, %v2607_v18  ;;  %v7017_v49 = vadd.f32 %v2458_v12, %v2410_v20  ;;  %3560 = vmatmul.msk.bf16.gmra.mxu0 %vm7839_vm12, %v2818_v54  ;;  %vm7846_vm12 = vmmov %vm7845_vm4 }
 0x450   :  { %v2609_v17 = vadd.f32 %v4056_v38, %v2608_v61  ;;  %v3534_v14 = vmul.f32 -1.442695, %v7017_v49 }
 0x451   :  { %v4058_v4 = vpop.eup %4057 }
 0x452   :  { %v4060_v31 = vpop.eup %4059  ;;  %v2621_v56 = vmul.f32 %v4058_v4, %v2534_v3  ;;  %4061 = vpow2.f32 %v3534_v14  ;;  %v2613_v46 = vsel %vm7024_vm3, %v4056_v38, %v2609_v17  ;;  %vm2626_vm10 = vweird.f32 %v4058_v4  ;;  %v2850_v14 = vpop.permute.xlu1 %2849 }
 0x453   :  { %v7028_v30 = vadd.f32 1.0, %v4060_v31  ;;  %v2412_v53 = vpop.f32.mrf.mxu2  ;;  %v2618_v7 = vsel %vm2615_vm13, %v2617_v37, %v2613_v46  ;;  %vm2627_vm8 = vmor %vm2625_vm11, %vm2626_vm10 }
 0x454   :  { %v2622_v50 = vsub.f32 1.0, %v2621_v56  ;;  %v2413_v55 = vadd.f32 %v2412_v53, %v6956_v58  ;;  %v2789_v45 = vmul.f32 %v2618_v7, %v6980_v0  ;;  %v2468_v8 = vpop.f32.mrf.mxu3  ;;  %vm7849_vm13 = vmmov %vm7845_vm4 }
 0x455   :  { %4063 = vrcp.f32 %v7028_v30  ;;  %v2646_v18 = vand.u32 2147483648, %v7028_v30  ;;  %vm2640_vm14 = vweird.f32 %v7028_v30  ;;  %v2644_v20 = vand.u32 2147483647, %v7028_v30 }
 0x456   :  { %v2623_v23 = vmul.f32 %v4058_v4, %v2622_v50  ;;  %v7034_v22 = vadd.f32 %v2461_v42, %v2413_v55  ;;  %v2805_v6 = vadd.f32 %v2789_v45, %v7843_v48 }
 0x457   :  { %v2647_v61 = vor.u32 1.1754944e-38, %v2646_v18  ;;  %vm2645_vm5 = vcmp.eq.f32.partialorder %v2644_v20, 8.507059e+37 }
 0x458   :  { %v2624_v21 = vadd.f32 %v4058_v4, %v2623_v23  ;;  %v3535_v2 = vmul.f32 -1.442695, %v7034_v22  ;;  %v4062_v13 = vpop.eup %4061 }
 0x459   :  { %3552 = vmatmul.msk.bf16.gmra.mxu1 %vm7842_vm9, %v2848_v1  ;;  %v2536_v34 = vadd.f32 1.0, %v4062_v13  ;;  %vm7852_vm9 = vmmov %vm7845_vm4 }
 0x45a   :  { %v2628_v12 = vsel %vm2627_vm8, %v4058_v4, %v2624_v21  ;;  %4065 = vpow2.f32 %v3535_v2  ;;  %v7847_v2 = vld [vmem:[#allocation15_spill] sm:$0xff] }
 0x45b   :  { %v4064_v33 = vpop.eup %4063  ;;  %v2633_v24 = vsel %vm2630_vm2, %v2632_v40, %v2628_v12  ;;  %v2414_v19 = vpop.f32.mrf.mxu2  ;;  %4067 = vrcp.f32 %v2536_v34  ;;  %v2659_v54 = vand.u32 2147483647, %v2536_v34  ;;  %v2661_v4 = vand.u32 2147483648, %v2536_v34  ;;  %v7848_v40 = vld [vmem:[#allocation16_spill] sm:$0xff] }
 0x45c   :  { %v2790_v28 = vmul.f32 %v2633_v24, %v6990_v11  ;;  %v2636_v16 = vmul.f32 %v4064_v33, %v7028_v30  ;;  %v2415_v25 = vadd.f32 %v2414_v19, %v6956_v58  ;;  %vm2641_vm15 = vweird.f32 %v4064_v33 }
 0x45d   :  { %vm2642_vm0 = vmor %vm2640_vm14, %vm2641_vm15  ;;  %vm2655_vm1 = vweird.f32 %v2536_v34  ;;  %vm2660_vm3 = vcmp.eq.f32.partialorder %v2659_v54, 8.507059e+37  ;;  %v2662_v53 = vor.u32 1.1754944e-38, %v2661_v4 }
 0x45e   :  { %v2637_v5 = vsub.f32 1.0, %v2636_v16  ;;  %v2806_v43 = vadd.f32 %v2790_v28, %v7844_v62  ;;  %v7044_v3 = vadd.f32 %v2463_v10, %v2415_v25  ;;  %v2471_v16 = vpop.f32.mrf.mxu3 }
 0x460   :  { %v4066_v0 = vpop.eup %4065  ;;  %v2638_v36 = vmul.f32 %v4064_v33, %v2637_v5  ;;  %v2819_v38 = vpack.c.bf16 %v2806_v43, %v2805_v6  ;;  %v3536_v11 = vmul.f32 -1.442695, %v7044_v3  ;;  %v2852_v43 = vpop.permute.xlu2 %2851 }
 0x461   :  { %v7046_v15 = vadd.f32 1.0, %v4066_v0  ;;  %v4068_v52 = vpop.eup %4067 }
 0x462   :  { %v2639_v27 = vadd.f32 %v4064_v33, %v2638_v36  ;;  %3561 = vmatmul.msk.bf16.gmra.mxu0 %vm7845_vm4, %v2819_v38  ;;  %v2651_v47 = vmul.f32 %v4068_v52, %v2536_v34  ;;  %vm2656_vm7 = vweird.f32 %v4068_v52 }
 0x463   :  { %4069 = vrcp.f32 %v7046_v15  ;;  %v2417_v29 = vpop.f32.mrf.mxu2  ;;  %vm2657_vm6 = vmor %vm2655_vm1, %vm2656_vm7  ;;  %v2676_v25 = vand.u32 2147483648, %v7046_v15  ;;  %vm2670_vm11 = vweird.f32 %v7046_v15  ;;  %v2674_v48 = vand.u32 2147483647, %v7046_v15 }
 0x464   :  { %4071 = vpow2.f32 %v3536_v11  ;;  %v2643_v63 = vsel %vm2642_vm0, %v4064_v33, %v2639_v27  ;;  %v2652_v39 = vsub.f32 1.0, %v2651_v47  ;;  %v2418_v42 = vadd.f32 %v2417_v29, %v6956_v58 }
 0x465   :  { %v2648_v31 = vsel %vm2645_vm5, %v2647_v61, %v2643_v63  ;;  %vm2675_vm4 = vcmp.eq.f32.partialorder %v2674_v48, 8.507059e+37 }
 0x466   :  { %v2653_v17 = vmul.f32 %v4068_v52, %v2652_v39  ;;  %v7055_v51 = vadd.f32 %v2466_v60, %v2418_v42  ;;  %v2791_v50 = vmul.f32 %v2648_v31, %v7007_v32  ;;  %v2473_v31 = vpop.f32.mrf.mxu3 }
 0x468   :  { %v2654_v56 = vadd.f32 %v4068_v52, %v2653_v17  ;;  %v3537_v35 = vmul.f32 -1.442695, %v7055_v51  ;;  %v2807_v13 = vadd.f32 %v2791_v50, %v7847_v2 }
 0x469   :  { %v7057_v57 = vpop.eup %4069  ;;  %3553 = vmatmul.msk.bf16.gmra.mxu1 %vm7846_vm12, %v2850_v14  ;;  %vm7855_vm12 = vmmov %vm7852_vm9 }
 0x46a   :  { %v4072_v30 = vpop.eup %4071  ;;  %v2666_v46 = vmul.f32 %v7057_v57, %v7046_v15  ;;  %v2658_v55 = vsel %vm2657_vm6, %v4068_v52, %v2654_v56  ;;  %4073 = vpow2.f32 %v3537_v35  ;;  %vm2671_vm10 = vweird.f32 %v7057_v57 }
 0x46b   :  { %v2538_v37 = vadd.f32 1.0, %v4072_v30  ;;  %v2419_v41 = vpop.f32.mrf.mxu2  ;;  %v2663_v23 = vsel %vm2660_vm3, %v2662_v53, %v2658_v55  ;;  %vm7081_vm8 = vmor %vm2670_vm11, %vm2671_vm10  ;;  %v2677_v15 = vor.u32 1.1754944e-38, %v2676_v25  ;;  %v7854_v55 = vld [vmem:[#allocation26_spill] sm:$0xff] }
 0x46c   :  { %v2420_v7 = vadd.f32 %v2419_v41, %v6956_v58  ;;  %v2792_v10 = vmul.f32 %v2663_v23, %v7017_v49  ;;  %v2667_v1 = vsub.f32 1.0, %v2666_v46  ;;  %v7853_v46 = vld [vmem:[#allocation27_spill] sm:$0xff] }
 0x46d   :  { %4075 = vrcp.f32 %v2538_v37  ;;  %v2691_v6 = vand.u32 2147483648, %v2538_v37  ;;  %v2689_v38 = vand.u32 2147483647, %v2538_v37  ;;  %vm2685_vm15 = vweird.f32 %v2538_v37 }
 0x46e   :  { %v7066_v21 = vadd.f32 %v2468_v8, %v2420_v7  ;;  %v2808_v45 = vadd.f32 %v2792_v10, %v7848_v40  ;;  %v2668_v34 = vmul.f32 %v7057_v57, %v2667_v1 }
 0x46f   :  { %v2692_v47 = vor.u32 1.1754944e-38, %v2691_v6  ;;  %vm2690_vm0 = vcmp.eq.f32.partialorder %v2689_v38, 8.507059e+37 }
 0x470   :  { %v3538_v32 = vmul.f32 -1.442695, %v7066_v21  ;;  %v4074_v12 = vpop.eup %4073  ;;  %v2820_v33 = vpack.c.bf16 %v2808_v45, %v2807_v13  ;;  %v2669_v28 = vadd.f32 %v7057_v57, %v2668_v34  ;;  %v2476_v34 = vpop.f32.mrf.mxu3 }
 0x471   :  { %v7072_v24 = vadd.f32 1.0, %v4074_v12 }
 0x472   :  { %4077 = vpow2.f32 %v3538_v32  ;;  %3562 = vmatmul.msk.bf16.gmra.mxu0 %vm7849_vm13, %v2820_v33  ;;  %v2673_v11 = vsel %vm7081_vm8, %v7057_v57, %v2669_v28 }
 0x473   :  { %v4076_v19 = vpop.eup %4075  ;;  %4079 = vrcp.f32 %v7072_v24  ;;  %v2678_v63 = vsel %vm2675_vm4, %v2677_v15, %v2673_v11  ;;  %vm2700_vm7 = vweird.f32 %v7072_v24  ;;  %v2706_v2 = vand.u32 2147483648, %v7072_v24 }
 0x474   :  { %v2681_v49 = vmul.f32 %v4076_v19, %v2538_v37  ;;  %vm2686_vm2 = vweird.f32 %v4076_v19  ;;  %v2793_v4 = vmul.f32 %v2678_v63, %v7034_v22  ;;  %v2704_v32 = vand.u32 2147483647, %v7072_v24  ;;  %v7859_v63 = vld [vmem:[#allocation21_spill] sm:$0xff] }
 0x475   :  { %vm2687_vm14 = vmor %vm2685_vm15, %vm2686_vm2 }
 0x476   :  { %v2682_v5 = vsub.f32 1.0, %v2681_v49  ;;  %v2809_v50 = vadd.f32 %v2793_v4, %v7853_v46  ;;  %vm2705_vm10 = vcmp.eq.f32.partialorder %v2704_v32, 8.507059e+37  ;;  %vm7860_vm15 = vmmov %vm7855_vm12 }
 0x478   :  { %v4078_v62 = vpop.eup %4077  ;;  %v2683_v36 = vmul.f32 %v4076_v19, %v2682_v5  ;;  %v2478_v15 = vpop.f32.mrf.mxu3 }
 0x479   :  { %v2540_v52 = vadd.f32 1.0, %v4078_v62  ;;  %v2422_v60 = vpop.f32.mrf.mxu2  ;;  %3554 = vmatmul.msk.bf16.gmra.mxu1 %vm7852_vm9, %v2852_v43  ;;  %v7089_v27 = vpop.eup %4079 }
 0x47a   :  { %v2684_v18 = vadd.f32 %v4076_v19, %v2683_v36  ;;  %v2423_v20 = vadd.f32 %v2422_v60, %v6956_v58  ;;  %v2696_v29 = vmul.f32 %v7089_v27, %v7072_v24  ;;  %vm2701_vm5 = vweird.f32 %v7089_v27 }
 0x47b   :  { %4081 = vrcp.f32 %v2540_v52  ;;  %v2721_v40 = vand.u32 2147483648, %v2540_v52  ;;  %vm7111_vm6 = vmor %vm2700_vm7, %vm2701_vm5  ;;  %vm2715_vm3 = vweird.f32 %v2540_v52  ;;  %v2719_v12 = vand.u32 2147483647, %v2540_v52 }
 0x47c   :  { %v2688_v39 = vsel %vm2687_vm14, %v4076_v19, %v2684_v18  ;;  %v7094_v42 = vadd.f32 %v2471_v16, %v2423_v20  ;;  %v2697_v14 = vsub.f32 1.0, %v2696_v29  ;;  %v2707_v16 = vor.u32 1.1754944e-38, %v2706_v2 }
 0x47d   :  { %v2693_v61 = vsel %vm2690_vm0, %v2692_v47, %v2688_v39  ;;  %v2722_v25 = vor.u32 1.1754944e-38, %v2721_v40  ;;  %vm2720_vm11 = vcmp.eq.f32.partialorder %v2719_v12, 8.507059e+37  ;;  %v7858_v47 = vld [vmem:[#allocation23_spill] sm:$0xff] }
 0x47e   :  { %v3539_v54 = vmul.f32 -1.442695, %v7094_v42  ;;  %v2794_v17 = vmul.f32 %v2693_v61, %v7044_v3  ;;  %v2698_v53 = vmul.f32 %v7089_v27, %v2697_v14 }
 0x480   :  { %4083 = vpow2.f32 %v3539_v54  ;;  %v2810_v37 = vadd.f32 %v2794_v17, %v7854_v55  ;;  %v2699_v10 = vadd.f32 %v7089_v27, %v2698_v53 }
 0x481   :  { %v4082_v57 = vpop.eup %4081  ;;  %v2424_v56 = vpop.f32.mrf.mxu2 }
 0x482   :  { %v2711_v35 = vmul.f32 %v4082_v57, %v2540_v52  ;;  %v2425_v30 = vadd.f32 %v2424_v56, %v6956_v58  ;;  %v2821_v22 = vpack.c.bf16 %v2810_v37, %v2809_v50  ;;  %vm2716_vm1 = vweird.f32 %v4082_v57 }
 0x483   :  { %vm2717_vm13 = vmor %vm2715_vm3, %vm2716_vm1  ;;  %v2703_v19 = vsel %vm7111_vm6, %v7089_v27, %v2699_v10 }
 0x484   :  { %v2712_v41 = vsub.f32 1.0, %v2711_v35  ;;  %v7103_v8 = vadd.f32 %v2473_v31, %v2425_v30  ;;  %3563 = vmatmul.msk.bf16.gmra.mxu0 %vm7855_vm12, %v2821_v22  ;;  %v2708_v48 = vsel %vm2705_vm10, %v2707_v16, %v2703_v19  ;;  %vm7861_vm6 = vmmov %vm7860_vm15 }
 0x485   :  { %v2795_v38 = vmul.f32 %v2708_v48, %v7055_v51 }
 0x486   :  { %v4084_v23 = vpop.eup %4083  ;;  %v2713_v3 = vmul.f32 %v4082_v57, %v2712_v41  ;;  %v3540_v7 = vmul.f32 -1.442695, %v7103_v8 }
 0x487   :  { %v2541_v1 = vadd.f32 1.0, %v4084_v23  ;;  %v2811_v29 = vadd.f32 %v2795_v38, %v7858_v47  ;;  %v7142_v47 = vpop.permute.xlu0 %3011 }
 0x488   :  { %v2714_v13 = vadd.f32 %v4082_v57, %v2713_v3  ;;  %4085 = vpow2.f32 %v3540_v7 }
 0x489   :  { %4087 = vrcp.f32 %v2541_v1  ;;  %v2736_v51 = vand.u32 2147483648, %v2541_v1  ;;  %vm2730_vm2 = vweird.f32 %v2541_v1  ;;  %v2734_v14 = vand.u32 2147483647, %v2541_v1 }
 0x48a   :  { %v2427_v33 = vpop.f32.mrf.mxu2  ;;  %v2718_v49 = vsel %vm2717_vm13, %v4082_v57, %v2714_v13 }
 0x48b   :  { %v2428_v28 = vadd.f32 %v2427_v33, %v6956_v58  ;;  %v2723_v6 = vsel %vm2720_vm11, %v2722_v25, %v2718_v49  ;;  %v2737_v35 = vor.u32 1.1754944e-38, %v2736_v51  ;;  %vm2735_vm4 = vcmp.eq.f32.partialorder %v2734_v14, 8.507059e+37  ;;  %v2892_v33 = vpop.f32.mrf.mxu1 }
 0x48c   :  { %v2796_v11 = vmul.f32 %v2723_v6, %v7066_v21 }
 0x48d   :  { %v7120_v5 = vadd.f32 %v2476_v34, %v2428_v28 }
 0x48e   :  { %v4086_v24 = vpop.eup %4085  ;;  %v2812_v39 = vadd.f32 %v2796_v11, %v7859_v63 }
 0x48f   :  { %v4088_v62 = vpop.eup %4087  ;;  %v2542_v43 = vadd.f32 1.0, %v4086_v24  ;;  %v3541_v0 = vmul.f32 -1.442695, %v7120_v5 }
 0x490   :  { %v2726_v36 = vmul.f32 %v4088_v62, %v2541_v1  ;;  %vm2731_vm8 = vweird.f32 %v4088_v62  ;;  %v2822_v4 = vpack.c.bf16 %v2812_v39, %v2811_v29 }
 0x491   :  { %4089 = vrcp.f32 %v2542_v43  ;;  %vm2732_vm9 = vmor %vm2730_vm2, %vm2731_vm8  ;;  %v2751_v30 = vand.u32 2147483648, %v2542_v43  ;;  %v2749_v46 = vand.u32 2147483647, %v2542_v43  ;;  %vm2745_vm0 = vweird.f32 %v2542_v43 }
 0x492   :  { %v2727_v52 = vsub.f32 1.0, %v2726_v36  ;;  %4091 = vpow2.f32 %v3541_v0  ;;  %v2429_v60 = vpop.f32.mrf.mxu2 }
 0x493   :  { %v2430_v27 = vadd.f32 %v2429_v60, %v6956_v58  ;;  %v2752_v41 = vor.u32 1.1754944e-38, %v2751_v30  ;;  %vm2750_vm7 = vcmp.eq.f32.partialorder %v2749_v46, 8.507059e+37  ;;  %v2894_v36 = vpop.f32.mrf.mxu1 }
 0x494   :  { %v2728_v18 = vmul.f32 %v4088_v62, %v2727_v52  ;;  %3564 = vmatmul.msk.bf16.gmra.mxu0 %vm7860_vm15, %v2822_v4 }
 0x495   :  { %v7126_v20 = vadd.f32 %v2478_v15, %v2430_v27 }
 0x496   :  { %v2729_v61 = vadd.f32 %v4088_v62, %v2728_v18 }
 0x497   :  { %v4090_v54 = vpop.eup %4089  ;;  %v3542_v21 = vmul.f32 -1.442695, %v7126_v20 }
 0x498   :  { %v4092_v17 = vpop.eup %4091  ;;  %v2741_v31 = vmul.f32 %v4090_v54, %v2542_v43  ;;  %v2733_v57 = vsel %vm2732_vm9, %v4088_v62, %v2729_v61  ;;  %vm2746_vm14 = vweird.f32 %v4090_v54  ;;  %vm7862_vm9 = vmmov %vm7861_vm6 }
 0x499   :  { %v2543_v58 = vadd.f32 1.0, %v4092_v17  ;;  %4093 = vpow2.f32 %v3542_v21  ;;  %v2738_v50 = vsel %vm2735_vm4, %v2737_v35, %v2733_v57  ;;  %vm2747_vm5 = vmor %vm2745_vm0, %vm2746_vm14 }
 0x49a   :  { %v2742_v56 = vsub.f32 1.0, %v2741_v31  ;;  %v2797_v22 = vmul.f32 %v2738_v50, %v7094_v42 }
 0x49b   :  { %4095 = vrcp.f32 %v2543_v58  ;;  %v2766_v19 = vand.u32 2147483648, %v2543_v58  ;;  %vm2760_vm12 = vweird.f32 %v2543_v58  ;;  %v2764_v49 = vand.u32 2147483647, %v2543_v58  ;;  %v2897_v15 = vpop.f32.mrf.mxu1 }
 0x49c   :  { %v2743_v53 = vmul.f32 %v4090_v54, %v2742_v56  ;;  %v2813_v40 = vadd.f32 %v2797_v22, %v7721_v26 }
 0x49d   :  { %v2767_v25 = vor.u32 1.1754944e-38, %v2766_v19  ;;  %vm2765_vm13 = vcmp.eq.f32.partialorder %v2764_v49, 8.507059e+37 }
 0x49e   :  { %v2744_v55 = vadd.f32 %v4090_v54, %v2743_v53 }
 0x49f   :  { %v4094_v37 = vpop.eup %4093 }
 0x4a0   :  { %v2748_v23 = vsel %vm2747_vm5, %v4090_v54, %v2744_v55  ;;  %v2544_v3 = vadd.f32 1.0, %v4094_v37  ;;  %vm7863_vm5 = vcmask 261120  }
 0x4a1   :  { %v4096_v7 = vpop.eup %4095  ;;  %v2753_v10 = vsel %vm2750_vm7, %v2752_v41, %v2748_v23 }
 0x4a2   :  { %v2798_v1 = vmul.f32 %v2753_v10, %v7103_v8  ;;  %v2756_v2 = vmul.f32 %v4096_v7, %v2543_v58  ;;  %4097 = vrcp.f32 %v2544_v3  ;;  %vm2761_vm1 = vweird.f32 %v4096_v7 }
 0x4a3   :  { %vm2762_vm3 = vmor %vm2760_vm12, %vm2761_vm1  ;;  %v2781_v24 = vand.u32 2147483648, %v2544_v3  ;;  %vm2775_vm11 = vweird.f32 %v2544_v3  ;;  %v2899_v61 = vpop.f32.mrf.mxu1 }
 0x4a4   :  { %v2757_v13 = vsub.f32 1.0, %v2756_v2  ;;  %v2814_v45 = vadd.f32 %v2798_v1, %v7722_v59  ;;  %v2779_v59 = vand.u32 2147483647, %v2544_v3 }
 0x4a5   :  { %v2782_v62 = vor.u32 1.1754944e-38, %v2781_v24 }
 0x4a6   :  { %v2758_v32 = vmul.f32 %v4096_v7, %v2757_v13  ;;  %v2823_v12 = vpack.c.bf16 %v2814_v45, %v2813_v40  ;;  %vm2780_vm2 = vcmp.eq.f32.partialorder %v2779_v59, 8.507059e+37 }
 0x4a8   :  { %v4098_v34 = vpop.eup %4097  ;;  %v2759_v42 = vadd.f32 %v4096_v7, %v2758_v32  ;;  %3565 = vmatmul.msk.bf16.gmra.mxu0 %vm7861_vm6, %v2823_v12 }
 0x4a9   :  { %v2771_v28 = vmul.f32 %v4098_v34, %v2544_v3  ;;  %vm2776_vm10 = vweird.f32 %v4098_v34 }
 0x4aa   :  { %v2763_v8 = vsel %vm2762_vm3, %v4096_v7, %v2759_v42  ;;  %vm2777_vm8 = vmor %vm2775_vm11, %vm2776_vm10 }
 0x4ab   :  { %v2772_v16 = vsub.f32 1.0, %v2771_v28  ;;  %v2768_v48 = vsel %vm2765_vm13, %v2767_v25, %v2763_v8  ;;  %v2902_v17 = vpop.f32.mrf.mxu1  ;;  %vm7864_vm3 = vmmov %vm7863_vm5 }
 0x4ac   :  { %v2799_v43 = vmul.f32 %v2768_v48, %v7120_v5 }
 0x4ad   :  { %v2773_v26 = vmul.f32 %v4098_v34, %v2772_v16 }
 0x4ae   :  { %v2815_v52 = vadd.f32 %v2799_v43, %v7743_v9 }
 0x4af   :  { %v2774_v6 = vadd.f32 %v4098_v34, %v2773_v26 }
 0x4b1   :  { %v2778_v0 = vsel %vm2777_vm8, %v4098_v34, %v2774_v6 }
 0x4b2   :  { %v2783_v38 = vsel %vm2780_vm2, %v2782_v62, %v2778_v0 }
 0x4b3   :  { %v2800_v11 = vmul.f32 %v2783_v38, %v7126_v20  ;;  %v2904_v22 = vpop.f32.mrf.mxu1 }
 0x4b5   :  { %v2816_v60 = vadd.f32 %v2800_v11, %v7744_v44 }
 0x4b7   :  { %v2824_v27 = vpack.c.bf16 %v2816_v60, %v2815_v52 }
 0x4b9   :  { %3566 = vmatmul.msk.bf16.gmra.mxu0 %vm7862_vm9, %v2824_v27  ;;  %v2971_v18 = vpop.f32.mrf.mxu0  ;;  %vm7865_vm9 = vmmov %vm7864_vm3 }
 0x4ba   :  { %v2972_v29 = vadd.f32 %v2971_v18, %v2892_v33 }
 0x4bb   :  { %v2907_v24 = vpop.f32.mrf.mxu1 }
 0x4bc   :  { %v3014_v5 = vadd.f32 %v7142_v47, %v2972_v29 }
 0x4be   :  { %v3567_v63 = vmul.f32 -1.442695, %v3014_v5 }
 0x4c0   :  { %4099 = vpow2.f32 %v3567_v63 }
 0x4c1   :  { %v2973_v39 = vpop.f32.mrf.mxu0 }
 0x4c2   :  { %v2974_v54 = vadd.f32 %v2973_v39, %v2894_v36 }
 0x4c4   :  { %v7146_v20 = vadd.f32 %v7142_v47, %v2974_v54  ;;  %v2909_v54 = vpop.f32.mrf.mxu1 }
 0x4c6   :  { %v4100_v9 = vpop.eup %4099  ;;  %v3568_v44 = vmul.f32 -1.442695, %v7146_v20 }
 0x4c7   :  { %v3078_v51 = vadd.f32 1.0, %v4100_v9 }
 0x4c8   :  { %4101 = vpow2.f32 %v3568_v44 }
 0x4c9   :  { %4103 = vrcp.f32 %v3078_v51  ;;  %v3105_v46 = vand.u32 2147483648, %v3078_v51  ;;  %v3103_v37 = vand.u32 2147483647, %v3078_v51  ;;  %vm3099_vm4 = vweird.f32 %v3078_v51 }
 0x4cb   :  { %v2976_v21 = vpop.f32.mrf.mxu0  ;;  %v3106_v7 = vor.u32 1.1754944e-38, %v3105_v46  ;;  %vm3104_vm0 = vcmp.eq.f32.partialorder %v3103_v37, 8.507059e+37 }
 0x4cc   :  { %v2977_v4 = vadd.f32 %v2976_v21, %v2897_v15 }
 0x4ce   :  { %v7150_v14 = vadd.f32 %v7142_v47, %v2977_v4  ;;  %v4102_v31 = vpop.eup %4101 }
 0x4cf   :  { %v4104_v58 = vpop.eup %4103  ;;  %v3079_v57 = vadd.f32 1.0, %v4102_v31 }
 0x4d0   :  { %v3569_v56 = vmul.f32 -1.442695, %v7150_v14  ;;  %v3095_v35 = vmul.f32 %v4104_v58, %v3078_v51  ;;  %vm3100_vm15 = vweird.f32 %v4104_v58 }
 0x4d1   :  { %4105 = vrcp.f32 %v3079_v57  ;;  %vm3101_vm14 = vmor %vm3099_vm4, %vm3100_vm15  ;;  %v3120_v34 = vand.u32 2147483648, %v3079_v57  ;;  %v3118_v19 = vand.u32 2147483647, %v3079_v57  ;;  %vm3114_vm1 = vweird.f32 %v3079_v57 }
 0x4d2   :  { %v3096_v30 = vsub.f32 1.0, %v3095_v35  ;;  %4107 = vpow2.f32 %v3569_v56 }
 0x4d3   :  { %v2978_v53 = vpop.f32.mrf.mxu0  ;;  %v3121_v25 = vor.u32 1.1754944e-38, %v3120_v34  ;;  %vm3119_vm6 = vcmp.eq.f32.partialorder %v3118_v19, 8.507059e+37 }
 0x4d4   :  { %v2979_v50 = vadd.f32 %v2978_v53, %v2899_v61  ;;  %v3097_v55 = vmul.f32 %v4104_v58, %v3096_v30 }
 0x4d6   :  { %v7154_v41 = vadd.f32 %v7142_v47, %v2979_v50  ;;  %v3098_v23 = vadd.f32 %v4104_v58, %v3097_v55 }
 0x4d7   :  { %v4106_v3 = vpop.eup %4105 }
 0x4d8   :  { %v3570_v10 = vmul.f32 -1.442695, %v7154_v41  ;;  %v4108_v1 = vpop.eup %4107  ;;  %v3102_v2 = vsel %vm3101_vm14, %v4104_v58, %v3098_v23  ;;  %v3110_v13 = vmul.f32 %v4106_v3, %v3079_v57  ;;  %vm3115_vm7 = vweird.f32 %v4106_v3 }
 0x4d9   :  { %v3107_v40 = vsel %vm3104_vm0, %v3106_v7, %v3102_v2  ;;  %v3080_v45 = vadd.f32 1.0, %v4108_v1  ;;  %vm3116_vm12 = vmor %vm3114_vm1, %vm3115_vm7 }
 0x4da   :  { %4109 = vpow2.f32 %v3570_v10  ;;  %v3334_v32 = vmul.f32 %v3107_v40, %v3014_v5  ;;  %v3111_v12 = vsub.f32 1.0, %v3110_v13  ;;  %vm7866_vm0 = vmmov %vm7864_vm3 }
 0x4db   :  { %4111 = vrcp.f32 %v3080_v45  ;;  %v3135_v52 = vand.u32 2147483648, %v3080_v45  ;;  %v3133_v27 = vand.u32 2147483647, %v3080_v45  ;;  %vm3129_vm10 = vweird.f32 %v3080_v45 }
 0x4dc   :  { %3350 = vst.msk [vmem:[#allocation3] sm:$0xff] %vm7863_vm5, %v3334_v32  ;;  %v3112_v42 = vmul.f32 %v4106_v3, %v3111_v12 }
 0x4dd   :  { %v3136_v39 = vor.u32 1.1754944e-38, %v3135_v52  ;;  %vm3134_vm8 = vcmp.eq.f32.partialorder %v3133_v27, 8.507059e+37 }
 0x4de   :  { %v3113_v28 = vadd.f32 %v4106_v3, %v3112_v42 }
 0x4df   :  { %v2981_v33 = vpop.f32.mrf.mxu0 }
 0x4e0   :  { %v2982_v49 = vadd.f32 %v2981_v33, %v2902_v17  ;;  %v4110_v16 = vpop.eup %4109  ;;  %v3117_v26 = vsel %vm3116_vm12, %v4106_v3, %v3113_v28  ;;  %v2912_v3 = vpop.f32.mrf.mxu1 }
 0x4e1   :  { %v3081_v59 = vadd.f32 1.0, %v4110_v16  ;;  %v4112_v6 = vpop.eup %4111  ;;  %v3122_v62 = vsel %vm3119_vm6, %v3121_v25, %v3117_v26 }
 0x4e2   :  { %v7159_v8 = vadd.f32 %v7142_v47, %v2982_v49  ;;  %v3335_v43 = vmul.f32 %v3122_v62, %v7146_v20  ;;  %v3125_v0 = vmul.f32 %v4112_v6, %v3080_v45  ;;  %vm3130_vm13 = vweird.f32 %v4112_v6 }
 0x4e3   :  { %4113 = vrcp.f32 %v3081_v59  ;;  %vm3131_vm11 = vmor %vm3129_vm10, %vm3130_vm13  ;;  %v3150_v4 = vand.u32 2147483648, %v3081_v59  ;;  %v3148_v58 = vand.u32 2147483647, %v3081_v59  ;;  %vm3144_vm15 = vweird.f32 %v3081_v59 }
 0x4e4   :  { %v3571_v48 = vmul.f32 -1.442695, %v7159_v8  ;;  %3351 = vst.msk [vmem:[#allocation3 + $0x8] sm:$0xff] %vm7864_vm3, %v3335_v43  ;;  %v3126_v38 = vsub.f32 1.0, %v3125_v0  ;;  %vm7867_vm3 = vmmov %vm7866_vm0 }
 0x4e5   :  { %v3151_v53 = vor.u32 1.1754944e-38, %v3150_v4  ;;  %vm3149_vm14 = vcmp.eq.f32.partialorder %v3148_v58, 8.507059e+37 }
 0x4e6   :  { %4115 = vpow2.f32 %v3571_v48  ;;  %v3127_v60 = vmul.f32 %v4112_v6, %v3126_v38 }
 0x4e7   :  { %v2983_v36 = vpop.f32.mrf.mxu0 }
 0x4e8   :  { %v2984_v11 = vadd.f32 %v2983_v36, %v2904_v22  ;;  %v3128_v29 = vadd.f32 %v4112_v6, %v3127_v60  ;;  %v2914_v26 = vpop.f32.mrf.mxu1 }
 0x4e9   :  { %v4114_v18 = vpop.eup %4113 }
 0x4ea   :  { %v7165_v15 = vadd.f32 %v7142_v47, %v2984_v11  ;;  %v3140_v61 = vmul.f32 %v4114_v18, %v3081_v59  ;;  %v3132_v20 = vsel %vm3131_vm11, %v4112_v6, %v3128_v29  ;;  %vm3145_vm2 = vweird.f32 %v4114_v18 }
 0x4eb   :  { %v3137_v44 = vsel %vm3134_vm8, %v3136_v39, %v3132_v20  ;;  %vm3146_vm4 = vmor %vm3144_vm15, %vm3145_vm2 }
 0x4ec   :  { %v3572_v5 = vmul.f32 -1.442695, %v7165_v15  ;;  %v4116_v63 = vpop.eup %4115  ;;  %v3141_v51 = vsub.f32 1.0, %v3140_v61  ;;  %v3336_v21 = vmul.f32 %v3137_v44, %v7150_v14  ;;  %vm7868_vm8 = vmmov %vm7866_vm0 }
 0x4ed   :  { %v3082_v9 = vadd.f32 1.0, %v4116_v63 }
 0x4ee   :  { %4117 = vpow2.f32 %v3572_v5  ;;  %v3142_v31 = vmul.f32 %v4114_v18, %v3141_v51  ;;  %3352 = vst.msk [vmem:[#allocation3 + $0x10] sm:$0xff] %vm7865_vm9, %v3336_v21 }
 0x4ef   :  { %4119 = vrcp.f32 %v3082_v9  ;;  %v2986_v17 = vpop.f32.mrf.mxu0  ;;  %v3165_v2 = vand.u32 2147483648, %v3082_v9  ;;  %v3163_v40 = vand.u32 2147483647, %v3082_v9  ;;  %vm3159_vm7 = vweird.f32 %v3082_v9 }
 0x4f0   :  { %v2987_v57 = vadd.f32 %v2986_v17, %v2907_v24  ;;  %v3143_v56 = vadd.f32 %v4114_v18, %v3142_v31  ;;  %v2917_v39 = vpop.f32.mrf.mxu1 }
 0x4f1   :  { %v3166_v33 = vor.u32 1.1754944e-38, %v3165_v2  ;;  %vm3164_vm12 = vcmp.eq.f32.partialorder %v3163_v40, 8.507059e+37 }
 0x4f2   :  { %v7171_v35 = vadd.f32 %v7142_v47, %v2987_v57  ;;  %v3147_v46 = vsel %vm3146_vm4, %v4114_v18, %v3143_v56 }
 0x4f3   :  { %v3152_v37 = vsel %vm3149_vm14, %v3151_v53, %v3147_v46 }
 0x4f4   :  { %v4118_v30 = vpop.eup %4117  ;;  %v3573_v50 = vmul.f32 -1.442695, %v7171_v35  ;;  %v3337_v22 = vmul.f32 %v3152_v37, %v7154_v41 }
 0x4f5   :  { %v3083_v14 = vadd.f32 1.0, %v4118_v30  ;;  %v4120_v55 = vpop.eup %4119 }
 0x4f6   :  { %v3155_v23 = vmul.f32 %v4120_v55, %v3082_v9  ;;  %3353 = vst.msk [vmem:[#allocation3 + $0x18] sm:$0xff] %vm7866_vm0, %v3337_v22  ;;  %vm3160_vm5 = vweird.f32 %v4120_v55 }
 0x4f7   :  { %4121 = vrcp.f32 %v3083_v14  ;;  %v2988_v7 = vpop.f32.mrf.mxu0  ;;  %vm3161_vm1 = vmor %vm3159_vm7, %vm3160_vm5  ;;  %v3180_v24 = vand.u32 2147483648, %v3083_v14  ;;  %v3178_v48 = vand.u32 2147483647, %v3083_v14  ;;  %vm3174_vm13 = vweird.f32 %v3083_v14 }
 0x4f8   :  { %4123 = vpow2.f32 %v3573_v50  ;;  %v3156_v10 = vsub.f32 1.0, %v3155_v23  ;;  %v2989_v1 = vadd.f32 %v2988_v7, %v2909_v54  ;;  %v2919_v37 = vpop.f32.mrf.mxu1 }
 0x4f9   :  { %v3181_v0 = vor.u32 1.1754944e-38, %v3180_v24  ;;  %vm3179_vm11 = vcmp.eq.f32.partialorder %v3178_v48, 8.507059e+37 }
 0x4fa   :  { %v3157_v13 = vmul.f32 %v4120_v55, %v3156_v10  ;;  %v7177_v45 = vadd.f32 %v7142_v47, %v2989_v1 }
 0x4fc   :  { %v3158_v12 = vadd.f32 %v4120_v55, %v3157_v13  ;;  %v3574_v41 = vmul.f32 -1.442695, %v7177_v45 }
 0x4fd   :  { %v4122_v32 = vpop.eup %4121 }
 0x4fe   :  { %v4124_v34 = vpop.eup %4123  ;;  %v3170_v42 = vmul.f32 %v4122_v32, %v3083_v14  ;;  %v3162_v19 = vsel %vm3161_vm1, %v4120_v55, %v3158_v12  ;;  %4125 = vpow2.f32 %v3574_v41  ;;  %vm3175_vm6 = vweird.f32 %v4122_v32 }
 0x4ff   :  { %v3084_v49 = vadd.f32 1.0, %v4124_v34  ;;  %v3167_v28 = vsel %vm3164_vm12, %v3166_v33, %v3162_v19  ;;  %vm3176_vm10 = vmor %vm3174_vm13, %vm3175_vm6 }
 0x500   :  { %v3171_v16 = vsub.f32 1.0, %v3170_v42  ;;  %v3338_v25 = vmul.f32 %v3167_v28, %v7159_v8  ;;  %vm7869_vm12 = vmmov %vm7866_vm0 }
 0x501   :  { %4127 = vrcp.f32 %v3084_v49  ;;  %v2991_v62 = vpop.f32.mrf.mxu0  ;;  %v3195_v63 = vand.u32 2147483648, %v3084_v49  ;;  %v3193_v54 = vand.u32 2147483647, %v3084_v49  ;;  %vm3189_vm9 = vweird.f32 %v3084_v49 }
 0x502   :  { %v3172_v59 = vmul.f32 %v4122_v32, %v3171_v16  ;;  %3354 = vst.msk [vmem:[#allocation3 + $0x20] sm:$0xff] %vm7867_vm3, %v3338_v25  ;;  %v2992_v36 = vadd.f32 %v2991_v62, %v2912_v3 }
 0x503   :  { %vm3194_vm4 = vcmp.eq.f32.partialorder %v3193_v54, 8.507059e+37 }
 0x504   :  { %v3173_v6 = vadd.f32 %v4122_v32, %v3172_v59  ;;  %v4126_v43 = vpop.eup %4125  ;;  %v7183_v60 = vadd.f32 %v7142_v47, %v2992_v36 }
 0x505   :  { %v3085_v11 = vadd.f32 1.0, %v4126_v43 }
 0x506   :  { %v3177_v38 = vsel %vm3176_vm10, %v4122_v32, %v3173_v6  ;;  %v3575_v29 = vmul.f32 -1.442695, %v7183_v60 }
 0x507   :  { %v4128_v52 = vpop.eup %4127  ;;  %v3182_v8 = vsel %vm3179_vm11, %v3181_v0, %v3177_v38  ;;  %4129 = vrcp.f32 %v3085_v11  ;;  %v3210_v53 = vand.u32 2147483648, %v3085_v11  ;;  %v3208_v50 = vand.u32 2147483647, %v3085_v11  ;;  %vm7870_vm11 = vmmov %vm7866_vm0 }
 0x508   :  { %v3339_v27 = vmul.f32 %v3182_v8, %v7165_v15  ;;  %v3185_v18 = vmul.f32 %v4128_v52, %v3084_v49  ;;  %4131 = vpow2.f32 %v3575_v29  ;;  %vm3190_vm2 = vweird.f32 %v4128_v52 }
 0x509   :  { %v2993_v20 = vpop.f32.mrf.mxu0  ;;  %vm3191_vm15 = vmor %vm3189_vm9, %vm3190_vm2  ;;  %v3196_v15 = vor.u32 1.1754944e-38, %v3195_v63  ;;  %vm3204_vm5 = vweird.f32 %v3085_v11  ;;  %v3211_v22 = vor.u32 1.1754944e-38, %v3210_v53  ;;  %vm3209_vm1 = vcmp.eq.f32.partialorder %v3208_v50, 8.507059e+37 }
 0x50a   :  { %3355 = vst.msk [vmem:[#allocation3 + $0x28] sm:$0xff] %vm7868_vm8, %v3339_v27  ;;  %v3186_v5 = vsub.f32 1.0, %v3185_v18  ;;  %v2994_v9 = vadd.f32 %v2993_v20, %v2914_v26 }
 0x50c   :  { %v3187_v61 = vmul.f32 %v4128_v52, %v3186_v5  ;;  %v7189_v4 = vadd.f32 %v7142_v47, %v2994_v9 }
 0x50d   :  { %v4130_v44 = vpop.eup %4129 }
 0x50e   :  { %v3188_v51 = vadd.f32 %v4128_v52, %v3187_v61  ;;  %v3200_v21 = vmul.f32 %v4130_v44, %v3085_v11  ;;  %v4132_v31 = vpop.eup %4131  ;;  %v3576_v56 = vmul.f32 -1.442695, %v7189_v4  ;;  %vm3205_vm14 = vweird.f32 %v4130_v44 }
 0x50f   :  { %v3086_v46 = vadd.f32 1.0, %v4132_v31  ;;  %vm3206_vm7 = vmor %vm3204_vm5, %vm3205_vm14 }
 0x510   :  { %v3192_v17 = vsel %vm3191_vm15, %v4128_v52, %v3188_v51  ;;  %v3201_v57 = vsub.f32 1.0, %v3200_v21  ;;  %4133 = vpow2.f32 %v3576_v56 }
 0x511   :  { %v3197_v58 = vsel %vm3194_vm4, %v3196_v15, %v3192_v17  ;;  %4135 = vrcp.f32 %v3086_v46  ;;  %v2996_v23 = vpop.f32.mrf.mxu0  ;;  %v3225_v34 = vand.u32 2147483648, %v3086_v46  ;;  %v3223_v19 = vand.u32 2147483647, %v3086_v46  ;;  %vm7871_vm4 = vmmov %vm7866_vm0 }
 0x512   :  { %v3340_v30 = vmul.f32 %v3197_v58, %v7171_v35  ;;  %v3202_v14 = vmul.f32 %v4130_v44, %v3201_v57  ;;  %v2997_v7 = vadd.f32 %v2996_v23, %v2917_v39  ;;  %vm3219_vm3 = vweird.f32 %v3086_v46 }
 0x513   :  { %v3226_v24 = vor.u32 1.1754944e-38, %v3225_v34  ;;  %vm3224_vm10 = vcmp.eq.f32.partialorder %v3223_v19, 8.507059e+37 }
 0x514   :  { %3356 = vst.msk [vmem:[#allocation3 + $0x30] sm:$0xff] %vm7866_vm0, %v3340_v30  ;;  %v3203_v55 = vadd.f32 %v4130_v44, %v3202_v14  ;;  %v7196_v2 = vadd.f32 %v7142_v47, %v2997_v7 }
 0x516   :  { %v3207_v3 = vsel %vm3206_vm7, %v4130_v44, %v3203_v55  ;;  %v4134_v35 = vpop.eup %4133  ;;  %v3577_v12 = vmul.f32 -1.442695, %v7196_v2 }
 0x517   :  { %v3212_v10 = vsel %vm3209_vm1, %v3211_v22, %v3207_v3  ;;  %v4136_v13 = vpop.eup %4135  ;;  %v3087_v40 = vadd.f32 1.0, %v4134_v35  ;;  %vm7872_vm1 = vmmov %vm7871_vm4 }
 0x518   :  { %v3341_v1 = vmul.f32 %v3212_v10, %v7177_v45  ;;  %v3215_v32 = vmul.f32 %v4136_v13, %v3086_v46  ;;  %vm3220_vm6 = vweird.f32 %v4136_v13  ;;  %v2922_v45 = vpop.f32.mrf.mxu1 }
 0x519   :  { %4137 = vrcp.f32 %v3087_v40  ;;  %v2998_v33 = vpop.f32.mrf.mxu0  ;;  %vm3221_vm13 = vmor %vm3219_vm3, %vm3220_vm6  ;;  %v3240_v38 = vand.u32 2147483648, %v3087_v40  ;;  %v3238_v8 = vand.u32 2147483647, %v3087_v40  ;;  %vm3234_vm2 = vweird.f32 %v3087_v40 }
 0x51a   :  { %3357 = vst.msk [vmem:[#allocation3 + $0x38] sm:$0xff] %vm7869_vm12, %v3341_v1  ;;  %v3216_v41 = vsub.f32 1.0, %v3215_v32  ;;  %4139 = vpow2.f32 %v3577_v12  ;;  %v2999_v49 = vadd.f32 %v2998_v33, %v2919_v37 }
 0x51b   :  { %v3241_v63 = vor.u32 1.1754944e-38, %v3240_v38  ;;  %vm3239_vm15 = vcmp.eq.f32.partialorder %v3238_v8, 8.507059e+37 }
 0x51c   :  { %v3217_v42 = vmul.f32 %v4136_v13, %v3216_v41  ;;  %v7201_v16 = vadd.f32 %v7142_v47, %v2999_v49 }
 0x51e   :  { %v3218_v28 = vadd.f32 %v4136_v13, %v3217_v42  ;;  %v3578_v6 = vmul.f32 -1.442695, %v7201_v16 }
 0x51f   :  { %v4138_v25 = vpop.eup %4137 }
 0x520   :  { %v4140_v26 = vpop.eup %4139  ;;  %v3222_v59 = vsel %vm3221_vm13, %v4136_v13, %v3218_v28  ;;  %v3230_v48 = vmul.f32 %v4138_v25, %v3087_v40  ;;  %4141 = vpow2.f32 %v3578_v6  ;;  %vm3235_vm8 = vweird.f32 %v4138_v25  ;;  %v2924_v5 = vpop.f32.mrf.mxu1 }
 0x521   :  { %v3227_v62 = vsel %vm3224_vm10, %v3226_v24, %v3222_v59  ;;  %v3088_v43 = vadd.f32 1.0, %v4140_v26  ;;  %vm3236_vm9 = vmor %vm3234_vm2, %vm3235_vm8 }
 0x522   :  { %v3342_v0 = vmul.f32 %v3227_v62, %v7183_v60  ;;  %v3231_v36 = vsub.f32 1.0, %v3230_v48  ;;  %vm7873_vm10 = vmmov %vm7872_vm1 }
 0x523   :  { %4143 = vrcp.f32 %v3088_v43  ;;  %v3255_v31 = vand.u32 2147483648, %v3088_v43  ;;  %v3253_v57 = vand.u32 2147483647, %v3088_v43  ;;  %vm3249_vm0 = vweird.f32 %v3088_v43 }
 0x524   :  { %3358 = vst.msk [vmem:[#allocation3 + $0x40] sm:$0xff] %vm7870_vm11, %v3342_v0  ;;  %v3232_v52 = vmul.f32 %v4138_v25, %v3231_v36 }
 0x525   :  { %v3001_v11 = vpop.f32.mrf.mxu0  ;;  %v3256_v50 = vor.u32 1.1754944e-38, %v3255_v31  ;;  %vm3254_vm7 = vcmp.eq.f32.partialorder %v3253_v57, 8.507059e+37 }
 0x526   :  { %v3002_v27 = vadd.f32 %v3001_v11, %v2922_v45  ;;  %v3233_v18 = vadd.f32 %v4138_v25, %v3232_v52  ;;  %v4142_v60 = vpop.eup %4141 }
 0x527   :  { %v3089_v9 = vadd.f32 1.0, %v4142_v60 }
 0x528   :  { %v7207_v29 = vadd.f32 %v7142_v47, %v3002_v27  ;;  %v3237_v39 = vsel %vm3236_vm9, %v4138_v25, %v3233_v18  ;;  %v2927_v14 = vpop.f32.mrf.mxu1 }
 0x529   :  { %v4144_v54 = vpop.eup %4143  ;;  %v3242_v20 = vsel %vm3239_vm15, %v3241_v63, %v3237_v39  ;;  %v3270_v1 = vand.u32 2147483648, %v3089_v9  ;;  %v3268_v40 = vand.u32 2147483647, %v3089_v9  ;;  %vm3264_vm6 = vweird.f32 %v3089_v9  ;;  %vm7874_vm15 = vmmov %vm7872_vm1 }
 0x52a   :  { %v3579_v61 = vmul.f32 -1.442695, %v7207_v29  ;;  %v3343_v44 = vmul.f32 %v3242_v20, %v7189_v4  ;;  %v3245_v51 = vmul.f32 %v4144_v54, %v3088_v43  ;;  %vm3250_vm14 = vweird.f32 %v4144_v54 }
 0x52b   :  { %vm3251_vm5 = vmor %vm3249_vm0, %vm3250_vm14  ;;  %v3271_v42 = vor.u32 1.1754944e-38, %v3270_v1  ;;  %vm3269_vm13 = vcmp.eq.f32.partialorder %v3268_v40, 8.507059e+37 }
 0x52c   :  { %4145 = vpow2.f32 %v3579_v61  ;;  %3359 = vst.msk [vmem:[#allocation3 + $0x48] sm:$0xff] %vm7871_vm4, %v3343_v44  ;;  %v3246_v21 = vsub.f32 1.0, %v3245_v51 }
 0x52d   :  { %4147 = vrcp.f32 %v3089_v9  ;;  %v3003_v15 = vpop.f32.mrf.mxu0 }
 0x52e   :  { %v3004_v17 = vadd.f32 %v3003_v15, %v2924_v5  ;;  %v3247_v58 = vmul.f32 %v4144_v54, %v3246_v21 }
 0x530   :  { %v7213_v56 = vadd.f32 %v7142_v47, %v3004_v17  ;;  %v3248_v53 = vadd.f32 %v4144_v54, %v3247_v58  ;;  %v2929_v45 = vpop.f32.mrf.mxu1 }
 0x532   :  { %v4146_v30 = vpop.eup %4145  ;;  %v3580_v4 = vmul.f32 -1.442695, %v7213_v56  ;;  %v3252_v37 = vsel %vm3251_vm5, %v4144_v54, %v3248_v53 }
 0x533   :  { %v4148_v46 = vpop.eup %4147  ;;  %v3090_v55 = vadd.f32 1.0, %v4146_v30  ;;  %v3257_v23 = vsel %vm3254_vm7, %v3256_v50, %v3252_v37  ;;  %vm7875_vm7 = vmmov %vm7872_vm1 }
 0x534   :  { %v3260_v22 = vmul.f32 %v4148_v46, %v3089_v9  ;;  %4149 = vpow2.f32 %v3580_v4  ;;  %v3344_v7 = vmul.f32 %v3257_v23, %v7196_v2  ;;  %vm3265_vm12 = vweird.f32 %v4148_v46 }
 0x535   :  { %4151 = vrcp.f32 %v3090_v55  ;;  %vm3266_vm3 = vmor %vm3264_vm6, %vm3265_vm12  ;;  %v3285_v48 = vand.u32 2147483648, %v3090_v55  ;;  %v3283_v62 = vand.u32 2147483647, %v3090_v55  ;;  %vm3279_vm8 = vweird.f32 %v3090_v55 }
 0x536   :  { %v3006_v3 = vpop.f32.mrf.mxu0  ;;  %v3261_v10 = vsub.f32 1.0, %v3260_v22  ;;  %3360 = vst.msk [vmem:[#allocation3 + $0x50] sm:$0xff] %vm7872_vm1, %v3344_v7 }
 0x537   :  { %v3007_v35 = vadd.f32 %v3006_v3, %v2927_v14  ;;  %v3286_v52 = vor.u32 1.1754944e-38, %v3285_v48  ;;  %vm3284_vm9 = vcmp.eq.f32.partialorder %v3283_v62, 8.507059e+37 }
 0x538   :  { %v3262_v13 = vmul.f32 %v4148_v46, %v3261_v10 }
 0x539   :  { %v7219_v32 = vadd.f32 %v7142_v47, %v3007_v35 }
 0x53a   :  { %v4150_v12 = vpop.eup %4149  ;;  %v3263_v41 = vadd.f32 %v4148_v46, %v3262_v13 }
 0x53b   :  { %v3581_v34 = vmul.f32 -1.442695, %v7219_v32  ;;  %v4152_v33 = vpop.eup %4151  ;;  %v3091_v2 = vadd.f32 1.0, %v4150_v12 }
 0x53c   :  { %v3267_v19 = vsel %vm3266_vm3, %v4148_v46, %v3263_v41  ;;  %v3275_v49 = vmul.f32 %v4152_v33, %v3090_v55  ;;  %vm3280_vm11 = vweird.f32 %v4152_v33 }
 0x53d   :  { %4153 = vpow2.f32 %v3581_v34  ;;  %v3272_v28 = vsel %vm3269_vm13, %v3271_v42, %v3267_v19  ;;  %vm3281_vm2 = vmor %vm3279_vm8, %vm3280_vm11  ;;  %v3298_v39 = vand.u32 2147483647, %v3091_v2  ;;  %vm3294_vm14 = vweird.f32 %v3091_v2 }
 0x53e   :  { %4155 = vrcp.f32 %v3091_v2  ;;  %v3008_v25 = vpop.f32.mrf.mxu0  ;;  %v3345_v24 = vmul.f32 %v3272_v28, %v7201_v16  ;;  %v3276_v26 = vsub.f32 1.0, %v3275_v49  ;;  %vm7876_vm13 = vmmov %vm7875_vm7 }
 0x53f   :  { %v3009_v59 = vadd.f32 %v3008_v25, %v2929_v45  ;;  %vm3299_vm5 = vcmp.eq.f32.partialorder %v3298_v39, 8.507059e+37 }
 0x540   :  { %3361 = vst.msk [vmem:[#allocation3 + $0x58] sm:$0xff] %vm7873_vm10, %v3345_v24  ;;  %v3277_v6 = vmul.f32 %v4152_v33, %v3276_v26 }
 0x541   :  { %v7225_v43 = vadd.f32 %v7142_v47, %v3009_v59  ;;  %v3300_v47 = vand.u32 2147483648, %v3091_v2 }
 0x542   :  { %v3278_v36 = vadd.f32 %v4152_v33, %v3277_v6 }
 0x543   :  { %v4154_v0 = vpop.eup %4153  ;;  %v3582_v38 = vmul.f32 -1.442695, %v7225_v43  ;;  %v3301_v9 = vor.u32 1.1754944e-38, %v3300_v47 }
 0x544   :  { %v4156_v11 = vpop.eup %4155  ;;  %v3092_v16 = vadd.f32 1.0, %v4154_v0  ;;  %v3282_v8 = vsel %vm3281_vm2, %v4152_v33, %v3278_v36 }
 0x545   :  { %v3290_v27 = vmul.f32 %v4156_v11, %v3091_v2  ;;  %4157 = vpow2.f32 %v3582_v38  ;;  %v3287_v18 = vsel %vm3284_vm9, %v3286_v52, %v3282_v8  ;;  %vm3295_vm4 = vweird.f32 %v4156_v11  ;;  %vm7877_vm9 = vmmov %vm7875_vm7 }
 0x546   :  { %4159 = vrcp.f32 %v3092_v16  ;;  %v3346_v5 = vmul.f32 %v3287_v18, %v7207_v29  ;;  %vm3296_vm0 = vmor %vm3294_vm14, %vm3295_vm4  ;;  %v3315_v31 = vand.u32 2147483648, %v3092_v16  ;;  %v3313_v57 = vand.u32 2147483647, %v3092_v16 }
 0x547   :  { %v3291_v63 = vsub.f32 1.0, %v3290_v27  ;;  %vm3309_vm12 = vweird.f32 %v3092_v16 }
 0x548   :  { %3362 = vst.msk [vmem:[#allocation3 + $0x60] sm:$0xff] %vm7874_vm15, %v3346_v5  ;;  %v3316_v4 = vor.u32 1.1754944e-38, %v3315_v31  ;;  %vm3314_vm3 = vcmp.eq.f32.partialorder %v3313_v57, 8.507059e+37 }
 0x549   :  { %v3292_v60 = vmul.f32 %v4156_v11, %v3291_v63 }
 0x54b   :  { %v4158_v61 = vpop.eup %4157  ;;  %v3293_v54 = vadd.f32 %v4156_v11, %v3292_v60 }
 0x54c   :  { %v4160_v20 = vpop.eup %4159  ;;  %v3093_v44 = vadd.f32 1.0, %v4158_v61 }
 0x54d   :  { %v3297_v51 = vsel %vm3296_vm0, %v4156_v11, %v3293_v54  ;;  %v3305_v15 = vmul.f32 %v4160_v20, %v3092_v16  ;;  %vm3310_vm1 = vweird.f32 %v4160_v20 }
 0x54e   :  { %v3302_v21 = vsel %vm3299_vm5, %v3301_v9, %v3297_v51  ;;  %4161 = vrcp.f32 %v3093_v44  ;;  %vm3311_vm6 = vmor %vm3309_vm12, %vm3310_vm1  ;;  %v3328_v23 = vand.u32 2147483647, %v3093_v44  ;;  %vm3324_vm11 = vweird.f32 %v3093_v44 }
 0x54f   :  { %v3347_v29 = vmul.f32 %v3302_v21, %v7213_v56  ;;  %v3306_v17 = vsub.f32 1.0, %v3305_v15  ;;  %v3330_v56 = vand.u32 2147483648, %v3093_v44 }
 0x550   :  { %vm3329_vm2 = vcmp.eq.f32.partialorder %v3328_v23, 8.507059e+37 }
 0x551   :  { %3363 = vst.msk [vmem:[#allocation3 + $0x68] sm:$0xff] %vm7875_vm7, %v3347_v29  ;;  %v3307_v58 = vmul.f32 %v4160_v20, %v3306_v17  ;;  %v3331_v7 = vor.u32 1.1754944e-38, %v3330_v56 }
 0x553   :  { %v3308_v30 = vadd.f32 %v4160_v20, %v3307_v58 }
 0x554   :  { %v4162_v53 = vpop.eup %4161 }
 0x555   :  { %v3312_v46 = vsel %vm3311_vm6, %v4160_v20, %v3308_v30  ;;  %v3320_v14 = vmul.f32 %v4162_v53, %v3093_v44  ;;  %vm3325_vm10 = vweird.f32 %v4162_v53 }
 0x556   :  { %v3317_v50 = vsel %vm3314_vm3, %v3316_v4, %v3312_v46  ;;  %vm3326_vm8 = vmor %vm3324_vm11, %vm3325_vm10 }
 0x557   :  { %v3348_v55 = vmul.f32 %v3317_v50, %v7219_v32  ;;  %v3321_v37 = vsub.f32 1.0, %v3320_v14 }
 0x559   :  { %3364 = vst.msk [vmem:[#allocation3 + $0x70] sm:$0xff] %vm7876_vm13, %v3348_v55  ;;  %v3322_v22 = vmul.f32 %v4162_v53, %v3321_v37 }
 0x55b   :  { %v3323_v3 = vadd.f32 %v4162_v53, %v3322_v22 }
 0x55d   :  { %v3327_v10 = vsel %vm3326_vm8, %v4162_v53, %v3323_v3 }
 0x55e   :  { %v3332_v35 = vsel %vm3329_vm2, %v3331_v7, %v3327_v10 }
 0x55f   :  { %v3349_v1 = vmul.f32 %v3332_v35, %v7225_v43 }
 0x561   :  { %3365 = vst.msk [vmem:[#allocation3 + $0x78] sm:$0xff] %vm7877_vm9, %v3349_v1 }
 0x562   :  { %3378 = dma.vmem_to_hbm [thread:$0]  %s3371_s7, 2048, %s3373_s16, [#allocation4], %s4199_s17, %s4199_s17, %s4200_s18  }
 0x563   :  { %4188 = dma.done.wait [#allocation4], 2048  }
 0x564   :  { %4189 = vsyncadd [#allocation4], 4294965248 }
 0x565   :  { %3383 = vsyncpa [#allocation4], 1 }

</bundles_post_ra>
